<compile_context>
chip_gen: v7x
topology: tpu7x:2x2x1
jax: 0.10.0
libtpu: 0.0.40
codegen_flags: <defaults>
</compile_context>

<pallas_src>
import functools

import jax
import jax.numpy as jnp
from jax.experimental import pallas as pl
from jax.experimental.pallas import tpu as pltpu


_MATMUL_DTYPE = jnp.bfloat16  # MXU operand dtype (accumulation is always f32)


# ------------------------------ fused kernel -------------------------------

def _fused_kernel(cols1_ref, w1_ref, b1_ref, w2_ref, b2_ref, o_ref, p1pad_ref,
                  *, Cmid, Cout, k2, OH1, OW1, P1H, P1W, P2H, P2W, pad2,
                  wins_h, wins_w):
    B = cols1_ref.shape[0]
    K1 = w1_ref.shape[0]
    G_W = P1W + 2 * pad2          # padded conv2 input grid width
    G_H = P1H + 2 * pad2          # padded conv2 input grid height
    del G_H  # (only its product with G_W matters; scratch already sized)

    # ---- conv1 + bias + ReLU --------------------------------------------
    # One batched MXU matmul: (B, OH1*OW1, K1) @ (B, K1, Cmid), M = 289.
    w1b = jnp.broadcast_to(w1_ref[...][None], (B, K1, Cmid))
    h1 = jnp.einsum("bmk,bkn->bmn", cols1_ref[...], w1b,
                    preferred_element_type=jnp.float32)
    h1 = jnp.maximum(h1 + b1_ref[...], 0.0)          # (B, OH1*OW1, Cmid) f32

    # ---- MaxPool2d(3, 2) #1 ----------------------------------------------
    # Flat coordinates m = h*OW1 + w.  H-direction max = flat shifts by OW1.
    LA = (OH1 - 2) * OW1
    m1f = jnp.maximum(jnp.maximum(h1[:, 0:LA], h1[:, OW1:OW1 + LA]),
                      h1[:, 2 * OW1:2 * OW1 + LA])
    # Restructure to rows (also decimates H): row i <- flat [2*i*OW1, +OW1).
    rows = [m1f[:, 2 * i * OW1: 2 * i * OW1 + OW1, :] for i in range(P1H)]
    m1r = jnp.stack(rows, axis=1)                    # (B, P1H, OW1, Cmid)
    LW = OW1 - 2
    m1w = jnp.maximum(jnp.maximum(m1r[:, :, 0:LW], m1r[:, :, 1:1 + LW]),
                      m1r[:, :, 2:2 + LW])           # (B, P1H, LW, Cmid)
    p1 = jnp.concatenate([m1w[:, :, 2 * j:2 * j + 1, :] for j in range(P1W)],
                         axis=2).astype(_MATMUL_DTYPE)  # (B, P1H, P1W, Cmid)

    # ---- zero-padded conv2 input (flat row-major (P1H+4)*(P1W+4) grid) ----
    p1pad_ref[...] = jnp.zeros(p1pad_ref.shape, p1pad_ref.dtype)
    for i in range(P1H):
        r0 = (pad2 + i) * G_W + pad2
        p1pad_ref[:, r0:r0 + P1W, :] = p1[:, i, :, :]

    # ---- conv2 + bias + ReLU: single-matmul im2col on the flat grid -------
    LC = (P1H - 1) * G_W + P1W
    slabs = [p1pad_ref[:, ky * G_W + kx: ky * G_W + kx + LC, :]
             for ky in range(k2) for kx in range(k2)]
    patches = jnp.concatenate(slabs, axis=-1)        # (B, LC, k2*k2*Cmid)
    w2b = jnp.broadcast_to(w2_ref[...][None], (B, k2 * k2 * Cmid, Cout))
    h2 = jnp.einsum("bmk,bkn->bmn", patches, w2b,
                    preferred_element_type=jnp.float32)
    h2 = jnp.maximum(h2 + b2_ref[...], 0.0)          # valid at m = i*G_W + j

    # ---- MaxPool2d(3, 2) #2, same flat-shift trick (row stride G_W) -------
    max_base = 2 * (P2H - 1) * G_W + 2 * (P2W - 1)
    LD1 = max_base + 2 * G_W + 1
    mw2 = jnp.maximum(jnp.maximum(h2[:, 0:LD1], h2[:, 1:1 + LD1]),
                      h2[:, 2:2 + LD1])
    LD2 = max_base + 1
    m2 = jnp.maximum(jnp.maximum(mw2[:, 0:LD2], mw2[:, G_W:G_W + LD2]),
                     mw2[:, 2 * G_W:2 * G_W + LD2])  # (B, LD2, Cout)
    # pool2[pi, pj] == m2[:, 2*pi*G_W + 2*pj, :]

    # ---- AdaptiveAvgPool2d -> single output store --------------------------
    LE = 2 * (P2W - 1) + 1
    out_rows = []
    for (hs, hl) in wins_h:
        rsum = m2[:, 2 * hs * G_W: 2 * hs * G_W + LE, :]
        for ii in range(1, hl):
            b0 = 2 * (hs + ii) * G_W
            rsum = rsum + m2[:, b0:b0 + LE, :]
        cols_o = []
        for (ws, wl) in wins_w:
            csum = rsum[:, 2 * ws: 2 * ws + 1, :]
            for jj in range(1, wl):
                csum = csum + rsum[:, 2 * (ws + jj): 2 * (ws + jj) + 1, :]
            cols_o.append(csum * (1.0 / (hl * wl)))     # (B, 1, Cout)
        out_rows.append(jnp.concatenate(cols_o, axis=1))  # (B, h1, Cout)
    o_ref[...] = jnp.stack(out_rows, axis=1)              # (B, h0, h1, Cout)


# ------------------------------ glue helpers -------------------------------

def _adaptive_windows(in_size, out_size):
    # AdaptiveAvgPool2d window rule: [floor(i*I/O), ceil((i+1)*I/O))
    wins = []
    for i in range(out_size):
        start = (i * in_size) // out_size
        end = -(-((i + 1) * in_size) // out_size)
        wins.append((start, end - start))
    return tuple(wins)


def _im2col_nhwc(x, k, stride, pad):
    """Host-side patch extraction for conv1 (stride-4 gather is pure layout)."""
    N, H, W, C = x.shape
    xp = jnp.pad(x, ((0, 0), (pad, pad), (pad, pad), (0, 0)))
    OH = (H + 2 * pad - k) // stride + 1
    OW = (W + 2 * pad - k) // stride + 1
    cols = []
    for ky in range(k):
        for kx in range(k):
            cols.append(
                xp[:, ky:ky + stride * OH:stride, kx:kx + stride * OW:stride, :])
    p = jnp.stack(cols, axis=3)                   # (N, OH, OW, k*k, C)
    return p.reshape(N, OH, OW, k * k * C), OH, OW


def _pick_batch_block(n):
    # Several samples per grid step, but keep >= ~4 steps when possible so
    # each v7x TensorCore still gets a pipelined loop.  Cap at 16.
    return max(1, min(16, n // 4))


# ------------------------------- module port --------------------------------

def init_params(key, in_channels, out_channels, h_w):
    mid = (in_channels + out_channels) // 2
    k1 = h_w[0] * 2
    k2 = 5
    ks = jax.random.split(key, 4)
    w1 = jax.random.normal(ks[0], (mid, in_channels, k1, k1), jnp.float32)
    w1 = w1 * (1.0 / (in_channels * k1 * k1)) ** 0.5
    b1 = 0.01 * jax.random.normal(ks[1], (mid,), jnp.float32)
    w2 = jax.random.normal(ks[2], (out_channels, mid, k2, k2), jnp.float32)
    w2 = w2 * (1.0 / (mid * k2 * k2)) ** 0.5
    b2 = 0.01 * jax.random.normal(ks[3], (out_channels,), jnp.float32)
    return {"w1": w1, "b1": b1, "w2": w2, "b2": b2}


def downsample_cnn_forward(x_nchw, params, h_w):
    w1, b1 = params["w1"], params["b1"]
    w2, b2 = params["w2"], params["b2"]
    N, Cin, H, W = x_nchw.shape
    Cmid, Cout = w1.shape[0], w2.shape[0]
    k1, k2 = w1.shape[2], w2.shape[2]
    pad2 = 2

    # Host-side layout prep (fused XLA chain). conv1 patch matrix is the
    # kernel input (same byte count as the raw input since k1 == stride == 4).
    x = jnp.transpose(x_nchw, (0, 2, 3, 1)).astype(jnp.float32)   # NCHW->NHWC
    cols1, OH1, OW1 = _im2col_nhwc(x, k1, stride=4, pad=2)
    K1 = k1 * k1 * Cin
    cols1 = cols1.reshape(N, OH1 * OW1, K1).astype(_MATMUL_DTYPE)

    # Static stage sizes.
    P1H, P1W = (OH1 - 3) // 2 + 1, (OW1 - 3) // 2 + 1     # maxpool1 out
    P2H, P2W = (P1H - 3) // 2 + 1, (P1W - 3) // 2 + 1     # maxpool2 out
    wins_h = _adaptive_windows(P2H, h_w[0])
    wins_w = _adaptive_windows(P2W, h_w[1])

    # Batch blocking.
    B_blk = _pick_batch_block(N)
    Npad = -(-N // B_blk) * B_blk
    if Npad != N:
        cols1 = jnp.pad(cols1, ((0, Npad - N), (0, 0), (0, 0)))

    # Compact weight layouts (no replication in HBM / DMA).
    w1m = jnp.transpose(w1, (2, 3, 1, 0)).reshape(K1, Cmid).astype(_MATMUL_DTYPE)
    w2m = (jnp.transpose(w2, (2, 3, 1, 0))
           .reshape(k2 * k2 * Cmid, Cout).astype(_MATMUL_DTYPE))
    b1r = b1.reshape(1, 1, Cmid).astype(jnp.float32)
    b2r = b2.reshape(1, 1, Cout).astype(jnp.float32)

    G_HW = (P1H + 2 * pad2) * (P1W + 2 * pad2)

    kernel = functools.partial(
        _fused_kernel, Cmid=Cmid, Cout=Cout, k2=k2, OH1=OH1, OW1=OW1,
        P1H=P1H, P1W=P1W, P2H=P2H, P2W=P2W, pad2=pad2,
        wins_h=wins_h, wins_w=wins_w)

    out_nhwc = pl.pallas_call(
        kernel,
        out_shape=jax.ShapeDtypeStruct((Npad, h_w[0], h_w[1], Cout),
                                       jnp.float32),
        grid=(Npad // B_blk,),
        in_specs=[
            pl.BlockSpec((B_blk, OH1 * OW1, K1), lambda n: (n, 0, 0)),
            pl.BlockSpec((K1, Cmid), lambda n: (0, 0)),
            pl.BlockSpec((1, 1, Cmid), lambda n: (0, 0, 0)),
            pl.BlockSpec((k2 * k2 * Cmid, Cout), lambda n: (0, 0)),
            pl.BlockSpec((1, 1, Cout), lambda n: (0, 0, 0)),
        ],
        out_specs=pl.BlockSpec((B_blk, h_w[0], h_w[1], Cout),
                               lambda n: (n, 0, 0, 0)),
        scratch_shapes=[
            pltpu.VMEM((B_blk, G_HW, Cmid), _MATMUL_DTYPE),  # padded pool1
        ],
        compiler_params=pltpu.CompilerParams(
            dimension_semantics=("parallel",)),
    )(cols1, w1m, b1r, w2m, b2r)

    out_nhwc = out_nhwc[:N]
    return jnp.transpose(out_nhwc, (0, 3, 1, 2))          # NHWC -> NCHW


# ---------------------------- pure-JAX reference ----------------------------

def _reference_forward(x, params, h_w):
    w1, b1 = params["w1"], params["b1"]
    w2, b2 = params["w2"], params["b2"]
    dn = ("NCHW", "OIHW", "NCHW")
    y = jax.lax.conv_general_dilated(x, w1, (4, 4), [(2, 2), (2, 2)],
                                     dimension_numbers=dn,
                                     precision=jax.lax.Precision.HIGHEST)
    y = jnp.maximum(y + b1[None, :, None, None], 0.0)
    y = jax.lax.reduce_window(y, -jnp.inf, jax.lax.max,
                              (1, 1, 3, 3), (1, 1, 2, 2), "VALID")
    y = jax.lax.conv_general_dilated(y, w2, (1, 1), [(2, 2), (2, 2)],
                                     dimension_numbers=dn,
                                     precision=jax.lax.Precision.HIGHEST)
    y = jnp.maximum(y + b2[None, :, None, None], 0.0)
    y = jax.lax.reduce_window(y, -jnp.inf, jax.lax.max,
                              (1, 1, 3, 3), (1, 1, 2, 2), "VALID")
    Np, Cp, H, W = y.shape
    rows = []
    for i in range(h_w[0]):
        hs = (i * H) // h_w[0]
        he = -(-((i + 1) * H) // h_w[0])
        cols = []
        for j in range(h_w[1]):
            ws = (j * W) // h_w[1]
            we = -(-((j + 1) * W) // h_w[1])
            cols.append(jnp.mean(y[:, :, hs:he, ws:we], axis=(2, 3)))
        rows.append(jnp.stack(cols, axis=-1))
    return jnp.stack(rows, axis=-2)


# ----------------------------------- main ------------------------------------

if __name__ == "__main__":
    in_channels, out_channels, h_w = 4, 8, (2, 2)
    key = jax.random.PRNGKey(0)
    kx, kp = jax.random.split(key)

    # Spatial 64 so every stage keeps a valid (>0) extent after the two
    # MaxPool2d(3, 2) stages (smaller inputs collapse to empty pools).
    x = jax.random.normal(kx, (2, in_channels, 64, 64), jnp.float32)
    params = init_params(kp, in_channels, out_channels, h_w)

    out = downsample_cnn_forward(x, params, h_w)
    out = jax.block_until_ready(out)

    assert out.shape == (2, out_channels, h_w[0], h_w[1]), out.shape

    ref = jax.block_until_ready(_reference_forward(x, params, h_w))
    assert jnp.allclose(out, ref, rtol=5e-2, atol=5e-2), (
        float(jnp.max(jnp.abs(out - ref))))

    print("KERNEL_OK")
</pallas_src>

<mosaic_0001>
module attributes {stable_mosaic.version = 11 : i64} {
  func.func @_fused_kernel(%arg0: i32, %arg1: memref<1x289x64xbf16, #tpu.memory_space<vmem>>, %arg2: memref<64x6xbf16, #tpu.memory_space<vmem>>, %arg3: memref<1x1x6xf32, #tpu.memory_space<vmem>>, %arg4: memref<150x8xbf16, #tpu.memory_space<vmem>>, %arg5: memref<1x1x8xf32, #tpu.memory_space<vmem>>, %arg6: memref<1x2x2x8xf32, #tpu.memory_space<vmem>>, %arg7: memref<1x144x6xbf16, #tpu.memory_space<vmem>>) attributes {dimension_semantics = [#tpu.dimension_semantics<parallel>], iteration_bounds = array<i64: 2>, scalar_prefetch = 0 : i64, scratch_operands = 1 : i64, tpu.core_type = #tpu.core_type<tc>, window_params = [{transform_indices = @transform_0, window_bounds = array<i64: 1, 289, 64>}, {pipeline_mode = #tpu.pipeline_mode<synchronous>, transform_indices = @transform_1, window_bounds = array<i64: 64, 6>}, {pipeline_mode = #tpu.pipeline_mode<synchronous>, transform_indices = @transform_2, window_bounds = array<i64: 1, 1, 6>}, {pipeline_mode = #tpu.pipeline_mode<synchronous>, transform_indices = @transform_3, window_bounds = array<i64: 150, 8>}, {pipeline_mode = #tpu.pipeline_mode<synchronous>, transform_indices = @transform_4, window_bounds = array<i64: 1, 1, 8>}, {transform_indices = @transform_5, window_bounds = array<i64: 1, 2, 2, 8>}]} {
    %c0 = arith.constant 0 : index
    %c0_0 = arith.constant 0 : index
    %0 = vector.load %arg2[%c0, %c0_0] : memref<64x6xbf16, #tpu.memory_space<vmem>>, vector<64x6xbf16>
    %1 = vector.shape_cast %0 : vector<64x6xbf16> to vector<1x64x6xbf16>
    %c0_1 = arith.constant 0 : index
    %c0_2 = arith.constant 0 : index
    %c0_3 = arith.constant 0 : index
    %2 = vector.load %arg1[%c0_1, %c0_2, %c0_3] : memref<1x289x64xbf16, #tpu.memory_space<vmem>>, vector<1x289x64xbf16>
    "tpu.trace_start"() <{level = 10 : i32, message = "bmk,bkn->bmn"}> : () -> ()
    %cst = arith.constant dense<0.000000e+00> : vector<1x289x6xf32>
    %3 = tpu.matmul %2, %1, %cst {dimension_numbers = #tpu.dot_dimension_numbers<[2], [1], [1], [2], [0, 0, 0, 1, 1, 2], [0], [0]>} : vector<1x289x64xbf16>, vector<1x64x6xbf16>, vector<1x289x6xf32> -> vector<1x289x6xf32>
    "tpu.trace_stop"() : () -> ()
    %c0_4 = arith.constant 0 : index
    %c0_5 = arith.constant 0 : index
    %c0_6 = arith.constant 0 : index
    %4 = vector.load %arg3[%c0_4, %c0_5, %c0_6] : memref<1x1x6xf32, #tpu.memory_space<vmem>>, vector<1x1x6xf32>
    %5 = vector.broadcast %4 : vector<1x1x6xf32> to vector<1x289x6xf32>
    %6 = arith.addf %3, %5 : vector<1x289x6xf32>
    %cst_7 = arith.constant 0.000000e+00 : f32
    %7 = vector.broadcast %cst_7 : f32 to vector<1x289x6xf32>
    %8 = arith.maximumf %6, %7 : vector<1x289x6xf32>
    %9 = vector.extract_strided_slice %8 {offsets = [0, 0, 0], sizes = [1, 255, 6], strides = [1, 1, 1]} : vector<1x289x6xf32> to vector<1x255x6xf32>
    %10 = vector.extract_strided_slice %8 {offsets = [0, 17, 0], sizes = [1, 255, 6], strides = [1, 1, 1]} : vector<1x289x6xf32> to vector<1x255x6xf32>
    %11 = arith.maximumf %9, %10 : vector<1x255x6xf32>
    %12 = vector.extract_strided_slice %8 {offsets = [0, 34, 0], sizes = [1, 255, 6], strides = [1, 1, 1]} : vector<1x289x6xf32> to vector<1x255x6xf32>
    %13 = arith.maximumf %11, %12 : vector<1x255x6xf32>
    %14 = vector.extract_strided_slice %13 {offsets = [0, 0, 0], sizes = [1, 17, 6], strides = [1, 1, 1]} : vector<1x255x6xf32> to vector<1x17x6xf32>
    %15 = vector.extract_strided_slice %13 {offsets = [0, 34, 0], sizes = [1, 17, 6], strides = [1, 1, 1]} : vector<1x255x6xf32> to vector<1x17x6xf32>
    %16 = vector.extract_strided_slice %13 {offsets = [0, 68, 0], sizes = [1, 17, 6], strides = [1, 1, 1]} : vector<1x255x6xf32> to vector<1x17x6xf32>
    %17 = vector.extract_strided_slice %13 {offsets = [0, 102, 0], sizes = [1, 17, 6], strides = [1, 1, 1]} : vector<1x255x6xf32> to vector<1x17x6xf32>
    %18 = vector.extract_strided_slice %13 {offsets = [0, 136, 0], sizes = [1, 17, 6], strides = [1, 1, 1]} : vector<1x255x6xf32> to vector<1x17x6xf32>
    %19 = vector.extract_strided_slice %13 {offsets = [0, 170, 0], sizes = [1, 17, 6], strides = [1, 1, 1]} : vector<1x255x6xf32> to vector<1x17x6xf32>
    %20 = vector.extract_strided_slice %13 {offsets = [0, 204, 0], sizes = [1, 17, 6], strides = [1, 1, 1]} : vector<1x255x6xf32> to vector<1x17x6xf32>
    %21 = vector.extract_strided_slice %13 {offsets = [0, 238, 0], sizes = [1, 17, 6], strides = [1, 1, 1]} : vector<1x255x6xf32> to vector<1x17x6xf32>
    %22 = vector.shape_cast %14 : vector<1x17x6xf32> to vector<1x1x17x6xf32>
    %23 = vector.shape_cast %15 : vector<1x17x6xf32> to vector<1x1x17x6xf32>
    %24 = vector.shape_cast %16 : vector<1x17x6xf32> to vector<1x1x17x6xf32>
    %25 = vector.shape_cast %17 : vector<1x17x6xf32> to vector<1x1x17x6xf32>
    %26 = vector.shape_cast %18 : vector<1x17x6xf32> to vector<1x1x17x6xf32>
    %27 = vector.shape_cast %19 : vector<1x17x6xf32> to vector<1x1x17x6xf32>
    %28 = vector.shape_cast %20 : vector<1x17x6xf32> to vector<1x1x17x6xf32>
    %29 = vector.shape_cast %21 : vector<1x17x6xf32> to vector<1x1x17x6xf32>
    %30 = tpu.concatenate %22, %23, %24, %25, %26, %27, %28, %29 in 1 : vector<1x1x17x6xf32>, vector<1x1x17x6xf32>, vector<1x1x17x6xf32>, vector<1x1x17x6xf32>, vector<1x1x17x6xf32>, vector<1x1x17x6xf32>, vector<1x1x17x6xf32>, vector<1x1x17x6xf32> -> vector<1x8x17x6xf32>
    %31 = vector.extract_strided_slice %30 {offsets = [0, 0, 0, 0], sizes = [1, 8, 15, 6], strides = [1, 1, 1, 1]} : vector<1x8x17x6xf32> to vector<1x8x15x6xf32>
    %32 = vector.extract_strided_slice %30 {offsets = [0, 0, 1, 0], sizes = [1, 8, 15, 6], strides = [1, 1, 1, 1]} : vector<1x8x17x6xf32> to vector<1x8x15x6xf32>
    %33 = arith.maximumf %31, %32 : vector<1x8x15x6xf32>
    %34 = vector.extract_strided_slice %30 {offsets = [0, 0, 2, 0], sizes = [1, 8, 15, 6], strides = [1, 1, 1, 1]} : vector<1x8x17x6xf32> to vector<1x8x15x6xf32>
    %35 = arith.maximumf %33, %34 : vector<1x8x15x6xf32>
    %36 = vector.extract_strided_slice %35 {offsets = [0, 0, 0, 0], sizes = [1, 8, 1, 6], strides = [1, 1, 1, 1]} : vector<1x8x15x6xf32> to vector<1x8x1x6xf32>
    %37 = vector.extract_strided_slice %35 {offsets = [0, 0, 2, 0], sizes = [1, 8, 1, 6], strides = [1, 1, 1, 1]} : vector<1x8x15x6xf32> to vector<1x8x1x6xf32>
    %38 = vector.extract_strided_slice %35 {offsets = [0, 0, 4, 0], sizes = [1, 8, 1, 6], strides = [1, 1, 1, 1]} : vector<1x8x15x6xf32> to vector<1x8x1x6xf32>
    %39 = vector.extract_strided_slice %35 {offsets = [0, 0, 6, 0], sizes = [1, 8, 1, 6], strides = [1, 1, 1, 1]} : vector<1x8x15x6xf32> to vector<1x8x1x6xf32>
    %40 = vector.extract_strided_slice %35 {offsets = [0, 0, 8, 0], sizes = [1, 8, 1, 6], strides = [1, 1, 1, 1]} : vector<1x8x15x6xf32> to vector<1x8x1x6xf32>
    %41 = vector.extract_strided_slice %35 {offsets = [0, 0, 10, 0], sizes = [1, 8, 1, 6], strides = [1, 1, 1, 1]} : vector<1x8x15x6xf32> to vector<1x8x1x6xf32>
    %42 = vector.extract_strided_slice %35 {offsets = [0, 0, 12, 0], sizes = [1, 8, 1, 6], strides = [1, 1, 1, 1]} : vector<1x8x15x6xf32> to vector<1x8x1x6xf32>
    %43 = vector.extract_strided_slice %35 {offsets = [0, 0, 14, 0], sizes = [1, 8, 1, 6], strides = [1, 1, 1, 1]} : vector<1x8x15x6xf32> to vector<1x8x1x6xf32>
    %44 = tpu.concatenate %36, %37, %38, %39, %40, %41, %42, %43 in 2 : vector<1x8x1x6xf32>, vector<1x8x1x6xf32>, vector<1x8x1x6xf32>, vector<1x8x1x6xf32>, vector<1x8x1x6xf32>, vector<1x8x1x6xf32>, vector<1x8x1x6xf32>, vector<1x8x1x6xf32> -> vector<1x8x8x6xf32>
    %45 = arith.truncf %44 : vector<1x8x8x6xf32> to vector<1x8x8x6xbf16>
    %cst_8 = arith.constant 0.000000e+00 : bf16
    %46 = vector.broadcast %cst_8 : bf16 to vector<1x144x6xbf16>
    %c0_9 = arith.constant 0 : index
    %c0_10 = arith.constant 0 : index
    %c0_11 = arith.constant 0 : index
    %47 = vector.load %arg7[%c0_9, %c0_10, %c0_11] : memref<1x144x6xbf16, #tpu.memory_space<vmem>>, vector<1x144x6xbf16>
    tpu.vector_store %arg7[%c0_9, %c0_10, %c0_11], %46 {strides = array<i32>} : memref<1x144x6xbf16, #tpu.memory_space<vmem>>, vector<1x144x6xbf16>,
    %48 = vector.extract_strided_slice %45 {offsets = [0, 0, 0, 0], sizes = [1, 1, 8, 6], strides = [1, 1, 1, 1]} : vector<1x8x8x6xbf16> to vector<1x1x8x6xbf16>
    %49 = vector.shape_cast %48 : vector<1x1x8x6xbf16> to vector<1x8x6xbf16>
    %c0_12 = arith.constant 0 : index
    %c26 = arith.constant 26 : index
    %c0_13 = arith.constant 0 : index
    %50 = vector.load %arg7[%c0_12, %c26, %c0_13] : memref<1x144x6xbf16, #tpu.memory_space<vmem>>, vector<1x8x6xbf16>
    tpu.vector_store %arg7[%c0_12, %c26, %c0_13], %49 {strides = array<i32>} : memref<1x144x6xbf16, #tpu.memory_space<vmem>>, vector<1x8x6xbf16>,
    %51 = vector.extract_strided_slice %45 {offsets = [0, 1, 0, 0], sizes = [1, 1, 8, 6], strides = [1, 1, 1, 1]} : vector<1x8x8x6xbf16> to vector<1x1x8x6xbf16>
    %52 = vector.shape_cast %51 : vector<1x1x8x6xbf16> to vector<1x8x6xbf16>
    %c0_14 = arith.constant 0 : index
    %c38 = arith.constant 38 : index
    %c0_15 = arith.constant 0 : index
    %53 = vector.load %arg7[%c0_14, %c38, %c0_15] : memref<1x144x6xbf16, #tpu.memory_space<vmem>>, vector<1x8x6xbf16>
    tpu.vector_store %arg7[%c0_14, %c38, %c0_15], %52 {strides = array<i32>} : memref<1x144x6xbf16, #tpu.memory_space<vmem>>, vector<1x8x6xbf16>,
    %54 = vector.extract_strided_slice %45 {offsets = [0, 2, 0, 0], sizes = [1, 1, 8, 6], strides = [1, 1, 1, 1]} : vector<1x8x8x6xbf16> to vector<1x1x8x6xbf16>
    %55 = vector.shape_cast %54 : vector<1x1x8x6xbf16> to vector<1x8x6xbf16>
    %c0_16 = arith.constant 0 : index
    %c50 = arith.constant 50 : index
    %c0_17 = arith.constant 0 : index
    %56 = vector.load %arg7[%c0_16, %c50, %c0_17] : memref<1x144x6xbf16, #tpu.memory_space<vmem>>, vector<1x8x6xbf16>
    tpu.vector_store %arg7[%c0_16, %c50, %c0_17], %55 {strides = array<i32>} : memref<1x144x6xbf16, #tpu.memory_space<vmem>>, vector<1x8x6xbf16>,
    %57 = vector.extract_strided_slice %45 {offsets = [0, 3, 0, 0], sizes = [1, 1, 8, 6], strides = [1, 1, 1, 1]} : vector<1x8x8x6xbf16> to vector<1x1x8x6xbf16>
    %58 = vector.shape_cast %57 : vector<1x1x8x6xbf16> to vector<1x8x6xbf16>
    %c0_18 = arith.constant 0 : index
    %c62 = arith.constant 62 : index
    %c0_19 = arith.constant 0 : index
    %59 = vector.load %arg7[%c0_18, %c62, %c0_19] : memref<1x144x6xbf16, #tpu.memory_space<vmem>>, vector<1x8x6xbf16>
    tpu.vector_store %arg7[%c0_18, %c62, %c0_19], %58 {strides = array<i32>} : memref<1x144x6xbf16, #tpu.memory_space<vmem>>, vector<1x8x6xbf16>,
    %60 = vector.extract_strided_slice %45 {offsets = [0, 4, 0, 0], sizes = [1, 1, 8, 6], strides = [1, 1, 1, 1]} : vector<1x8x8x6xbf16> to vector<1x1x8x6xbf16>
    %61 = vector.shape_cast %60 : vector<1x1x8x6xbf16> to vector<1x8x6xbf16>
    %c0_20 = arith.constant 0 : index
    %c74 = arith.constant 74 : index
    %c0_21 = arith.constant 0 : index
    %62 = vector.load %arg7[%c0_20, %c74, %c0_21] : memref<1x144x6xbf16, #tpu.memory_space<vmem>>, vector<1x8x6xbf16>
    tpu.vector_store %arg7[%c0_20, %c74, %c0_21], %61 {strides = array<i32>} : memref<1x144x6xbf16, #tpu.memory_space<vmem>>, vector<1x8x6xbf16>,
    %63 = vector.extract_strided_slice %45 {offsets = [0, 5, 0, 0], sizes = [1, 1, 8, 6], strides = [1, 1, 1, 1]} : vector<1x8x8x6xbf16> to vector<1x1x8x6xbf16>
    %64 = vector.shape_cast %63 : vector<1x1x8x6xbf16> to vector<1x8x6xbf16>
    %c0_22 = arith.constant 0 : index
    %c86 = arith.constant 86 : index
    %c0_23 = arith.constant 0 : index
    %65 = vector.load %arg7[%c0_22, %c86, %c0_23] : memref<1x144x6xbf16, #tpu.memory_space<vmem>>, vector<1x8x6xbf16>
    tpu.vector_store %arg7[%c0_22, %c86, %c0_23], %64 {strides = array<i32>} : memref<1x144x6xbf16, #tpu.memory_space<vmem>>, vector<1x8x6xbf16>,
    %66 = vector.extract_strided_slice %45 {offsets = [0, 6, 0, 0], sizes = [1, 1, 8, 6], strides = [1, 1, 1, 1]} : vector<1x8x8x6xbf16> to vector<1x1x8x6xbf16>
    %67 = vector.shape_cast %66 : vector<1x1x8x6xbf16> to vector<1x8x6xbf16>
    %c0_24 = arith.constant 0 : index
    %c98 = arith.constant 98 : index
    %c0_25 = arith.constant 0 : index
    %68 = vector.load %arg7[%c0_24, %c98, %c0_25] : memref<1x144x6xbf16, #tpu.memory_space<vmem>>, vector<1x8x6xbf16>
    tpu.vector_store %arg7[%c0_24, %c98, %c0_25], %67 {strides = array<i32>} : memref<1x144x6xbf16, #tpu.memory_space<vmem>>, vector<1x8x6xbf16>,
    %69 = vector.extract_strided_slice %45 {offsets = [0, 7, 0, 0], sizes = [1, 1, 8, 6], strides = [1, 1, 1, 1]} : vector<1x8x8x6xbf16> to vector<1x1x8x6xbf16>
    %70 = vector.shape_cast %69 : vector<1x1x8x6xbf16> to vector<1x8x6xbf16>
    %c0_26 = arith.constant 0 : index
    %c110 = arith.constant 110 : index
    %c0_27 = arith.constant 0 : index
    %71 = vector.load %arg7[%c0_26, %c110, %c0_27] : memref<1x144x6xbf16, #tpu.memory_space<vmem>>, vector<1x8x6xbf16>
    tpu.vector_store %arg7[%c0_26, %c110, %c0_27], %70 {strides = array<i32>} : memref<1x144x6xbf16, #tpu.memory_space<vmem>>, vector<1x8x6xbf16>,
    %c0_28 = arith.constant 0 : index
    %c0_29 = arith.constant 0 : index
    %c0_30 = arith.constant 0 : index
    %72 = vector.load %arg7[%c0_28, %c0_29, %c0_30] : memref<1x144x6xbf16, #tpu.memory_space<vmem>>, vector<1x92x6xbf16>
    %c0_31 = arith.constant 0 : index
    %c1 = arith.constant 1 : index
    %c0_32 = arith.constant 0 : index
    %73 = vector.load %arg7[%c0_31, %c1, %c0_32] : memref<1x144x6xbf16, #tpu.memory_space<vmem>>, vector<1x92x6xbf16>
    %c0_33 = arith.constant 0 : index
    %c2 = arith.constant 2 : index
    %c0_34 = arith.constant 0 : index
    %74 = vector.load %arg7[%c0_33, %c2, %c0_34] : memref<1x144x6xbf16, #tpu.memory_space<vmem>>, vector<1x92x6xbf16>
    %c0_35 = arith.constant 0 : index
    %c3 = arith.constant 3 : index
    %c0_36 = arith.constant 0 : index
    %75 = vector.load %arg7[%c0_35, %c3, %c0_36] : memref<1x144x6xbf16, #tpu.memory_space<vmem>>, vector<1x92x6xbf16>
    %c0_37 = arith.constant 0 : index
    %c4 = arith.constant 4 : index
    %c0_38 = arith.constant 0 : index
    %76 = vector.load %arg7[%c0_37, %c4, %c0_38] : memref<1x144x6xbf16, #tpu.memory_space<vmem>>, vector<1x92x6xbf16>
    %c0_39 = arith.constant 0 : index
    %c12 = arith.constant 12 : index
    %c0_40 = arith.constant 0 : index
    %77 = vector.load %arg7[%c0_39, %c12, %c0_40] : memref<1x144x6xbf16, #tpu.memory_space<vmem>>, vector<1x92x6xbf16>
    %c0_41 = arith.constant 0 : index
    %c13 = arith.constant 13 : index
    %c0_42 = arith.constant 0 : index
    %78 = vector.load %arg7[%c0_41, %c13, %c0_42] : memref<1x144x6xbf16, #tpu.memory_space<vmem>>, vector<1x92x6xbf16>
    %c0_43 = arith.constant 0 : index
    %c14 = arith.constant 14 : index
    %c0_44 = arith.constant 0 : index
    %79 = vector.load %arg7[%c0_43, %c14, %c0_44] : memref<1x144x6xbf16, #tpu.memory_space<vmem>>, vector<1x92x6xbf16>
    %c0_45 = arith.constant 0 : index
    %c15 = arith.constant 15 : index
    %c0_46 = arith.constant 0 : index
    %80 = vector.load %arg7[%c0_45, %c15, %c0_46] : memref<1x144x6xbf16, #tpu.memory_space<vmem>>, vector<1x92x6xbf16>
    %c0_47 = arith.constant 0 : index
    %c16 = arith.constant 16 : index
    %c0_48 = arith.constant 0 : index
    %81 = vector.load %arg7[%c0_47, %c16, %c0_48] : memref<1x144x6xbf16, #tpu.memory_space<vmem>>, vector<1x92x6xbf16>
    %c0_49 = arith.constant 0 : index
    %c24 = arith.constant 24 : index
    %c0_50 = arith.constant 0 : index
    %82 = vector.load %arg7[%c0_49, %c24, %c0_50] : memref<1x144x6xbf16, #tpu.memory_space<vmem>>, vector<1x92x6xbf16>
    %c0_51 = arith.constant 0 : index
    %c25 = arith.constant 25 : index
    %c0_52 = arith.constant 0 : index
    %83 = vector.load %arg7[%c0_51, %c25, %c0_52] : memref<1x144x6xbf16, #tpu.memory_space<vmem>>, vector<1x92x6xbf16>
    %c0_53 = arith.constant 0 : index
    %c26_54 = arith.constant 26 : index
    %c0_55 = arith.constant 0 : index
    %84 = vector.load %arg7[%c0_53, %c26_54, %c0_55] : memref<1x144x6xbf16, #tpu.memory_space<vmem>>, vector<1x92x6xbf16>
    %c0_56 = arith.constant 0 : index
    %c27 = arith.constant 27 : index
    %c0_57 = arith.constant 0 : index
    %85 = vector.load %arg7[%c0_56, %c27, %c0_57] : memref<1x144x6xbf16, #tpu.memory_space<vmem>>, vector<1x92x6xbf16>
    %c0_58 = arith.constant 0 : index
    %c28 = arith.constant 28 : index
    %c0_59 = arith.constant 0 : index
    %86 = vector.load %arg7[%c0_58, %c28, %c0_59] : memref<1x144x6xbf16, #tpu.memory_space<vmem>>, vector<1x92x6xbf16>
    %c0_60 = arith.constant 0 : index
    %c36 = arith.constant 36 : index
    %c0_61 = arith.constant 0 : index
    %87 = vector.load %arg7[%c0_60, %c36, %c0_61] : memref<1x144x6xbf16, #tpu.memory_space<vmem>>, vector<1x92x6xbf16>
    %c0_62 = arith.constant 0 : index
    %c37 = arith.constant 37 : index
    %c0_63 = arith.constant 0 : index
    %88 = vector.load %arg7[%c0_62, %c37, %c0_63] : memref<1x144x6xbf16, #tpu.memory_space<vmem>>, vector<1x92x6xbf16>
    %c0_64 = arith.constant 0 : index
    %c38_65 = arith.constant 38 : index
    %c0_66 = arith.constant 0 : index
    %89 = vector.load %arg7[%c0_64, %c38_65, %c0_66] : memref<1x144x6xbf16, #tpu.memory_space<vmem>>, vector<1x92x6xbf16>
    %c0_67 = arith.constant 0 : index
    %c39 = arith.constant 39 : index
    %c0_68 = arith.constant 0 : index
    %90 = vector.load %arg7[%c0_67, %c39, %c0_68] : memref<1x144x6xbf16, #tpu.memory_space<vmem>>, vector<1x92x6xbf16>
    %c0_69 = arith.constant 0 : index
    %c40 = arith.constant 40 : index
    %c0_70 = arith.constant 0 : index
    %91 = vector.load %arg7[%c0_69, %c40, %c0_70] : memref<1x144x6xbf16, #tpu.memory_space<vmem>>, vector<1x92x6xbf16>
    %c0_71 = arith.constant 0 : index
    %c48 = arith.constant 48 : index
    %c0_72 = arith.constant 0 : index
    %92 = vector.load %arg7[%c0_71, %c48, %c0_72] : memref<1x144x6xbf16, #tpu.memory_space<vmem>>, vector<1x92x6xbf16>
    %c0_73 = arith.constant 0 : index
    %c49 = arith.constant 49 : index
    %c0_74 = arith.constant 0 : index
    %93 = vector.load %arg7[%c0_73, %c49, %c0_74] : memref<1x144x6xbf16, #tpu.memory_space<vmem>>, vector<1x92x6xbf16>
    %c0_75 = arith.constant 0 : index
    %c50_76 = arith.constant 50 : index
    %c0_77 = arith.constant 0 : index
    %94 = vector.load %arg7[%c0_75, %c50_76, %c0_77] : memref<1x144x6xbf16, #tpu.memory_space<vmem>>, vector<1x92x6xbf16>
    %c0_78 = arith.constant 0 : index
    %c51 = arith.constant 51 : index
    %c0_79 = arith.constant 0 : index
    %95 = vector.load %arg7[%c0_78, %c51, %c0_79] : memref<1x144x6xbf16, #tpu.memory_space<vmem>>, vector<1x92x6xbf16>
    %c0_80 = arith.constant 0 : index
    %c52 = arith.constant 52 : index
    %c0_81 = arith.constant 0 : index
    %96 = vector.load %arg7[%c0_80, %c52, %c0_81] : memref<1x144x6xbf16, #tpu.memory_space<vmem>>, vector<1x92x6xbf16>
    %97 = tpu.concatenate %72, %73, %74, %75, %76, %77, %78, %79, %80, %81, %82, %83, %84, %85, %86, %87 in 2 : vector<1x92x6xbf16>, vector<1x92x6xbf16>, vector<1x92x6xbf16>, vector<1x92x6xbf16>, vector<1x92x6xbf16>, vector<1x92x6xbf16>, vector<1x92x6xbf16>, vector<1x92x6xbf16>, vector<1x92x6xbf16>, vector<1x92x6xbf16>, vector<1x92x6xbf16>, vector<1x92x6xbf16>, vector<1x92x6xbf16>, vector<1x92x6xbf16>, vector<1x92x6xbf16>, vector<1x92x6xbf16> -> vector<1x92x96xbf16>
    %98 = tpu.concatenate %88, %89, %90, %91, %92, %93, %94, %95, %96 in 2 : vector<1x92x6xbf16>, vector<1x92x6xbf16>, vector<1x92x6xbf16>, vector<1x92x6xbf16>, vector<1x92x6xbf16>, vector<1x92x6xbf16>, vector<1x92x6xbf16>, vector<1x92x6xbf16>, vector<1x92x6xbf16> -> vector<1x92x54xbf16>
    %99 = tpu.concatenate %97, %98 in 2 : vector<1x92x96xbf16>, vector<1x92x54xbf16> -> vector<1x92x150xbf16>
    %c0_82 = arith.constant 0 : index
    %c0_83 = arith.constant 0 : index
    %100 = vector.load %arg4[%c0_82, %c0_83] : memref<150x8xbf16, #tpu.memory_space<vmem>>, vector<150x8xbf16>
    %101 = vector.shape_cast %100 : vector<150x8xbf16> to vector<1x150x8xbf16>
    "tpu.trace_start"() <{level = 10 : i32, message = "bmk,bkn->bmn"}> : () -> ()
    %cst_84 = arith.constant dense<0.000000e+00> : vector<1x92x8xf32>
    %102 = tpu.matmul %99, %101, %cst_84 {dimension_numbers = #tpu.dot_dimension_numbers<[2], [1], [1], [2], [0, 0, 0, 1, 1, 2], [0], [0]>} : vector<1x92x150xbf16>, vector<1x150x8xbf16>, vector<1x92x8xf32> -> vector<1x92x8xf32>
    "tpu.trace_stop"() : () -> ()
    %c0_85 = arith.constant 0 : index
    %c0_86 = arith.constant 0 : index
    %c0_87 = arith.constant 0 : index
    %103 = vector.load %arg5[%c0_85, %c0_86, %c0_87] : memref<1x1x8xf32, #tpu.memory_space<vmem>>, vector<1x1x8xf32>
    %104 = vector.broadcast %103 : vector<1x1x8xf32> to vector<1x92x8xf32>
    %105 = arith.addf %102, %104 : vector<1x92x8xf32>
    %cst_88 = arith.constant 0.000000e+00 : f32
    %106 = vector.broadcast %cst_88 : f32 to vector<1x92x8xf32>
    %107 = arith.maximumf %105, %106 : vector<1x92x8xf32>
    %108 = vector.extract_strided_slice %107 {offsets = [0, 0, 0], sizes = [1, 77, 8], strides = [1, 1, 1]} : vector<1x92x8xf32> to vector<1x77x8xf32>
    %109 = vector.extract_strided_slice %107 {offsets = [0, 1, 0], sizes = [1, 77, 8], strides = [1, 1, 1]} : vector<1x92x8xf32> to vector<1x77x8xf32>
    %110 = arith.maximumf %108, %109 : vector<1x77x8xf32>
    %111 = vector.extract_strided_slice %107 {offsets = [0, 2, 0], sizes = [1, 77, 8], strides = [1, 1, 1]} : vector<1x92x8xf32> to vector<1x77x8xf32>
    %112 = arith.maximumf %110, %111 : vector<1x77x8xf32>
    %113 = vector.extract_strided_slice %112 {offsets = [0, 0, 0], sizes = [1, 53, 8], strides = [1, 1, 1]} : vector<1x77x8xf32> to vector<1x53x8xf32>
    %114 = vector.extract_strided_slice %112 {offsets = [0, 12, 0], sizes = [1, 53, 8], strides = [1, 1, 1]} : vector<1x77x8xf32> to vector<1x53x8xf32>
    %115 = arith.maximumf %113, %114 : vector<1x53x8xf32>
    %116 = vector.extract_strided_slice %112 {offsets = [0, 24, 0], sizes = [1, 53, 8], strides = [1, 1, 1]} : vector<1x77x8xf32> to vector<1x53x8xf32>
    %117 = arith.maximumf %115, %116 : vector<1x53x8xf32>
    %118 = vector.extract_strided_slice %117 {offsets = [0, 0, 0], sizes = [1, 5, 8], strides = [1, 1, 1]} : vector<1x53x8xf32> to vector<1x5x8xf32>
    %119 = vector.extract_strided_slice %117 {offsets = [0, 24, 0], sizes = [1, 5, 8], strides = [1, 1, 1]} : vector<1x53x8xf32> to vector<1x5x8xf32>
    %120 = arith.addf %118, %119 : vector<1x5x8xf32>
    %121 = vector.extract_strided_slice %120 {offsets = [0, 0, 0], sizes = [1, 1, 8], strides = [1, 1, 1]} : vector<1x5x8xf32> to vector<1x1x8xf32>
    %122 = vector.extract_strided_slice %120 {offsets = [0, 2, 0], sizes = [1, 1, 8], strides = [1, 1, 1]} : vector<1x5x8xf32> to vector<1x1x8xf32>
    %123 = arith.addf %121, %122 : vector<1x1x8xf32>
    %cst_89 = arith.constant 2.500000e-01 : f32
    %124 = vector.broadcast %cst_89 : f32 to vector<1x1x8xf32>
    %125 = arith.mulf %123, %124 : vector<1x1x8xf32>
    %126 = vector.extract_strided_slice %120 {offsets = [0, 2, 0], sizes = [1, 1, 8], strides = [1, 1, 1]} : vector<1x5x8xf32> to vector<1x1x8xf32>
    %127 = vector.extract_strided_slice %120 {offsets = [0, 4, 0], sizes = [1, 1, 8], strides = [1, 1, 1]} : vector<1x5x8xf32> to vector<1x1x8xf32>
    %128 = arith.addf %126, %127 : vector<1x1x8xf32>
    %cst_90 = arith.constant 2.500000e-01 : f32
    %129 = vector.broadcast %cst_90 : f32 to vector<1x1x8xf32>
    %130 = arith.mulf %128, %129 : vector<1x1x8xf32>
    %131 = tpu.concatenate %125, %130 in 1 : vector<1x1x8xf32>, vector<1x1x8xf32> -> vector<1x2x8xf32>
    %132 = vector.extract_strided_slice %117 {offsets = [0, 24, 0], sizes = [1, 5, 8], strides = [1, 1, 1]} : vector<1x53x8xf32> to vector<1x5x8xf32>
    %133 = vector.extract_strided_slice %117 {offsets = [0, 48, 0], sizes = [1, 5, 8], strides = [1, 1, 1]} : vector<1x53x8xf32> to vector<1x5x8xf32>
    %134 = arith.addf %132, %133 : vector<1x5x8xf32>
    %135 = vector.extract_strided_slice %134 {offsets = [0, 0, 0], sizes = [1, 1, 8], strides = [1, 1, 1]} : vector<1x5x8xf32> to vector<1x1x8xf32>
    %136 = vector.extract_strided_slice %134 {offsets = [0, 2, 0], sizes = [1, 1, 8], strides = [1, 1, 1]} : vector<1x5x8xf32> to vector<1x1x8xf32>
    %137 = arith.addf %135, %136 : vector<1x1x8xf32>
    %cst_91 = arith.constant 2.500000e-01 : f32
    %138 = vector.broadcast %cst_91 : f32 to vector<1x1x8xf32>
    %139 = arith.mulf %137, %138 : vector<1x1x8xf32>
    %140 = vector.extract_strided_slice %134 {offsets = [0, 2, 0], sizes = [1, 1, 8], strides = [1, 1, 1]} : vector<1x5x8xf32> to vector<1x1x8xf32>
    %141 = vector.extract_strided_slice %134 {offsets = [0, 4, 0], sizes = [1, 1, 8], strides = [1, 1, 1]} : vector<1x5x8xf32> to vector<1x1x8xf32>
    %142 = arith.addf %140, %141 : vector<1x1x8xf32>
    %cst_92 = arith.constant 2.500000e-01 : f32
    %143 = vector.broadcast %cst_92 : f32 to vector<1x1x8xf32>
    %144 = arith.mulf %142, %143 : vector<1x1x8xf32>
    %145 = tpu.concatenate %139, %144 in 1 : vector<1x1x8xf32>, vector<1x1x8xf32> -> vector<1x2x8xf32>
    %146 = vector.shape_cast %131 : vector<1x2x8xf32> to vector<1x1x2x8xf32>
    %147 = vector.shape_cast %145 : vector<1x2x8xf32> to vector<1x1x2x8xf32>
    %148 = tpu.concatenate %146, %147 in 1 : vector<1x1x2x8xf32>, vector<1x1x2x8xf32> -> vector<1x2x2x8xf32>
    %c0_93 = arith.constant 0 : index
    %c0_94 = arith.constant 0 : index
    %c0_95 = arith.constant 0 : index
    %c0_96 = arith.constant 0 : index
    %149 = vector.load %arg6[%c0_93, %c0_94, %c0_95, %c0_96] : memref<1x2x2x8xf32, #tpu.memory_space<vmem>>, vector<1x2x2x8xf32>
    tpu.vector_store %arg6[%c0_93, %c0_94, %c0_95, %c0_96], %148 {strides = array<i32>} : memref<1x2x2x8xf32, #tpu.memory_space<vmem>>, vector<1x2x2x8xf32>,
    return
  }
  func.func @transform_0(%arg0: i32) -> (i32, i32, i32) {
    %c0_i32 = arith.constant 0 : i32
    %c0_i32_0 = arith.constant 0 : i32
    %c0_i32_1 = arith.constant 0 : i32
    return %arg0, %c0_i32, %c0_i32_0 : i32, i32, i32
  }
  func.func @transform_1(%arg0: i32) -> (i32, i32) {
    %c0_i32 = arith.constant 0 : i32
    %c0_i32_0 = arith.constant 0 : i32
    %c0_i32_1 = arith.constant 0 : i32
    return %c0_i32, %c0_i32_0 : i32, i32
  }
  func.func @transform_2(%arg0: i32) -> (i32, i32, i32) {
    %c0_i32 = arith.constant 0 : i32
    %c0_i32_0 = arith.constant 0 : i32
    %c0_i32_1 = arith.constant 0 : i32
    %c0_i32_2 = arith.constant 0 : i32
    return %c0_i32, %c0_i32_0, %c0_i32_1 : i32, i32, i32
  }
  func.func @transform_3(%arg0: i32) -> (i32, i32) {
    %c0_i32 = arith.constant 0 : i32
    %c0_i32_0 = arith.constant 0 : i32
    %c0_i32_1 = arith.constant 0 : i32
    return %c0_i32, %c0_i32_0 : i32, i32
  }
  func.func @transform_4(%arg0: i32) -> (i32, i32, i32) {
    %c0_i32 = arith.constant 0 : i32
    %c0_i32_0 = arith.constant 0 : i32
    %c0_i32_1 = arith.constant 0 : i32
    %c0_i32_2 = arith.constant 0 : i32
    return %c0_i32, %c0_i32_0, %c0_i32_1 : i32, i32, i32
  }
  func.func @transform_5(%arg0: i32) -> (i32, i32, i32, i32) {
    %c0_i32 = arith.constant 0 : i32
    %c0_i32_0 = arith.constant 0 : i32
    %c0_i32_1 = arith.constant 0 : i32
    %c0_i32_2 = arith.constant 0 : i32
    return %arg0, %c0_i32, %c0_i32_0, %c0_i32_1 : i32, i32, i32, i32
  }
}

</mosaic_0001>

<bundles_post_ra>
// kernel: tpu_custom_call.1
= control target key start
LH: loop header
LB: loop body
LE: loop exit
PB: predicated region body
PF: predicated region fallthrough
CT: control target
= control target key end

     0   :  { %10 = vsyncpa [#allocation4], 0  ;;  %s5335_s0 = inlined_call_operand.vmem [shape: bf16[2,289,64], index: 0, kind: input, shape index: {}]   ;;  %s5336_s1 = inlined_call_operand.vmem [shape: bf16[64,6], index: 1, kind: input, shape index: {}]   ;;  %s5337_s2 = inlined_call_operand.vmem [shape: f32[1,1,6], index: 2, kind: input, shape index: {}]   ;;  %s5338_s3 = inlined_call_operand.vmem [shape: bf16[150,8], index: 3, kind: input, shape index: {}]   ;;  %s5339_s4 = inlined_call_operand.vmem [shape: f32[1,1,8], index: 4, kind: input, shape index: {}]   ;;  %s5340_s5 = inlined_call_operand.hbm [shape: f32[2,2,2,8], index: 5, kind: output, shape index: {}]  }
   0x1   :  { %12 = vsyncpa [#allocation4 + $0x1], 0  ;;  %s3333_s18 = smov 0   ;;  %s3335_s19 = smov 0  }
   0x2   :  { %s3337_s20 = smov 0   ;;  %s3339_s21 = smov 0  }
   0x3 LB: > { %s3354_s22 = sadd.s32 4294967295, %s3279_s21   ;;  %s2929_s23 = sadd.s32 4294967294, %s3279_s21   ;;  %s3279_s21 = sphi %s3339_s21, %s5554_s21   ;;  %s3275_s20 = sphi %s3337_s20, %s5553_s20   ;;  %s3271_s19 = sphi %s3335_s19, %s5552_s19   ;;  %s3267_s18 = sphi %s3333_s18, %s5551_s18  }
   0x4   : > { %s3358_s24 = sadd.s32 1, %s3279_s21   ;;  %s135_s25 = sadd.s32 1, %s3275_s20 }
   0x5   : > { %s132_s26 = ssub.s32 %s3279_s21, %s3358_s24  ;;  %p145_p0 = scmp.ne.s32.totalorder %s3275_s20, %s3271_s19 }
   0x6   : > { %p133_p1 = scmp.eq.s32.totalorder %s132_s26, 0  ;;  %p146_p2 = scmp.eq.s32.totalorder %s3354_s22, 1 }
   0x7   : > { %p151_p3 = scmp.ne.s32.totalorder %s3271_s19, %s3267_s18  ;;  %p152_p4 = scmp.eq.s32.totalorder %s2929_s23, 1 }
   0x8   : > { %s3369_s27 = scalar_select %p133_p1, %s3275_s20, %s135_s25  }
   0x9   : > { %p3371_p5 = por %p146_p2, %p145_p0  ;;  %p3375_p6 = por %p152_p4, %p151_p3 }
   0xa   : > { %p2932_p7 = scmp.ge.s32.totalorder %s3279_s21, 1  ;;  %p190_p8 = scmp.lt.s32.totalorder %s3279_s21, 3 }
   0xc   : > { %p191_p9 = pnand %p2932_p7, %p190_p8 }
   0xe   : > { %194 = sbr.rel (%p191_p9) target bundleno = 1035 (0x40b), region = 40 }
  0x15   : > { %v3177_v0 = vld [vmem:[%s5336_s1] sm:$0xff]   ;;  %v3281_v1 = vmov 0.0   ;;  %v3178_v2 = vld [vmem:[%s5336_s1 + $0x8] sm:$0xff]   ;;  %p218_p10 = scmp.lt.s32.totalorder %s3354_s22, 1  ;;  %vm3282_vm0 = vmmov 0   ;;  %v3179_v3 = vld [vmem:[%s5336_s1 + $0x10] sm:$0xff]  }
  0x16   : > { %3024 = vmatprep.subr.bf16.mxu0 %v3281_v1  ;;  %3108 = vmatprep.subr.bf16.mxu1 %v3281_v1  ;;  %v3180_v4 = vld [vmem:[%s5336_s1 + $0x18] sm:$0xff]   ;;  %vm393_vm1 = vcmask 523264   ;;  %vm5356_vm2 = vcmask 48128   ;;  %v5341_v24 = vmov 0   ;;  %s3284_s23 = smov 6   ;;  %s3285_s25 = smov 12  }
  0x17   : > { %3025 = vmatpush3.bf16.msra.mxu0 %v3177_v0  ;;  %3112 = vmatpush3.bf16.msra.mxu1 %v3177_v0  ;;  %s219_s9 = scalar_select %p218_p10, %s3354_s22, 1  ;;  %1308 = vst.msk [vmem:[#allocation2 + $0x8] sm:$0xff] %vm5356_vm2, %v5341_v24  ;;  %1309 = vst.msk [vmem:[#allocation2 + $0x10] sm:$0xff] %vm5356_vm2, %v5341_v24  ;;  %v3561_v53 = vld [vmem:[%s5337_s2] ss:$0 sm:$0xff]  ;;  %vm5391_vm3 = vcmask 1045504  }
  0x18   : > { %3026 = vmatprep.subr.bf16.mxu0 %v3281_v1  ;;  %3109 = vmatprep.subr.bf16.mxu1 %v3281_v1  ;;  %1307 = vst.msk [vmem:[#allocation2] sm:$0xff] %vm5356_vm2, %v5341_v24  ;;  %1310 = vst.msk [vmem:[#allocation2 + $0x18] sm:$0xff] %vm5356_vm2, %v5341_v24  ;;  %s5374_s26 = smov 30   ;;  %s3287_s30 = smov 24   ;;  %vm5380_vm4 = vcmask 1046528   ;;  %vm5385_vm5 = vcmask 1043456  }
  0x19   : > { %3032 = vmatprep.mubr.msk.bf16.mxu0 %vm3282_vm0, %v3281_v1  ;;  %3084 = vmatprep.mubr.msk.bf16.mxu1 %vm3282_vm0, %v3281_v1  ;;  %s3116_s12 = smul.u32 148, %s219_s9  ;;  %1311 = vst.msk [vmem:[#allocation2 + $0x20] sm:$0xff] %vm5356_vm2, %v5341_v24  ;;  %1312 = vst.msk [vmem:[#allocation2 + $0x28] sm:$0xff] %vm5356_vm2, %v5341_v24  ;;  %s5375_s6 = smov 18   ;;  %vm5384_vm6 = vcmask 1040384   ;;  %vm5386_vm7 = vcmask 1041408  }
  0x1a   : > { %1313 = vst.msk [vmem:[#allocation2 + $0x30] sm:$0xff] %vm5356_vm2, %v5341_v24  ;;  %1314 = vst.msk [vmem:[#allocation2 + $0x38] sm:$0xff] %vm5356_vm2, %v5341_v24  ;;  %s3289_s7 = smov 36   ;;  %s3290_s8 = smov 42   ;;  %vm5383_vm8 = vcmask 1042432   ;;  %vm1273_vm9 = vcmask 1044480  }
  0x1b   : > { %3027 = vmatpush3.bf16.msra.mxu0 %v3178_v2  ;;  %3113 = vmatpush3.bf16.msra.mxu1 %v3178_v2  ;;  %s3405_s15 = scalar_lea.vmem %s5335_s0, %s3116_s12  ;;  %1315 = vst.msk [vmem:[#allocation2 + $0x40] sm:$0xff] %vm5356_vm2, %v5341_v24  ;;  %s3291_s9 = smov 48   ;;  %vm1319_vm10 = vcmask 48133   ;;  %vm1321_vm11 = vcmask 40960   ;;  %vm1336_vm12 = vcmask 48135   ;;  %vm1338_vm13 = vcmask 43008  }
  0x1c   : > { %3028 = vmatprep.subr.bf16.mxu0 %v3281_v1  ;;  %3110 = vmatprep.subr.bf16.mxu1 %v3281_v1  ;;  %v3181_v5 = vld [vmem:[%s3405_s15] sm:$0xff]   ;;  %v3182_v6 = vld [vmem:[%s3405_s15 + $0x68] sm:$0xff]   ;;  %v3184_v8 = vld [vmem:[%s3405_s15 + $0x70] sm:$0xff]   ;;  %s3292_s12 = smov 54   ;;  %vm5357_vm14 = vcmask 47107   ;;  %s3294_s16 = smov 72  }
  0x1d   : > { %v3183_v7 = vld [vmem:[%s3405_s15 + $0x8] sm:$0xff]   ;;  %v3185_v9 = vld [vmem:[%s3405_s15 + $0x10] sm:$0xff]   ;;  %v3186_v10 = vld [vmem:[%s3405_s15 + $0x78] sm:$0xff]   ;;  %vm1391_vm15 = vsmask.f32 7424  ;;  %s3295_s17 = smov 84  }
  0x1e   : > { %v3187_v11 = vld [vmem:[%s3405_s15 + $0x18] sm:$0xff]   ;;  %v3188_v12 = vld [vmem:[%s3405_s15 + $0x80] sm:$0xff]   ;;  %v3190_v14 = vld [vmem:[%s3405_s15 + $0x88] sm:$0xff]   ;;  %vm5387_vm2 = vsmask.f32 256  ;;  %s3296_s10 = smov 66  }
  0x1f   : > { %3029 = vmatpush3.bf16.msra.mxu0 %v3179_v3  ;;  %3114 = vmatpush3.bf16.msra.mxu1 %v3179_v3  ;;  %v3189_v13 = vld [vmem:[%s3405_s15 + $0x20] sm:$0xff]   ;;  %v3191_v15 = vld [vmem:[%s3405_s15 + $0x28] sm:$0xff]   ;;  %v3192_v16 = vld [vmem:[%s3405_s15 + $0x90] ss:$0 sps:$4 sm:$0x11]   ;;  %s5376_s11 = smov 78  }
  0x20   : > { %3030 = vmatprep.subr.bf16.mxu0 %v3281_v1  ;;  %3111 = vmatprep.subr.bf16.mxu1 %v3281_v1  ;;  %v3193_v17 = vld [vmem:[%s3405_s15 + $0x30] sm:$0xff]   ;;  %v3194_v18 = vld [vmem:[%s3405_s15 + $0x38] sm:$0xff]   ;;  %v3195_v19 = vld [vmem:[%s3405_s15 + $0x40] sm:$0xff]   ;;  %s3298_s13 = smov 90   ;;  %s3300_s14 = smov [#allocation3]  }
  0x21   : > { %v3196_v20 = vld [vmem:[%s3405_s15 + $0x48] sm:$0xff]   ;;  %v3197_v21 = vld [vmem:[%s3405_s15 + $0x50] sm:$0xff]   ;;  %v3198_v22 = vld [vmem:[%s3405_s15 + $0x58] sm:$0xff]  }
  0x22   : > { %v3199_v23 = vld [vmem:[%s3405_s15 + $0x60] sm:$0xff]   ;;  %s3293_s15 = smov 60  }
  0x23   : > { %3031 = vmatpush3.bf16.msra.mxu0 %v3180_v4  ;;  %3115 = vmatpush3.bf16.msra.mxu1 %v3180_v4  ;;  %v3503_v25 = vld [vmem:[#allocation2 + $0x40] sm:$0x1] }
  0x24   : > { %2629 = vmatprep.subr.bf16.mxu1 %v5341_v24  ;;  %v2136_v26 = vshrl.u32 %v3503_v25, 16  ;;  %v3507_v27 = vld [vmem:[#allocation2 + $0x40] sm:$0x3] }
  0x25   : > { %v5345_v28 = vrot.slane %v3507_v27, 1  ;;  %v1386_v29 = vld [vmem:[#allocation2 + $0x40] sm:$0x3f]  ;;  %v2192_v34 = vshrl.u32 %v3507_v27, 16  ;;  %v2195_v44 = vshll.u32 %v3507_v27, 16 }
  0x26   : > { %3033 = vmatmul.mubr.msk.bf16.vlgmr.msra.gmra.mrb[0].mxu0 %vm393_vm1, %v3181_v5  ;;  %3085 = vmatmul.mubr.msk.bf16.vlgmr.msra.gmra.mrb[0].mxu1 %vm393_vm1, %v3182_v6  ;;  %v3513_v30 = vld [vmem:[#allocation2 + $0x40] sm:$0x7f]  ;;  %v2215_v31 = vshrl.u32 %v1386_v29, 16  ;;  %v2218_v43 = vshll.u32 %v1386_v29, 16 }
  0x27   : > { %3036 = vmatprep.mubr.msk.bf16.mxu0 %vm3282_vm0, %v3281_v1  ;;  %3088 = vmatprep.mubr.msk.bf16.mxu1 %vm3282_vm0, %v3281_v1  ;;  %v5346_v32 = vrot.slane %v3513_v30, 6  ;;  %v2270_v35 = vshrl.u32 %v3513_v30, 16  ;;  %v3525_v36 = vrot.slane %v2192_v34, 1  ;;  %v3531_v38 = vld [vmem:[#allocation2 + $0x40] sm:$0xff]  ;;  %v2273_v42 = vshll.u32 %v3513_v30, 16 }
  0x28   : > { %2148 = vrot.lane.b32.xlu1 %v2136_v26, %s3284_s23  ;;  %v3516_v33 = vrot.slane %v2215_v31, 5  ;;  %v2327_v39 = vshrl.u32 %v3531_v38, 16  ;;  %v5344_v40 = vrot.slane %v3531_v38, 7  ;;  %v2330_v45 = vshll.u32 %v3531_v38, 16  ;;  %v1358_v3 = vld [vmem:[#allocation2] sm:$0xff] }
  0x29   : > { %2250 = vrot.lane.b32.xlu0 %v5346_v32, %s5374_s26  ;;  %5395 = vst [vmem:[#allocation6_spill] sm:$0xff] %v3525_v36  ;;  %v3527_v37 = vrot.slane %v2270_v35, 6  ;;  %v3544_v46 = vrot.slane %v2273_v42, 7  ;;  %v3546_v47 = vrot.slane %v2218_v43, 6  ;;  %v3548_v48 = vrot.slane %v2195_v44, 2 }
  0x2a   : > { %v2329_v41 = vrot.slane %v2327_v39, 7  ;;  %v3571_v5 = vld [vmem:[#allocation2] sm:$0xc0]  ;;  %v1393_v39 = vshrl.u32 %v1358_v3, 16 }
  0x2b   : > { %5396 = vst [vmem:[#allocation7_spill] sm:$0xff] %v3527_v37  ;;  %5397 = vst [vmem:[#allocation8_spill] sm:$0xff] %v3544_v46  ;;  %v3591_v31 = vld [vmem:[#allocation2] sm:$0xfc] }
  0x2c   : > { %2172 = vrot.lane.b32.xlu1 %v5345_v28, %s3285_s25  ;;  %5398 = vst [vmem:[#allocation9_spill] sm:$0xff] %v3548_v48  ;;  %v3550_v49 = vor.u32 %v2330_v45, %v2329_v41 }
  0x2d   : > { %2208 = vrot.lane.b32.xlu0 %v3525_v36, %s5375_s6 }
  0x2e   : > { %3037 = vmatmul.mubr.msk.bf16.gmra.mrb[4].mxu0 %vm393_vm1, %v3183_v7  ;;  %3089 = vmatmul.mubr.msk.bf16.gmra.mrb[4].mxu1 %vm393_vm1, %v3184_v8  ;;  %v1395_v8 = vshll.u32 %v1358_v3, 16 }
  0x2f   : > { %3040 = vmatprep.mubr.msk.bf16.mxu0 %vm3282_vm0, %v3281_v1  ;;  %3092 = vmatprep.mubr.msk.bf16.mxu1 %vm3282_vm0, %v3281_v1 }
  0x30   : > { %2235 = vrot.lane.b32.xlu1 %v3516_v33, %s3287_s30 }
  0x31   : > { %2310 = vrot.lane.b32.xlu0 %v5344_v40, %s3290_s8 }
  0x34   : > { %2288 = vrot.lane.b32.xlu1 %v3527_v37, %s3289_s7 }
  0x36   : > { %3041 = vmatmul.mubr.msk.bf16.gmra.mrb[8].mxu0 %vm393_vm1, %v3185_v9  ;;  %3093 = vmatmul.mubr.msk.bf16.gmra.mrb[8].mxu1 %vm393_vm1, %v3186_v10 }
  0x37   : > { %3044 = vmatprep.mubr.msk.bf16.mxu0 %vm3282_vm0, %v3281_v1  ;;  %3096 = vmatprep.mubr.msk.bf16.mxu1 %vm3282_vm0, %v3281_v1 }
  0x38   : > { %2344 = vrot.lane.b32.xlu1 %v2329_v41, %s3291_s9  ;;  %v1397_v41 = vrot.slane %v1395_v8, 1  ;;  %v1586_v8 = vshll.u32 %v3571_v5, 16 }
  0x3e   : > { %3045 = vmatmul.mubr.msk.bf16.gmra.mrb[12].mxu0 %vm393_vm1, %v3187_v11  ;;  %3097 = vmatmul.mubr.msk.bf16.gmra.mrb[12].mxu1 %vm393_vm1, %v3188_v12 }
  0x3f   : > { %3048 = vmatprep.mubr.msk.bf16.mxu0 %vm3282_vm0, %v3281_v1  ;;  %3100 = vmatprep.mubr.msk.bf16.mxu1 %vm3282_vm0, %v3281_v1 }
  0x46   : > { %3049 = vmatmul.mubr.msk.bf16.gmra.mrb[16].mxu0 %vm393_vm1, %v3189_v13  ;;  %3101 = vmatmul.mubr.msk.bf16.gmra.mrb[16].mxu1 %vm393_vm1, %v3190_v14  ;;  %v3582_v14 = vld [vmem:[#allocation2] sm:$0xfe] }
  0x47   : > { %3052 = vmatprep.mubr.msk.bf16.mxu0 %vm3282_vm0, %v3281_v1  ;;  %3104 = vmatprep.mubr.msk.bf16.mxu1 %vm3282_vm0, %v3281_v1 }
  0x4e   : > { %3053 = vmatmul.mubr.msk.bf16.gmra.mrb[20].mxu0 %vm393_vm1, %v3191_v15  ;;  %3105 = vmatmul.mubr.msk.bf16.gmra.mrb[20].mxu1 %vm393_vm1, %v3192_v16 }
  0x4f   : > { %3056 = vmatprep.mubr.msk.bf16.mxu0 %vm3282_vm0, %v3281_v1 }
  0x56   : > { %3057 = vmatmul.mubr.msk.bf16.gmra.mrb[24].mxu0 %vm393_vm1, %v3193_v17 }
  0x57   : > { %3060 = vmatprep.mubr.msk.bf16.mxu0 %vm3282_vm0, %v3281_v1 }
  0x5e   : > { %3061 = vmatmul.mubr.msk.bf16.gmra.mrb[28].mxu0 %vm393_vm1, %v3194_v18 }
  0x5f   : > { %3064 = vmatprep.mubr.msk.bf16.mxu0 %vm3282_vm0, %v3281_v1 }
  0x66   : > { %3065 = vmatmul.mubr.msk.bf16.gmra.mrb[32].mxu0 %vm393_vm1, %v3195_v19  ;;  %v3586_v19 = vld [vmem:[#allocation2] sm:$0x80] }
  0x67   : > { %3068 = vmatprep.mubr.msk.bf16.mxu0 %vm3282_vm0, %v3281_v1 }
  0x6e   : > { %3069 = vmatmul.mubr.msk.bf16.gmra.mrb[36].mxu0 %vm393_vm1, %v3196_v20 }
  0x6f   : > { %3072 = vmatprep.mubr.msk.bf16.mxu0 %vm3282_vm0, %v3281_v1 }
  0x76   : > { %3073 = vmatmul.mubr.msk.bf16.gmra.mrb[40].mxu0 %vm393_vm1, %v3197_v21 }
  0x77   : > { %3076 = vmatprep.mubr.msk.bf16.mxu0 %vm3282_vm0, %v3281_v1 }
  0x7e   : > { %3077 = vmatmul.mubr.msk.bf16.gmra.mrb[44].mxu0 %vm393_vm1, %v3198_v22 }
  0x7f   : > { %3080 = vmatprep.mubr.msk.bf16.mxu0 %vm3282_vm0, %v3281_v1  ;;  %vm1581_vm0 = vsmask.f32 1280 }
  0x86   : > { %3081 = vmatmul.mubr.msk.bf16.gmra.mrb[48].mxu0 %vm393_vm1, %v3199_v23  ;;  %vm1481_vm1 = vsmask.f32 6400 }
  0xf9   : > { %v485_v54 = vpop.f32.mrb[0].mxu0  ;;  %v589_v55 = vpop.f32.mrb[0].mxu1 }
  0xfa   : > { %v590_v56 = vadd.f32 %v3561_v53, %v589_v55  ;;  %v3034_v57 = vpop.f32.mrb[1].mxu0  ;;  %v3086_v58 = vpop.f32.mrb[1].mxu1  ;;  %v486_v34 = vadd.f32 %v3561_v53, %v485_v54 }
  0xfb   : > { %v488_v59 = vpop.f32.mrb[2].mxu0  ;;  %v592_v60 = vpop.f32.mrb[2].mxu1  ;;  %v1583_v58 = vshrl.u32 %v3571_v5, 16 }
  0xfc   : > { %v3564_v61 = vmax.f32 %v590_v56, 0.0  ;;  %v593_v62 = vadd.f32 %v3561_v53, %v592_v60  ;;  %v3035_v63 = vpop.f32.mrb[3].mxu0  ;;  %v3087_v0 = vpop.f32.mrb[3].mxu1 }
  0xfd   : > { %v635_v0 = vmax.f32 %v486_v34, 0.0 }
  0xfe   : > { %v5343_v1 = vrot.slane %v3564_v61, 2  ;;  %v3568_v2 = vmax.f32 %v593_v62, 0.0 }
 0x100   : > { %v849_v4 = vrot.slane %v3568_v2, 2  ;;  %v746_v42 = vrot.slane %v3568_v2, 1 }
 0x101   : > { %v493_v6 = vpop.f32.mrb[4].mxu0  ;;  %v597_v7 = vpop.f32.mrb[4].mxu1 }
 0x102   : > { %v3576_v9 = vsel %vm5391_vm3, %v5343_v1, %v849_v4  ;;  %v3579_v10 = vadd.f32 %v3561_v53, %v493_v6  ;;  %v598_v11 = vadd.f32 %v3561_v53, %v597_v7  ;;  %v3038_v12 = vpop.f32.mrb[5].mxu0  ;;  %v3090_v13 = vpop.f32.mrb[5].mxu1 }
 0x103   : > { %v496_v15 = vpop.f32.mrb[6].mxu0  ;;  %v600_v16 = vpop.f32.mrb[6].mxu1 }
 0x104   : > { %v637_v20 = vmax.f32 %v3579_v10, 0.0  ;;  %v663_v21 = vmax.f32 %v598_v11, 0.0  ;;  %v497_v22 = vadd.f32 %v3561_v53, %v496_v15  ;;  %v601_v23 = vadd.f32 %v3561_v53, %v600_v16  ;;  %v3039_v26 = vpop.f32.mrb[7].mxu0  ;;  %v3091_v29 = vpop.f32.mrb[7].mxu1 }
 0x105   : > { %v1483_v11 = vshrl.u32 %v3582_v14, 16 }
 0x106   : > { %v747_v43 = vrot.slane %v663_v21, 1  ;;  %v851_v44 = vrot.slane %v663_v21, 2  ;;  %v638_v45 = vmax.f32 %v497_v22, 0.0  ;;  %v3596_v55 = vmax.f32 %v601_v23, 0.0 }
 0x107   : > { %v704_v54 = vrot.slane %v637_v20, 1  ;;  %v3615_v21 = vor.u32 %v1397_v41, %v1393_v39  ;;  %v489_v22 = vadd.f32 %v3561_v53, %v488_v59  ;;  %v3627_v59 = vrot.slane %v1583_v58, 6 }
 0x108   : > { %v3604_v60 = vsel %vm5391_vm3, %v849_v4, %v851_v44  ;;  %v705_v62 = vrot.slane %v638_v45, 1  ;;  %v3607_v63 = vsel %vm5380_vm4, %v746_v42, %v747_v43  ;;  %v749_v3 = vrot.slane %v3596_v55, 1 }
 0x109   : > { %v501_v6 = vpop.f32.mrb[8].mxu0  ;;  %v605_v7 = vpop.f32.mrb[8].mxu1  ;;  %v1486_v42 = vshll.u32 %v3582_v14, 16 }
 0x10a   : > { %v706_v12 = vsel %vm5380_vm4, %v704_v54, %v705_v62  ;;  %v502_v13 = vadd.f32 %v3561_v53, %v501_v6  ;;  %v606_v4 = vadd.f32 %v3561_v53, %v605_v7  ;;  %v3042_v15 = vpop.f32.mrb[9].mxu0  ;;  %v3094_v16 = vpop.f32.mrb[9].mxu1  ;;  %v750_v26 = vsel %vm5380_vm4, %v747_v43, %v749_v3 }
 0x10b   : > { %v782_v23 = vmax.f32 %v635_v0, %v706_v12  ;;  %v504_v29 = vpop.f32.mrb[10].mxu0  ;;  %v608_v34 = vpop.f32.mrb[10].mxu1  ;;  %v801_v44 = vmax.f32 %v3564_v61, %v750_v26  ;;  %v3629_v0 = vrot.slane %v1586_v8, 7  ;;  %v3631_v43 = vrot.slane %v1483_v11, 1 }
 0x10c   : > { %v3621_v45 = vmax.f32 %v502_v13, 0.0  ;;  %v3623_v54 = vmax.f32 %v606_v4, 0.0  ;;  %v505_v6 = vadd.f32 %v3561_v53, %v504_v29  ;;  %v3043_v7 = vpop.f32.mrb[11].mxu0  ;;  %v3095_v39 = vpop.f32.mrb[11].mxu1  ;;  %v609_v41 = vadd.f32 %v3561_v53, %v608_v34 }
 0x10d   : > { %v853_v12 = vrot.slane %v3596_v55, 2  ;;  %v636_v16 = vmax.f32 %v489_v22, 0.0  ;;  %v3641_v34 = vrot.slane %v1486_v42, 2  ;;  %v1661_v11 = vshrl.u32 %v3586_v19, 16 }
 0x10e   : > { %v707_v15 = vrot.slane %v3621_v45, 1  ;;  %v751_v13 = vrot.slane %v3623_v54, 1  ;;  %v854_v4 = vrot.slane %v3623_v54, 2  ;;  %v3637_v26 = vmax.f32 %v505_v6, 0.0 }
 0x10f   : > { %v3639_v29 = vmax.f32 %v609_v41, 0.0  ;;  %v811_v24 = vrot.slane %v3621_v45, 2 }
 0x110   : > { %v708_v58 = vsel %vm5380_vm4, %v705_v62, %v707_v15  ;;  %v752_v8 = vsel %vm5380_vm4, %v749_v3, %v751_v13  ;;  %v3647_v7 = vsel %vm5391_vm3, %v853_v12, %v854_v4  ;;  %v709_v22 = vrot.slane %v3637_v26, 1 }
 0x111   : > { %v783_v39 = vmax.f32 %v636_v16, %v708_v58  ;;  %v812_v6 = vrot.slane %v3637_v26, 2  ;;  %v509_v41 = vpop.f32.mrb[12].mxu0  ;;  %v613_v51 = vpop.f32.mrb[12].mxu1  ;;  %v856_v42 = vrot.slane %v3639_v29, 2  ;;  %v802_v13 = vmax.f32 %v3568_v2, %v752_v8 }
 0x112   : > { %v510_v62 = vadd.f32 %v3561_v53, %v509_v41  ;;  %v614_v3 = vadd.f32 %v3561_v53, %v613_v51  ;;  %v3046_v52 = vpop.f32.mrb[13].mxu0  ;;  %v3098_v12 = vpop.f32.mrb[13].mxu1  ;;  %v710_v16 = vsel %vm5380_vm4, %v707_v15, %v709_v22 }
 0x113   : > { %v813_v58 = vsel %vm5391_vm3, %v811_v24, %v812_v6  ;;  %v512_v50 = vpop.f32.mrb[14].mxu0  ;;  %v616_v1 = vpop.f32.mrb[14].mxu1  ;;  %v857_v51 = vsel %vm5391_vm3, %v854_v4, %v856_v42  ;;  %v784_v12 = vmax.f32 %v637_v20, %v710_v16 }
 0x114   : > { %v3662_v41 = vmax.f32 %v782_v23, %v813_v58  ;;  %v3665_v2 = vmax.f32 %v510_v62, 0.0  ;;  %v667_v52 = vmax.f32 %v614_v3, 0.0  ;;  %v3047_v8 = vpop.f32.mrb[15].mxu0  ;;  %v3099_v15 = vpop.f32.mrb[15].mxu1  ;;  %v3667_v22 = vmax.f32 %v801_v44, %v857_v51 }
 0x115   : > { %v513_v24 = vadd.f32 %v3561_v53, %v512_v50  ;;  %v3673_v32 = vadd.f32 %v3561_v53, %v616_v1  ;;  %v753_v58 = vrot.slane %v3639_v29, 1  ;;  %v3678_v62 = vrot.slane %v1661_v11, 7 }
 0x116   : > { %v814_v4 = vrot.slane %v3665_v2, 2  ;;  %v981_v3 = vrot.slane %v3662_v41, 1  ;;  %v754_v44 = vrot.slane %v667_v52, 1  ;;  %v858_v51 = vrot.slane %v667_v52, 2 }
 0x117   : > { %v642_v8 = vmax.f32 %v513_v24, 0.0  ;;  %v1039_v50 = vrot.slane %v3662_v41, 2  ;;  %v711_v10 = vrot.slane %v3665_v2, 1  ;;  %v668_v20 = vmax.f32 %v3673_v32, 0.0 }
 0x118   : > { %v815_v1 = vsel %vm5391_vm3, %v812_v6, %v814_v4  ;;  %v3686_v15 = vsel %vm5380_vm4, %v753_v58, %v754_v44  ;;  %v859_v11 = vsel %vm5391_vm3, %v856_v42, %v858_v51  ;;  %v5399_v36 = vrot.slane %v3667_v22, 4 }
 0x119   : > { %v892_v16 = vmax.f32 %v783_v39, %v815_v1  ;;  %v3689_v23 = vrot.slane %v642_v8, 1  ;;  %v517_v28 = vpop.f32.mrb[16].mxu0  ;;  %v621_v52 = vpop.f32.mrb[16].mxu1  ;;  %v911_v40 = vmax.f32 %v802_v13, %v859_v11  ;;  %v816_v57 = vrot.slane %v642_v8, 2 }
 0x11a   : > { %v3693_v6 = vrot.slane %v668_v20, 1  ;;  %v3050_v32 = vpop.f32.mrb[17].mxu0  ;;  %v3102_v39 = vpop.f32.mrb[17].mxu1 }
 0x11b   : > { %v982_v58 = vrot.slane %v892_v16, 1  ;;  %v1040_v56 = vrot.slane %v892_v16, 2  ;;  %v3698_v42 = vsel %vm5380_vm4, %v711_v10, %v3689_v23  ;;  %v520_v51 = vpop.f32.mrb[18].mxu0  ;;  %v624_v35 = vpop.f32.mrb[18].mxu1  ;;  %v963_v18 = vrot.slane %v911_v40, 4 }
 0x11c   : > { %v817_v8 = vsel %vm5391_vm3, %v814_v4, %v816_v57  ;;  %v3705_v11 = vsel %vm5380_vm4, %v754_v44, %v3693_v6  ;;  %v3103_v32 = vpop.f32.mrb[19].mxu1  ;;  %v3051_v39 = vpop.f32.mrb[19].mxu0 }
 0x11d   : > { %v983_v24 = vsel %vm5380_vm4, %v981_v3, %v982_v58  ;;  %v1022_v17 = vmax.f32 %v892_v16, %v982_v58  ;;  %v1041_v10 = vsel %vm5391_vm3, %v1039_v50, %v1040_v56  ;;  %v893_v1 = vmax.f32 %v784_v12, %v817_v8 }
 0x11e   : > { %v1021_v40 = vmax.f32 %v3662_v41, %v983_v24  ;;  %v3713_v13 = vsel %vm5385_vm5, %v5399_v36, %v963_v18  ;;  %v1072_v57 = vrot.slane %v963_v18, 2  ;;  %v518_v41 = vadd.f32 %v3561_v53, %v517_v28 }
 0x11f   : > { %v5349_v44 = vrot.slane %v3713_v13, 1  ;;  %v5351_v3 = vrot.slane %v3713_v13, 2  ;;  %v1042_v16 = vrot.slane %v893_v1, 2  ;;  %v622_v24 = vadd.f32 %v3561_v53, %v621_v52 }
 0x120   : > { %v1095_v50 = vmax.f32 %v1021_v40, %v1041_v10  ;;  %v521_v36 = vadd.f32 %v3561_v53, %v520_v51  ;;  %v5400_v39 = vshll.u32 %v3503_v25, 16  ;;  %v860_v51 = vrot.slane %v668_v20, 2 }
 0x121   : > { %v1034_v18 = vmax.f32 %v3713_v13, %v5349_v44  ;;  %v1073_v58 = vsel %vm5391_vm3, %v5351_v3, %v1072_v57  ;;  %v1043_v1 = vsel %vm5391_vm3, %v1040_v56, %v1042_v16  ;;  %v525_v8 = vpop.f32.mrb[20].mxu0  ;;  %v629_v32 = vpop.f32.mrb[20].mxu1  ;;  %v3737_v44 = vmax.f32 %v518_v41, 0.0 }
 0x122   : > { %v3733_v10 = vrot.slane %v5400_v39, 1  ;;  %v1119_v28 = vrot.slane %v1095_v50, 1  ;;  %v1135_v52 = vrot.slane %v1095_v50, 2  ;;  %v1096_v40 = vmax.f32 %v1022_v17, %v1043_v1  ;;  %v3054_v12 = vpop.f32.mrb[21].mxu0  ;;  %v3106_v4 = vpop.f32.mrb[21].mxu1 }
 0x123   : > { %v3735_v48 = vmax.f32 %v1034_v18, %v1073_v58  ;;  %v669_v37 = vmax.f32 %v622_v24, 0.0  ;;  %v3739_v57 = vmax.f32 %v521_v36, 0.0  ;;  %v528_v56 = vpop.f32.mrb[22].mxu0  ;;  %v632_v16 = vpop.f32.mrb[22].mxu1  ;;  %v1151_v3 = vrot.slane %v1095_v50, 3 }
 0x124   : > { %5401 = vst [vmem:[#allocation10_spill] sm:$0xff] %v3733_v10  ;;  %v1240_v25 = vsel %vm5384_vm6, %v1095_v50, %v1119_v28  ;;  %v1175_v39 = vrot.slane %v1096_v40, 4  ;;  %v625_v17 = vadd.f32 %v3561_v53, %v624_v35  ;;  %v3107_v20 = vpop.f32.mrb[23].mxu1  ;;  %v3055_v12 = vpop.f32.mrb[23].mxu0  ;;  %v1191_v18 = vrot.slane %v1096_v40, 5 }
 0x125   : > { %5402 = vst [vmem:[#allocation11_spill] sm:$0xff] %v3735_v48  ;;  %v1248_v4 = vsel %vm5386_vm7, %v1240_v25, %v1135_v52  ;;  %v1207_v24 = vrot.slane %v1096_v40, 6  ;;  %v1223_v58 = vrot.slane %v1096_v40, 7  ;;  %v714_v50 = vrot.slane %v3737_v44, 1 }
 0x126   : > { %v1257_v1 = vsel %vm5383_vm8, %v1248_v4, %v1151_v3  ;;  %v818_v16 = vrot.slane %v3737_v44, 2  ;;  %v861_v35 = vrot.slane %v669_v37, 2  ;;  %v716_v20 = vrot.slane %v3739_v57, 1 }
 0x127   : > { %v1265_v28 = vsel %vm5385_vm5, %v1257_v1, %v1175_v39  ;;  %v715_v25 = vsel %vm5380_vm4, %v3689_v23, %v714_v50  ;;  %v819_v12 = vrot.slane %v3739_v57, 2  ;;  %v670_v36 = vmax.f32 %v625_v17, 0.0 }
 0x128   : > { %v1274_v52 = vsel %vm1273_vm9, %v1265_v28, %v1191_v18  ;;  %v786_v3 = vmax.f32 %v3637_v26, %v715_v25  ;;  %v862_v4 = vsel %vm5391_vm3, %v860_v51, %v861_v35  ;;  %v717_v39 = vsel %vm5380_vm4, %v714_v50, %v716_v20 }
 0x129   : > { %v1282_v40 = vsel %vm5391_vm3, %v1274_v52, %v1207_v24  ;;  %v533_v1 = vpop.f32.mrb[24].mxu0  ;;  %v5403_v18 = vmax.f32 %v3596_v55, %v3686_v15  ;;  %v820_v23 = vsel %vm5391_vm3, %v818_v16, %v819_v12  ;;  %v863_v41 = vrot.slane %v670_v36, 2 }
 0x12a   : > { %v1290_v37 = vsel %vm5380_vm4, %v1282_v40, %v1223_v58  ;;  %v3058_v10 = vpop.f32.mrb[25].mxu0  ;;  %v5404_v24 = vmax.f32 %v3621_v45, %v3698_v42  ;;  %v526_v51 = vadd.f32 %v3561_v53, %v525_v8  ;;  %v630_v50 = vadd.f32 %v3561_v53, %v629_v32 }
 0x12b   : > { %v912_v28 = vmax.f32 %v5403_v18, %v862_v4  ;;  %v1298_v17 = vpack.c.bf16 %v1290_v37, %v1290_v37  ;;  %v536_v20 = vpop.f32.mrb[26].mxu0  ;;  %v864_v52 = vsel %vm5391_vm3, %v861_v35, %v863_v41  ;;  %v529_v55 = vadd.f32 %v3561_v53, %v528_v56 }
 0x12c   : > { %v894_v26 = vmax.f32 %v5404_v24, %v820_v23  ;;  %v787_v15 = vmax.f32 %v3665_v2, %v717_v39  ;;  %v3059_v36 = vpop.f32.mrb[27].mxu0  ;;  %v5405_v45 = vmax.f32 %v3623_v54, %v3705_v11  ;;  %v3777_v8 = vmax.f32 %v526_v51, 0.0 }
 0x12d   : > { %v1317_v16 = vrot.slane %v1298_v17, 3  ;;  %v671_v32 = vmax.f32 %v630_v50, 0.0  ;;  %v646_v25 = vmax.f32 %v529_v55, 0.0  ;;  %v534_v40 = vadd.f32 %v3561_v53, %v533_v1 }
 0x12e   : > { %v913_v42 = vmax.f32 %v5405_v45, %v864_v52  ;;  %v537_v35 = vadd.f32 %v3561_v53, %v536_v20  ;;  %v970_v2 = vrot.slane %v912_v28, 6  ;;  %v718_v4 = vrot.slane %v3777_v8, 1 }
 0x12f   : > { %1320 = vst.msk [vmem:[#allocation2 + $0x8] sm:$0xe0] %vm1319_vm10, %v1317_v16  ;;  %v821_v39 = vrot.slane %v3777_v8, 2  ;;  %v865_v54 = vrot.slane %v671_v32, 2  ;;  %v719_v11 = vrot.slane %v646_v25, 1  ;;  %v823_v37 = vrot.slane %v646_v25, 2 }
 0x130   : > { %1322 = vst.msk [vmem:[#allocation2 + $0x10] sm:$0x1] %vm1321_vm11, %v1317_v16  ;;  %v971_v56 = vrot.slane %v913_v42, 6  ;;  %v3785_v18 = vmax.f32 %v534_v40, 0.0  ;;  %v918_v23 = vrot.slane %v894_v26, 2  ;;  %v3789_v24 = vmax.f32 %v537_v35, 0.0 }
 0x131   : > { %v822_v17 = vsel %vm5391_vm3, %v819_v12, %v821_v39  ;;  %v541_v51 = vpop.f32.mrb[28].mxu0  ;;  %v866_v52 = vsel %vm5391_vm3, %v863_v41, %v865_v54  ;;  %v5406_v36 = vmax.f32 %v3639_v29, %v3693_v6  ;;  %v720_v45 = vsel %vm5380_vm4, %v718_v4, %v719_v11 }
 0x132   : > { %v972_v1 = vsel %vm5386_vm7, %v970_v2, %v971_v56  ;;  %v895_v20 = vmax.f32 %v786_v3, %v822_v17  ;;  %v3062_v55 = vpop.f32.mrb[29].mxu0  ;;  %v824_v26 = vsel %vm5391_vm3, %v821_v39, %v823_v37  ;;  %v721_v42 = vrot.slane %v3785_v18, 1 }
 0x133   : > { %v1002_v50 = vrot.slane %v972_v1, 1  ;;  %v1074_v28 = vrot.slane %v972_v1, 2  ;;  %v914_v16 = vmax.f32 %v5406_v36, %v866_v52  ;;  %v544_v12 = vpop.f32.mrb[30].mxu0  ;;  %v788_v25 = vmax.f32 %v3737_v44, %v720_v45 }
 0x134   : > { %v919_v32 = vrot.slane %v895_v20, 2  ;;  %v896_v40 = vmax.f32 %v787_v15, %v824_v26  ;;  %v825_v3 = vrot.slane %v3785_v18, 2  ;;  %v3063_v35 = vpop.f32.mrb[31].mxu0  ;;  %v3801_v2 = vsel %vm5380_vm4, %v719_v11, %v721_v42 }
 0x135   : > { %v973_v41 = vrot.slane %v914_v16, 6  ;;  %v723_v29 = vrot.slane %v3789_v24, 1  ;;  %v5355_v6 = vrot.slane %v3789_v24, 2  ;;  %v542_v44 = vadd.f32 %v3561_v53, %v541_v51 }
 0x136   : > { %v920_v4 = vsel %vm5391_vm3, %v918_v23, %v919_v32  ;;  %v921_v39 = vrot.slane %v896_v40, 2  ;;  %v3809_v15 = vld [vmem:[#allocation2 + $0x8] sm:$0xff] }
 0x137   : > { %v984_v37 = vrot.slane %v920_v4, 1  ;;  %v1044_v17 = vrot.slane %v920_v4, 2  ;;  %v974_v20 = vsel %vm5386_vm7, %v971_v56, %v973_v41  ;;  %v1077_v11 = vrot.slane %v973_v41, 2  ;;  %1700 = vrot.lane.b32.xlu1 %v3809_v15, %s3292_s12 }
 0x138   : > { %v1003_v52 = vrot.slane %v974_v20, 1  ;;  %v1075_v55 = vrot.slane %v974_v20, 2  ;;  %v922_v23 = vsel %vm5391_vm3, %v919_v32, %v921_v39  ;;  %v1047_v36 = vrot.slane %v921_v39, 2 }
 0x139   : > { %v985_v16 = vrot.slane %v922_v23, 1  ;;  %v1045_v45 = vrot.slane %v922_v23, 2  ;;  %v3816_v51 = vsel %vm5380_vm4, %v721_v42, %v723_v29  ;;  %v827_v26 = vsel %vm5391_vm3, %v825_v3, %v5355_v6  ;;  %v549_v56 = vpop.f32.mrb[32].mxu0 }
 0x13a   : > { %v1004_v40 = vsel %vm5380_vm4, %v1002_v50, %v1003_v52  ;;  %v1036_v35 = vmax.f32 %v974_v20, %v1003_v52  ;;  %v1076_v41 = vsel %vm5391_vm3, %v1074_v28, %v1075_v55  ;;  %v1078_v10 = vsel %vm5391_vm3, %v1075_v55, %v1077_v11  ;;  %v3066_v58 = vpop.f32.mrb[33].mxu0 }
 0x13b   : > { %v1035_v32 = vmax.f32 %v972_v1, %v1004_v40  ;;  %v986_v39 = vsel %vm5380_vm4, %v984_v37, %v985_v16  ;;  %v1024_v54 = vmax.f32 %v922_v23, %v985_v16  ;;  %v1046_v42 = vsel %vm5391_vm3, %v1044_v17, %v1045_v45  ;;  %v3826_v29 = vpop.f32.mrb[34].mxu0 }
 0x13c   : > { %v1110_v48 = vmax.f32 %v1036_v35, %v1078_v10  ;;  %v1023_v46 = vmax.f32 %v920_v4, %v986_v39  ;;  %v1048_v3 = vsel %vm5391_vm3, %v1045_v45, %v1047_v36  ;;  %v897_v6 = vmax.f32 %v788_v25, %v827_v26  ;;  %v3067_v50 = vpop.f32.mrb[35].mxu0 }
 0x13d   : > { %v1109_v20 = vmax.f32 %v1035_v32, %v1076_v41  ;;  %v1098_v52 = vmax.f32 %v1024_v54, %v1048_v3  ;;  %v3829_v28 = vmax.f32 %v542_v44, 0.0  ;;  %v545_v58 = vadd.f32 %v3561_v53, %v544_v12 }
 0x13e   : > { %v1182_v1 = vrot.slane %v1110_v48, 4  ;;  %v1198_v11 = vrot.slane %v1110_v48, 5  ;;  %v1214_v37 = vrot.slane %v1110_v48, 6  ;;  %v1230_v55 = vrot.slane %v1110_v48, 7 }
 0x13f   : > { %v1126_v23 = vrot.slane %v1109_v20, 1  ;;  %v1142_v17 = vrot.slane %v1109_v20, 2  ;;  %v1158_v16 = vrot.slane %v1109_v20, 3  ;;  %v1097_v40 = vmax.f32 %v1023_v46, %v1046_v42 }
 0x140   : > { %v1176_v10 = vrot.slane %v1098_v52, 4  ;;  %v1192_v4 = vrot.slane %v1098_v52, 5  ;;  %v1208_v35 = vrot.slane %v1098_v52, 6  ;;  %v1224_v36 = vrot.slane %v1098_v52, 7 }
 0x141   : > { %v1247_v25 = vsel %vm5384_vm6, %v1109_v20, %v1126_v23  ;;  %v1120_v54 = vrot.slane %v1097_v40, 1  ;;  %v1136_v44 = vrot.slane %v1097_v40, 2  ;;  %v1152_v45 = vrot.slane %v1097_v40, 3  ;;  %v3833_v12 = vpop.f32.mrb[36].mxu0 }
 0x142   : > { %v1255_v26 = vsel %vm5386_vm7, %v1247_v25, %v1142_v17  ;;  %v929_v48 = vrot.slane %v897_v6, 4  ;;  %v725_v41 = vrot.slane %v3829_v28, 1  ;;  %v828_v46 = vrot.slane %v3829_v28, 2  ;;  %v3070_v32 = vpop.f32.mrb[37].mxu0 }
 0x143   : > { %v1264_v39 = vsel %vm5383_vm8, %v1255_v26, %v1158_v16  ;;  %v1241_v42 = vsel %vm5384_vm6, %v1097_v40, %v1120_v54  ;;  %v650_v3 = vmax.f32 %v545_v58, 0.0  ;;  %v790_v50 = vmax.f32 %v3777_v8, %v3816_v51  ;;  %v3842_v20 = vpop.f32.mrb[38].mxu0 }
 0x144   : > { %v1272_v52 = vsel %vm5385_vm5, %v1264_v39, %v1182_v1  ;;  %v1249_v6 = vsel %vm5386_vm7, %v1241_v42, %v1136_v44  ;;  %v5407_v23 = vrot.slane %v3789_v24, 2  ;;  %v550_v25 = vadd.f32 %v3561_v53, %v549_v56  ;;  %v3071_v16 = vpop.f32.mrb[39].mxu0 }
 0x145   : > { %v1281_v40 = vsel %vm1273_vm9, %v1272_v52, %v1198_v11  ;;  %v1258_v58 = vsel %vm5383_vm8, %v1249_v6, %v1152_v45  ;;  %v5408_v8 = vmax.f32 %v3739_v57, %v3801_v2  ;;  %v726_v54 = vrot.slane %v650_v3, 1 }
 0x146   : > { %v829_v17 = vsel %vm5391_vm3, %v5407_v23, %v828_v46  ;;  %v1289_v1 = vsel %vm5391_vm3, %v1281_v40, %v1214_v37  ;;  %v1266_v44 = vsel %vm5385_vm5, %v1258_v58, %v1176_v10  ;;  %v830_v26 = vrot.slane %v650_v3, 2 }
 0x147   : > { %v898_v51 = vmax.f32 %v5408_v8, %v829_v17  ;;  %v651_v32 = vmax.f32 %v550_v25, 0.0  ;;  %v1297_v39 = vsel %vm5380_vm4, %v1289_v1, %v1230_v55  ;;  %v1275_v56 = vsel %vm1273_vm9, %v1266_v44, %v1192_v4 }
 0x148   : > { %v3860_v11 = vsel %vm5380_vm4, %v725_v41, %v726_v54  ;;  %v1305_v45 = vpack.c.bf16 %v1297_v39, %v1297_v39  ;;  %v1283_v52 = vsel %vm5391_vm3, %v1275_v56, %v1208_v35  ;;  %v831_v2 = vsel %vm5391_vm3, %v828_v46, %v830_v26 }
 0x149   : > { %v930_v42 = vrot.slane %v898_v51, 4  ;;  %v791_v57 = vmax.f32 %v3785_v18, %v3860_v11  ;;  %v1291_v37 = vsel %vm5380_vm4, %v1283_v52, %v1224_v36  ;;  %v899_v3 = vmax.f32 %v790_v50, %v831_v2  ;;  %v3868_v6 = vpop.f32.mrb[40].mxu0 }
 0x14a   : > { %v728_v55 = vrot.slane %v651_v32, 1  ;;  %v1354_v4 = vrot.slane %v1305_v45, 1  ;;  %v1299_v23 = vpack.c.bf16 %v1291_v37, %v1291_v37  ;;  %v3074_v25 = vpop.f32.mrb[41].mxu0  ;;  %v832_v40 = vrot.slane %v651_v32, 2 }
 0x14b   : > { %v931_v10 = vsel %vm5385_vm5, %v929_v48, %v930_v42  ;;  %v932_v16 = vrot.slane %v899_v3, 4  ;;  %v1557_v46 = vrot.slane %v3809_v15, 6  ;;  %v3874_v36 = vpop.f32.mrb[42].mxu0  ;;  %v1459_v58 = vrot.slane %v3809_v15, 1 }
 0x14c   : > { %v987_v41 = vrot.slane %v931_v10, 1  ;;  %v1049_v17 = vrot.slane %v931_v10, 2  ;;  %v3871_v35 = vsel %vm5380_vm4, %v726_v54, %v728_v55  ;;  %1356 = vst.msk [vmem:[#allocation2 + $0x30] sm:$0x80] %vm1336_vm12, %v1354_v4  ;;  %v1324_v48 = vrot.slane %v1299_v23, 5  ;;  %v3075_v51 = vpop.f32.mrb[43].mxu0 }
 0x14d   : > { %1357 = vst.msk [vmem:[#allocation2 + $0x38] sm:$0x7] %vm1338_vm13, %v1354_v4  ;;  %v792_v50 = vmax.f32 %v3789_v24, %v3871_v35  ;;  %v553_v8 = vadd.f32 %v3561_v53, %v3826_v29  ;;  %v933_v54 = vsel %vm5385_vm5, %v930_v42, %v932_v16  ;;  %v1052_v1 = vrot.slane %v932_v16, 2 }
 0x14e   : > { %v5409_v44 = vrot.slane %v3571_v5, 6  ;;  %v1635_v32 = vrot.slane %v3809_v15, 7  ;;  %1327 = vst.msk [vmem:[#allocation2 + $0x10] sm:$0x78] %vm5357_vm14, %v1324_v48  ;;  %v988_v39 = vrot.slane %v933_v54, 1  ;;  %v1050_v56 = vrot.slane %v933_v54, 2 }
 0x14f   : > { %v5410_v29 = vrot.slane %v3582_v14, 1  ;;  %v3897_v45 = vmax.f32 %v553_v8, 0.0  ;;  %v5411_v5 = vrot.slane %v3586_v19, 7  ;;  %v1531_v2 = vrot.slane %v3809_v15, 2 }
 0x150   : > { %v1558_v26 = vsel %vm5386_vm7, %v5409_v44, %v1557_v46  ;;  %v3908_v37 = vadd.f32 %v3561_v53, %v3833_v12  ;;  %v3911_v14 = vshll.u32 %v3809_v15, 16  ;;  %v989_v3 = vsel %vm5380_vm4, %v987_v41, %v988_v39 }
 0x151   : > { %1569 = vrot.lane.b32.xlu0 %v1558_v26, %s5374_s26  ;;  %v1460_v42 = vsel %vm5380_vm4, %v5410_v29, %v1459_v58  ;;  %v1636_v52 = vsel %vm5384_vm6, %v5411_v5, %v1635_v32  ;;  %v1026_v4 = vmax.f32 %v933_v54, %v988_v39  ;;  %v1051_v23 = vsel %vm5391_vm3, %v1049_v17, %v1050_v56  ;;  %v3923_v51 = vpop.f32.mrb[44].mxu0 }
 0x152   : > { %1469 = vrot.lane.b32.xlu1 %v1460_v42, %s3285_s25  ;;  %v1053_v25 = vsel %vm5391_vm3, %v1050_v56, %v1052_v1  ;;  %v1025_v19 = vmax.f32 %v931_v10, %v989_v3  ;;  %v730_v16 = vrot.slane %v3897_v45, 1  ;;  %v833_v48 = vrot.slane %v3897_v45, 2  ;;  %v3078_v1 = vpop.f32.mrb[45].mxu0 }
 0x153   : > { %v5412_v12 = vrot.slane %v3591_v31, 2  ;;  %v1100_v41 = vmax.f32 %v1026_v4, %v1053_v25  ;;  %v653_v17 = vmax.f32 %v3908_v37, 0.0  ;;  %v1402_v10 = vrot.slane %v3911_v14, 1  ;;  %v3935_v56 = vpop.f32.mrb[46].mxu0 }
 0x154   : > { %v3929_v54 = vshrl.u32 %v3809_v15, 16  ;;  %v1099_v44 = vmax.f32 %v1025_v19, %v1051_v23  ;;  %v731_v26 = vsel %vm5380_vm4, %v728_v55, %v730_v16  ;;  %v834_v31 = vsel %vm5391_vm3, %v832_v40, %v833_v48  ;;  %v3079_v3 = vpop.f32.mrb[47].mxu0 }
 0x155   : > { %v1532_v8 = vsel %vm5391_vm3, %v5412_v12, %v1531_v2  ;;  %1647 = vrot.lane.b32.xlu0 %v1636_v52, %s3290_s8  ;;  %v1591_v39 = vrot.slane %v3911_v14, 7  ;;  %v1177_v29 = vrot.slane %v1100_v41, 4  ;;  %v1193_v42 = vrot.slane %v1100_v41, 5 }
 0x156   : > { %1541 = vrot.lane.b32.xlu1 %v1532_v8, %s3287_s30  ;;  %v1209_v5 = vrot.slane %v1100_v41, 6  ;;  %v1225_v52 = vrot.slane %v1100_v41, 7  ;;  %v1121_v4 = vrot.slane %v1099_v44, 1  ;;  %v1137_v25 = vrot.slane %v1099_v44, 2 }
 0x157   : > { %v1153_v12 = vrot.slane %v1099_v44, 3  ;;  %v793_v23 = vmax.f32 %v3829_v28, %v731_v26  ;;  %v900_v55 = vmax.f32 %v791_v57, %v834_v31  ;;  %v835_v40 = vrot.slane %v653_v17, 2 }
 0x158   : > { %v1403_v19 = vsel %vm1391_vm15, %v3615_v21, %v1402_v10  ;;  %v1590_v16 = vrot.slane %v3929_v54, 6  ;;  %v1242_v8 = vsel %vm5384_vm6, %v1099_v44, %v1121_v4  ;;  %vm1331_vm14 = vcmask 45057  }
 0x159   : > { %1439 = vrot.lane.b32.xlu0 %v1403_v19, %s3284_s23  ;;  %v561_v28 = vadd.f32 %v3561_v53, %v3842_v20  ;;  %v1490_v18 = vrot.slane %v3929_v54, 1  ;;  %v1491_v11 = vrot.slane %v3911_v14, 2  ;;  %v1250_v57 = vsel %vm5386_vm7, %v1242_v8, %v1137_v25  ;;  %v3966_v3 = vpop.f32.mrb[48].mxu0  ;;  %v3992_v8 = vld [vmem:[#allocation2 + $0x10] sm:$0xff] }
 0x15a   : > { %v940_v41 = vrot.slane %v900_v55, 6  ;;  %v836_v1 = vsel %vm5391_vm3, %v833_v48, %v835_v40  ;;  %v3956_v21 = vor.u32 %v1591_v39, %v1590_v16  ;;  %v1259_v26 = vsel %vm5383_vm8, %v1250_v57, %v1153_v12  ;;  %v3082_v35 = vpop.f32.mrb[49].mxu0 }
 0x15b   : > { %v901_v44 = vmax.f32 %v792_v50, %v836_v1  ;;  %v3962_v31 = vmax.f32 %v561_v28, 0.0  ;;  %v3964_v20 = vor.u32 %v1491_v11, %v1490_v18  ;;  %v1267_v4 = vsel %vm5385_vm5, %v1259_v26, %v1177_v29  ;;  %v3981_v19 = vpop.f32.mrb[50].mxu0  ;;  %v3994_v28 = vld [vmem:[#allocation2 + $0x38] sm:$0xff] }
 0x15c   : > { %v5413_v48 = vor.u32 %v3629_v0, %v3627_v59  ;;  %v566_v25 = vadd.f32 %v3561_v53, %v3868_v6  ;;  %v1664_v24 = vrot.slane %v3929_v54, 7  ;;  %v1276_v50 = vsel %vm1273_vm9, %v1267_v4, %v1193_v42  ;;  %v3083_v18 = vpop.f32.mrb[51].mxu0 }
 0x15d   : > { %v941_v12 = vrot.slane %v901_v44, 6  ;;  %v732_v55 = vrot.slane %v3962_v31, 1  ;;  %v837_v29 = vrot.slane %v3962_v31, 2  ;;  %v1284_v59 = vsel %vm5391_vm3, %v1276_v50, %v1209_v5 }
 0x15e   : > { %v1593_v39 = vsel %vm1581_vm0, %v5413_v48, %v3956_v21  ;;  %v5414_v0 = vor.u32 %v3641_v34, %v3631_v43  ;;  %v655_v16 = vmax.f32 %v566_v25, 0.0  ;;  %v1665_v42 = vor.u32 %v1664_v24, %v3911_v14 }
 0x15f   : > { %1619 = vrot.lane.b32.xlu1 %v1593_v39, %s3289_s7  ;;  %v1292_v11 = vsel %vm5380_vm4, %v1284_v59, %v1225_v52  ;;  %v942_v5 = vsel %vm5386_vm7, %v940_v41, %v941_v12  ;;  %v838_v57 = vsel %vm5391_vm3, %v835_v40, %v837_v29  ;;  %v569_v43 = vadd.f32 %v3561_v53, %v3874_v36 }
 0x160   : > { %v1493_v6 = vsel %vm1481_vm1, %v5414_v0, %v3964_v20  ;;  %v1300_v34 = vpack.c.bf16 %v1292_v11, %v1292_v11  ;;  %v990_v1 = vrot.slane %v942_v5, 1  ;;  %v1054_v26 = vrot.slane %v942_v5, 2 }
 0x161   : > { %1515 = vrot.lane.b32.xlu0 %v1493_v6, %s5375_s6  ;;  %v902_v44 = vmax.f32 %v793_v23, %v838_v57  ;;  %v733_v4 = vrot.slane %v655_v16, 1  ;;  %v1666_v48 = vsel %vm5387_vm2, %v3678_v62, %v1665_v42  ;;  %v4006_v52 = vmax.f32 %v569_v43, 0.0  ;;  %v4043_v57 = vld [vmem:[#allocation2 + $0x8] sm:$0xf0] }
 0x162   : > { %v5367_v40 = vrot.slane %v3994_v28, 6  ;;  %v1329_v41 = vrot.slane %v1300_v34, 7  ;;  %v2158_v25 = vrot.slane %v3994_v28, 1  ;;  %v574_v36 = vadd.f32 %v3561_v53, %v3923_v51 }
 0x163   : > { %1702 = vrot.lane.b32.xlu1 %v3992_v8, %s3292_s12  ;;  %v943_v39 = vrot.slane %v902_v44, 6  ;;  %v734_v23 = vsel %vm5380_vm4, %v732_v55, %v733_v4  ;;  %v735_v62 = vrot.slane %v4006_v52, 1  ;;  %v839_v35 = vrot.slane %v4006_v52, 2 }
 0x164   : > { %v5415_v50 = vrot.slane %v3513_v30, 6  ;;  %1332 = vst.msk [vmem:[#allocation2 + $0x18] sm:$0x1e] %vm1331_vm14, %v1329_v41  ;;  %v794_v53 = vmax.f32 %v3897_v45, %v734_v23  ;;  %v5416_v51 = vrot.slane %v3507_v27, 1  ;;  %v4031_v42 = vmax.f32 %v574_v36, 0.0 }
 0x165   : > { %1687 = vrot.lane.b32.xlu0 %v1666_v48, %s3291_s9  ;;  %v944_v59 = vsel %vm5386_vm7, %v941_v12, %v943_v39  ;;  %v1057_v0 = vrot.slane %v943_v39, 2  ;;  %v736_v30 = vsel %vm5380_vm4, %v733_v4, %v735_v62  ;;  %v5365_v18 = vrot.slane %v3994_v28, 7  ;;  %v3210_v27 = vld [vmem:[%s5337_s2] ss:$0 sm:$0xff] }
 0x166   : > { %v2241_v29 = vsel %vm5386_vm7, %v5367_v40, %v5415_v50  ;;  %v2161_v55 = vsel %vm5380_vm4, %v2158_v25, %v5416_v51  ;;  %v991_v6 = vrot.slane %v944_v59, 1  ;;  %v1055_v16 = vrot.slane %v944_v59, 2 }
 0x167   : > { %2170 = vrot.lane.b32.xlu1 %v2161_v55, %s3285_s25  ;;  %v795_v12 = vmax.f32 %v653_v17, %v736_v30  ;;  %v577_v45 = vadd.f32 %v3210_v27, %v3935_v56  ;;  %v4041_v11 = vshrl.u32 %v3994_v28, 16  ;;  %v737_v4 = vrot.slane %v4031_v42, 1 }
 0x168   : > { %v992_v43 = vsel %vm5380_vm4, %v990_v1, %v991_v6  ;;  %v1028_v34 = vmax.f32 %v944_v59, %v991_v6  ;;  %v1056_v44 = vsel %vm5391_vm3, %v1054_v26, %v1055_v16  ;;  %v1058_v37 = vsel %vm5391_vm3, %v1055_v16, %v1057_v0 }
 0x169   : > { %2248 = vrot.lane.b32.xlu0 %v2241_v29, %s5374_s26  ;;  %v1027_v17 = vmax.f32 %v942_v5, %v992_v43  ;;  %v840_v48 = vrot.slane %v4031_v42, 2  ;;  %v5417_v56 = vrot.slane %v3531_v38, 7  ;;  %v4056_v1 = vmax.f32 %v577_v45, 0.0 }
 0x16a   : > { %v1102_v39 = vmax.f32 %v1028_v34, %v1058_v37  ;;  %v2323_v26 = vrot.slane %v4041_v11, 7  ;;  %v1716_v36 = vrot.slane %v4043_v57, 4  ;;  %v738_v5 = vsel %vm5380_vm4, %v735_v62, %v737_v4  ;;  %v4073_v34 = vld [vmem:[#allocation2 + $0x8] sm:$0xe0] }
 0x16b   : > { %v2299_v41 = vsel %vm5384_vm6, %v5365_v18, %v5417_v56  ;;  %v1101_v23 = vmax.f32 %v1027_v17, %v1056_v44  ;;  %v841_v50 = vsel %vm5391_vm3, %v839_v35, %v840_v48  ;;  %v1717_v29 = vrot.slane %v3992_v8, 4 }
 0x16c   : > { %v1178_v59 = vrot.slane %v1102_v39, 4  ;;  %v1194_v38 = vrot.slane %v1102_v39, 5  ;;  %v1210_v0 = vrot.slane %v1102_v39, 6  ;;  %v1226_v51 = vrot.slane %v1102_v39, 7 }
 0x16d   : > { %2308 = vrot.lane.b32.xlu0 %v2299_v41, %s3290_s8  ;;  %v1122_v55 = vrot.slane %v1101_v23, 1  ;;  %v1138_v6 = vrot.slane %v1101_v23, 2  ;;  %v1154_v16 = vrot.slane %v1101_v23, 3  ;;  %v903_v30 = vmax.f32 %v794_v53, %v841_v50 }
 0x16e   : > { %v739_v45 = vrot.slane %v4056_v1, 1  ;;  %v842_v43 = vrot.slane %v4056_v1, 2  ;;  %v2333_v62 = vsel %vm5387_vm2, %v2323_v26, %v3550_v49  ;;  %v1718_v35 = vsel %vm5385_vm5, %v1716_v36, %v1717_v29 }
 0x16f   : > { %v1243_v44 = vsel %vm5384_vm6, %v1101_v23, %v1122_v55  ;;  %v993_v37 = vrot.slane %v903_v30, 1  ;;  %v1059_v17 = vrot.slane %v903_v30, 2  ;;  %2342 = vrot.lane.b32.xlu1 %v2333_v62, %s3291_s9  ;;  %v1461_v53 = vrot.slane %v3992_v8, 1 }
 0x170   : > { %v1251_v4 = vsel %vm5386_vm7, %v1243_v44, %v1138_v6  ;;  %v843_v56 = vsel %vm5391_vm3, %v840_v48, %v842_v43  ;;  %v582_v49 = vadd.f32 %v3210_v27, %v3966_v3  ;;  %v796_v41 = vmax.f32 %v3962_v31, %v738_v5 }
 0x171   : > { %1729 = vrot.lane.b32.xlu0 %v1718_v35, %s3293_s15  ;;  %v1260_v39 = vsel %vm5383_vm8, %v1251_v4, %v1154_v16  ;;  %v904_v36 = vmax.f32 %v795_v12, %v843_v56  ;;  %v1462_v23 = vsel %vm5380_vm4, %v1459_v58, %v1461_v53  ;;  %v1799_v50 = vrot.slane %v4073_v34, 5 }
 0x172   : > { %v1268_v48 = vsel %vm5385_vm5, %v1260_v39, %v1178_v59  ;;  %v659_v55 = vmax.f32 %v582_v49, 0.0  ;;  %v5361_v6 = vrot.slane %v3992_v8, 5  ;;  %v585_v3 = vadd.f32 %v3210_v27, %v3981_v19 }
 0x173   : > { %v1277_v31 = vsel %vm1273_vm9, %v1268_v48, %v1194_v38  ;;  %v994_v5 = vrot.slane %v904_v36, 1  ;;  %v1060_v16 = vrot.slane %v904_v36, 2  ;;  %1471 = vrot.lane.b32.xlu1 %v1462_v23, %s3285_s25  ;;  %v5360_v12 = vrot.slane %v3992_v8, 2 }
 0x174   : > { %v1285_v62 = vsel %vm5391_vm3, %v1277_v31, %v1210_v0  ;;  %v740_v58 = vrot.slane %v659_v55, 1  ;;  %v844_v35 = vrot.slane %v659_v55, 2  ;;  %v1801_v59 = vsel %vm5383_vm8, %v1799_v50, %v5361_v6 }
 0x175   : > { %v1293_v44 = vsel %vm5380_vm4, %v1285_v62, %v1226_v51  ;;  %v995_v19 = vsel %vm5380_vm4, %v993_v37, %v994_v5  ;;  %v1030_v27 = vmax.f32 %v904_v36, %v994_v5  ;;  %v1061_v38 = vsel %vm5391_vm3, %v1059_v17, %v1060_v16  ;;  %1812 = vrot.lane.b32.xlu0 %v1801_v59, %s3294_s16 }
 0x176   : > { %v1301_v4 = vpack.c.bf16 %v1293_v44, %v1293_v44  ;;  %v1029_v56 = vmax.f32 %v903_v30, %v995_v19  ;;  %v741_v0 = vsel %vm5380_vm4, %v739_v45, %v740_v58  ;;  %v845_v49 = vsel %vm5391_vm3, %v842_v43, %v844_v35 }
 0x177   : > { %v797_v39 = vmax.f32 %v4006_v52, %v741_v0  ;;  %v905_v23 = vmax.f32 %v796_v41, %v845_v49  ;;  %v660_v50 = vmax.f32 %v585_v3, 0.0  ;;  %v1534_v51 = vsel %vm5391_vm3, %v1531_v2, %v5360_v12 }
 0x178   : > { %v1334_v37 = vrot.slane %v1301_v4, 1  ;;  %v1103_v17 = vmax.f32 %v1029_v56, %v1061_v38  ;;  %1543 = vrot.lane.b32.xlu1 %v1534_v51, %s3287_s30  ;;  %v4114_v30 = vrot.slane %v3992_v8, 6  ;;  %v4117_v45 = vshll.u32 %v3994_v28, 16 }
 0x179   : > { %v1062_v43 = vrot.slane %v905_v23, 2  ;;  %v742_v52 = vrot.slane %v660_v50, 1  ;;  %v800_v41 = vmax.f32 %v660_v50, %v3607_v63  ;;  %v846_v36 = vrot.slane %v660_v50, 2 }
 0x17a   : > { %1337 = vst.msk [vmem:[#allocation2 + $0x18] sm:$0x80] %vm1336_vm12, %v1334_v37  ;;  %v1123_v2 = vrot.slane %v1103_v17, 1  ;;  %v1139_v48 = vrot.slane %v1103_v17, 2  ;;  %v1155_v55 = vrot.slane %v1103_v17, 3  ;;  %v1560_v3 = vsel %vm5386_vm7, %v1557_v46, %v4114_v30 }
 0x17b   : > { %1339 = vst.msk [vmem:[#allocation2 + $0x20] sm:$0x7] %vm1338_vm13, %v1334_v37  ;;  %v1063_v31 = vsel %vm5391_vm3, %v1060_v16, %v1062_v43  ;;  %v743_v5 = vsel %vm5380_vm4, %v740_v58, %v742_v52  ;;  %v5418_v62 = vrot.slane %v3564_v61, 1  ;;  %v5419_v35 = vrot.slane %v3564_v61, 2  ;;  %1571 = vrot.lane.b32.xlu0 %v1560_v3, %s5374_s26  ;;  %v1379_v61 = vld [vmem:[#allocation2 + $0x8] sm:$0xc0] }
 0x17c   : > { %v1244_v44 = vsel %vm5384_vm6, %v1103_v17, %v1123_v2  ;;  %v1104_v19 = vmax.f32 %v1030_v27, %v1063_v31  ;;  %v798_v38 = vmax.f32 %v4031_v42, %v743_v5  ;;  %v909_v4 = vmax.f32 %v800_v41, %v3647_v7 }
 0x17d   : > { %v745_v63 = vsel %vm5380_vm4, %v742_v52, %v5418_v62  ;;  %v848_v59 = vsel %vm5391_vm3, %v846_v36, %v5419_v35  ;;  %v1252_v16 = vsel %vm5386_vm7, %v1244_v44, %v1139_v48  ;;  %vm5381_vm12 = vsmask.f32 2304 }
 0x17e   : > { %v799_v46 = vmax.f32 %v4056_v1, %v745_v63  ;;  %v906_v58 = vmax.f32 %v797_v39, %v848_v59  ;;  %v2210_v56 = vrot.slane %v4041_v11, 5  ;;  %v1179_v0 = vrot.slane %v1104_v19, 4 }
 0x17f   : > { %v1195_v49 = vrot.slane %v1104_v19, 5  ;;  %v1211_v23 = vrot.slane %v1104_v19, 6  ;;  %v1227_v50 = vrot.slane %v1104_v19, 7  ;;  %v1261_v51 = vsel %vm5383_vm8, %v1252_v16, %v1155_v55 }
 0x180   : > { %v907_v27 = vmax.f32 %v798_v38, %v3576_v9  ;;  %v908_v42 = vmax.f32 %v799_v46, %v3604_v60  ;;  %v950_v1 = vrot.slane %v906_v58, 2  ;;  %v1269_v37 = vsel %vm5385_vm5, %v1261_v51, %v1179_v0 }
 0x181   : > { %v960_v39 = vrot.slane %v909_v4, 4  ;;  %v2211_v7 = vrot.slane %v4117_v45, 6  ;;  %v1876_v17 = vrot.slane %v1379_v61, 6  ;;  %v1278_v43 = vsel %vm1273_vm9, %v1269_v37, %v1195_v49 }
 0x182   : > { %v951_v52 = vrot.slane %v907_v27, 2  ;;  %v953_v41 = vrot.slane %v908_v42, 2  ;;  %v2265_v36 = vrot.slane %v4041_v11, 6  ;;  %v1286_v2 = vsel %vm5391_vm3, %v1278_v43, %v1211_v23 }
 0x183   : > { %v5420_v48 = vrot.slane %v3667_v22, 4  ;;  %v4152_v60 = vor.u32 %v2211_v7, %v2210_v56  ;;  %v1877_v55 = vsel %vm5386_vm7, %v1876_v17, %v4114_v30  ;;  %v1294_v3 = vsel %vm5380_vm4, %v1286_v2, %v1227_v50 }
 0x184   : > { %v952_v31 = vsel %vm5391_vm3, %v950_v1, %v951_v52  ;;  %v954_v5 = vsel %vm5391_vm3, %v951_v52, %v953_v41  ;;  %1882 = vrot.lane.b32.xlu0 %v1877_v55, %s3295_s17  ;;  %v1302_v63 = vpack.c.bf16 %v1294_v3, %v1294_v3  ;;  %v5421_v44 = vrot.slane %v3713_v13, 1 }
 0x185   : > { %v962_v9 = vsel %vm5385_vm5, %v960_v39, %v5420_v48  ;;  %v996_v35 = vrot.slane %v952_v31, 1  ;;  %v997_v22 = vrot.slane %v954_v5, 1  ;;  %v1064_v59 = vrot.slane %v952_v31, 2 }
 0x186   : > { %v999_v62 = vrot.slane %v962_v9, 1  ;;  %v1065_v38 = vrot.slane %v954_v5, 2  ;;  %v1067_v46 = vrot.slane %v953_v41, 2  ;;  %v1069_v16 = vrot.slane %v962_v9, 2 }
 0x187   : > { %v1341_v58 = vrot.slane %v1302_v63, 3  ;;  %v998_v4 = vsel %vm5380_vm4, %v996_v35, %v997_v22  ;;  %v1032_v56 = vmax.f32 %v954_v5, %v997_v22  ;;  %v5422_v50 = vrot.slane %v3713_v13, 2 }
 0x188   : > { %v1001_v19 = vsel %vm5380_vm4, %v999_v62, %v5421_v44  ;;  %v1031_v0 = vmax.f32 %v952_v31, %v998_v4  ;;  %v1066_v49 = vsel %vm5391_vm3, %v1064_v59, %v1065_v38  ;;  %v1068_v23 = vsel %vm5391_vm3, %v1065_v38, %v1067_v46  ;;  %v5424_v38 = vld [vmem:[#allocation8_spill] sm:$0xff]  ;;  %v5425_v46 = vld [vmem:[#allocation7_spill] sm:$0xff] }
 0x189   : > { %v1033_v61 = vmax.f32 %v962_v9, %v1001_v19  ;;  %v1071_v51 = vsel %vm5391_vm3, %v1069_v16, %v5422_v50  ;;  %1343 = vst.msk [vmem:[#allocation2 + $0x20] sm:$0xe0] %vm1319_vm10, %v1341_v58  ;;  %v1106_v27 = vmax.f32 %v1032_v56, %v1068_v23  ;;  %v5423_v1 = vor.u32 %v3546_v47, %v3516_v33  ;;  %v5427_v4 = vld [vmem:[#allocation11_spill] sm:$0xff] }
 0x18a   : > { %1344 = vst.msk [vmem:[#allocation2 + $0x28] sm:$0x1] %vm1321_vm11, %v1341_v58  ;;  %v2266_v39 = vrot.slane %v4117_v45, 7  ;;  %v1105_v7 = vmax.f32 %v1031_v0, %v1066_v49  ;;  %v5358_v13 = vrot.slane %v3992_v8, 7  ;;  %v4180_v17 = vshll.u32 %v3992_v8, 16 }
 0x18b   : > { %v1107_v42 = vmax.f32 %v1033_v61, %v1071_v51  ;;  %v2222_v37 = vsel %vm5381_vm12, %v4152_v60, %v5423_v1  ;;  %v4183_v43 = vshrl.u32 %v3992_v8, 16  ;;  %vm5382_vm10 = vsmask.f32 3328 }
 0x18c   : > { %2233 = vrot.lane.b32.xlu1 %v2222_v37, %s3287_s30  ;;  %v1180_v47 = vrot.slane %v1106_v27, 4  ;;  %v1124_v2 = vrot.slane %v1105_v7, 1  ;;  %v1140_v48 = vrot.slane %v1105_v7, 2  ;;  %v1156_v9 = vrot.slane %v1105_v7, 3 }
 0x18d   : > { %v1125_v52 = vrot.slane %v1107_v42, 1  ;;  %v1141_v41 = vrot.slane %v1107_v42, 2  ;;  %v1157_v33 = vrot.slane %v1107_v42, 3  ;;  %v1196_v55 = vrot.slane %v1106_v27, 5 }
 0x18e   : > { %v1212_v3 = vrot.slane %v1106_v27, 6  ;;  %v1228_v31 = vrot.slane %v1106_v27, 7  ;;  %v4186_v62 = vor.u32 %v2266_v39, %v2265_v36  ;;  %v1245_v63 = vsel %vm5384_vm6, %v1105_v7, %v1124_v2 }
 0x18f   : > { %v1246_v5 = vsel %vm5384_vm6, %v1107_v42, %v1125_v52  ;;  %v1638_v22 = vsel %vm5384_vm6, %v1635_v32, %v5358_v13  ;;  %v1743_v59 = vshrl.u32 %v4043_v57, 16  ;;  %v1253_v44 = vsel %vm5386_vm7, %v1245_v63, %v1140_v48 }
 0x190   : > { %v1254_v35 = vsel %vm5386_vm7, %v1246_v5, %v1141_v41  ;;  %v5426_v36 = vor.u32 %v5424_v38, %v5425_v46  ;;  %1649 = vrot.lane.b32.xlu0 %v1638_v22, %s3290_s8  ;;  %v1746_v58 = vshll.u32 %v4043_v57, 16  ;;  %v1262_v15 = vsel %vm5383_vm8, %v1253_v44, %v1156_v9 }
 0x191   : > { %v1263_v19 = vsel %vm5383_vm8, %v1254_v35, %v1157_v33  ;;  %v5428_v32 = vrot.slane %v5427_v4, 4  ;;  %v1745_v61 = vrot.slane %v1743_v59, 4  ;;  %v1750_v0 = vrot.slane %v4183_v43, 4  ;;  %v5432_v59 = vld [vmem:[#allocation10_spill] sm:$0xff] }
 0x192   : > { %v2277_v16 = vsel %vm1581_vm0, %v4186_v62, %v5426_v36  ;;  %v1270_v49 = vsel %vm5385_vm5, %v1262_v15, %v1180_v47  ;;  %v5429_v23 = vrot.slane %v5427_v4, 5  ;;  %v1748_v51 = vrot.slane %v1746_v58, 5 }
 0x193   : > { %v1271_v56 = vsel %vm5385_vm5, %v1263_v19, %v5428_v32  ;;  %2286 = vrot.lane.b32.xlu1 %v2277_v16, %s3289_s7  ;;  %v1751_v57 = vrot.slane %v4180_v17, 5  ;;  %v1279_v27 = vsel %vm1273_vm9, %v1270_v49, %v1196_v55  ;;  %v5430_v42 = vrot.slane %v5427_v4, 6  ;;  %v5434_v49 = vld [vmem:[#allocation9_spill] sm:$0xff] }
 0x194   : > { %v1280_v50 = vsel %vm1273_vm9, %v1271_v56, %v5429_v23  ;;  %v5363_v37 = vrot.slane %v4117_v45, 1  ;;  %v1826_v39 = vshrl.u32 %v4073_v34, 16  ;;  %v1287_v7 = vsel %vm5391_vm3, %v1279_v27, %v1212_v3  ;;  %v5435_v23 = vld [vmem:[#allocation6_spill] sm:$0xff] }
 0x195   : > { %v1288_v1 = vsel %vm5391_vm3, %v1280_v50, %v5430_v42  ;;  %v5431_v52 = vrot.slane %v5427_v4, 7  ;;  %v1749_v33 = vor.u32 %v1748_v51, %v1745_v61  ;;  %v4226_v47 = vor.u32 %v1751_v57, %v1750_v0  ;;  %v4274_v42 = vld [vmem:[#allocation2 + $0x18] sm:$0xff] }
 0x196   : > { %v1295_v2 = vsel %vm5380_vm4, %v1287_v7, %v1228_v31  ;;  %v2130_v9 = vor.u32 %v4041_v11, %v5363_v37  ;;  %v1828_v55 = vrot.slane %v1826_v39, 5  ;;  %v1829_v3 = vshll.u32 %v4073_v34, 16 }
 0x197   : > { %v1296_v41 = vsel %vm5380_vm4, %v1288_v1, %v5431_v52  ;;  %v1303_v5 = vpack.c.bf16 %v1295_v2, %v1295_v2  ;;  %v1753_v63 = vsel %vm5382_vm10, %v1749_v33, %v4226_v47  ;;  %v1833_v35 = vrot.slane %v4183_v43, 5  ;;  %v1383_v52 = vld [vmem:[#allocation2 + $0x10] sm:$0xf8] }
 0x198   : > { %v1304_v48 = vpack.c.bf16 %v1296_v41, %v1296_v41  ;;  %1784 = vrot.lane.b32.xlu1 %v1753_v63, %s3296_s10  ;;  %v2135_v31 = vsel %vm1391_vm15, %v2130_v9, %v5432_v59  ;;  %v1834_v44 = vrot.slane %v4180_v17, 6  ;;  %v2187_v19 = vrot.slane %v4041_v11, 1  ;;  %v1388_v63 = vld [vmem:[#allocation2 + $0x18] sm:$0xfe] }
 0x199   : > { %v1346_v38 = vrot.slane %v1303_v5, 5  ;;  %2146 = vrot.lane.b32.xlu0 %v2135_v31, %s3284_s23  ;;  %v1831_v46 = vrot.slane %v1829_v3, 6  ;;  %v2188_v36 = vrot.slane %v4117_v45, 2  ;;  %v1594_v34 = vrot.slane %v4183_v43, 6 }
 0x19a   : > { %v1350_v22 = vrot.slane %v1304_v48, 7  ;;  %v4245_v16 = vor.u32 %v1834_v44, %v1833_v35  ;;  %v1595_v58 = vrot.slane %v4180_v17, 7  ;;  %v1406_v15 = vor.u32 %v3929_v54, %v1402_v10  ;;  %v4294_v48 = vld [vmem:[#allocation2 + $0x10] sm:$0xfc] }
 0x19b   : > { %vm5433_vm9 = vcmask 47107   ;;  %v1832_v4 = vor.u32 %v1831_v46, %v1828_v55  ;;  %v4252_v32 = vor.u32 %v2188_v36, %v2187_v19  ;;  %v1410_v56 = vrot.slane %v4180_v17, 1  ;;  %v1385_v55 = vld [vmem:[#allocation2 + $0x10] sm:$0xf0]  ;;  %v4319_v36 = vpop.permute.xlu1 %2148 }
 0x19c   : > { %1352 = vst.msk [vmem:[#allocation2 + $0x30] sm:$0x1e] %vm1331_vm14, %v1350_v22  ;;  %v1494_v61 = vrot.slane %v4183_v43, 1  ;;  %v5436_v50 = vor.u32 %v5434_v49, %v5435_v23  ;;  %v4263_v51 = vor.u32 %v1595_v58, %v1594_v34  ;;  %v1495_v10 = vrot.slane %v4180_v17, 2 }
 0x19d   : > { %1348 = vst.msk [vmem:[#allocation2 + $0x28] sm:$0x78] %vm5433_vm9, %v1346_v38  ;;  %v1836_v0 = vsel %vm5381_vm12, %v1832_v4, %v4245_v16  ;;  %v1411_v27 = vsel %vm1391_vm15, %v1406_v15, %v1410_v56  ;;  %v1667_v39 = vrot.slane %v4183_v43, 7  ;;  %v4282_v7 = vrot.slane %v4274_v42, 6 }
 0x19e   : > { %v2199_v14 = vsel %vm1481_vm1, %v4252_v32, %v5436_v50  ;;  %1862 = vrot.lane.b32.xlu1 %v1836_v0, %s5376_s11  ;;  %v1597_v57 = vsel %vm1581_vm0, %v3956_v21, %v4263_v51  ;;  %v4276_v1 = vor.u32 %v1495_v10, %v1494_v61  ;;  %v1463_v41 = vrot.slane %v4274_v42, 1  ;;  %v4334_v50 = vld [vmem:[#allocation2 + $0x20] sm:$0xff] }
 0x19f   : > { %2206 = vrot.lane.b32.xlu0 %v2199_v14, %s5375_s6  ;;  %v1668_v33 = vor.u32 %v1667_v39, %v4180_v17  ;;  %v2152_v2 = vrot.slane %v1383_v52, 1  ;;  %v4297_v9 = vrot.slane %v4274_v42, 2  ;;  %v4304_v3 = vshll.u32 %v4274_v42, 16 }
 0x1a0   : > { %v1497_v21 = vsel %vm1481_vm1, %v3964_v20, %v4276_v1  ;;  %v4307_v35 = vshrl.u32 %v4274_v42, 16  ;;  %v1896_v22 = vrot.slane %v4294_v48, 2  ;;  %v2175_v59 = vshrl.u32 %v1385_v55, 16 }
 0x1a1   : > { %v2153_v20 = vsel %vm5380_vm4, %v2152_v2, %v1463_v41  ;;  %v1669_v5 = vsel %vm5387_vm2, %v1664_v24, %v1668_v33  ;;  %v2178_v31 = vshll.u32 %v1385_v55, 16  ;;  %v2112_v44 = vshll.u32 %v1383_v52, 16 }
 0x1a2   : > { %1621 = vrot.lane.b32.xlu1 %v1597_v57, %s3289_s7  ;;  %v2292_v19 = vrot.slane %v1388_v63, 7  ;;  %v5359_v54 = vrot.slane %v4274_v42, 4  ;;  %v1897_v24 = vsel %vm5391_vm3, %v1896_v22, %v4297_v9  ;;  %v1498_v38 = vrot.slane %v4307_v35, 1  ;;  %v4346_v57 = vpop.permute.xlu1 %2172 }
 0x1a3   : > { %1441 = vrot.lane.b32.xlu0 %v1411_v27, %s3284_s23  ;;  %v1499_v46 = vrot.slane %v4304_v3, 2  ;;  %v2177_v34 = vrot.slane %v2175_v59, 1  ;;  %v2180_v58 = vrot.slane %v2178_v31, 2  ;;  %v2114_v15 = vrot.slane %v2112_v44, 1 }
 0x1a4   : > { %v1720_v4 = vsel %vm5385_vm5, %v1717_v29, %v5359_v54  ;;  %v1464_v61 = vsel %vm5380_vm4, %v1461_v53, %v1463_v41  ;;  %v4332_v49 = vrot.slane %v4304_v3, 1  ;;  %v2110_v23 = vshrl.u32 %v1383_v52, 16  ;;  %v4467_v37 = vld [vmem:[#allocation2 + $0x28] sm:$0x7f] }
 0x1a5   : > { %v4329_v0 = vor.u32 %v1499_v46, %v1498_v38  ;;  %v4339_v14 = vor.u32 %v2323_v26, %v4117_v45  ;;  %v2181_v29 = vor.u32 %v2180_v58, %v2177_v34  ;;  %v4344_v53 = vrot.slane %v4334_v50, 1 }
 0x1a6   : > { %2242 = vrot.lane.b32.xlu1 %v4282_v7, %s5374_s26  ;;  %v2115_v10 = vor.u32 %v2114_v15, %v2110_v23  ;;  %v4353_v11 = vshll.u32 %v4334_v50, 16  ;;  %v4356_v26 = vshrl.u32 %v4334_v50, 16  ;;  %v1414_v33 = vor.u32 %v4183_v43, %v1410_v56  ;;  %v1390_v56 = vld [vmem:[#allocation2 + $0x18] sm:$0xfc] }
 0x1a7   : > { %1517 = vrot.lane.b32.xlu0 %v1497_v21, %s5375_s6  ;;  %v2182_v27 = vsel %vm1481_vm1, %v2181_v29, %v4329_v0  ;;  %v4360_v21 = vpop.permute.xlu0 %2250  ;;  %v4366_v2 = vrot.slane %v4334_v50, 7  ;;  %v1837_v55 = vrot.slane %v4307_v35, 5  ;;  %v2256_v22 = vshll.u32 %v1388_v63, 16 }
 0x1a8   : > { %v2116_v52 = vsel %vm1391_vm15, %v2115_v10, %v4332_v49  ;;  %v1466_v59 = vsel %vm5380_vm4, %v1463_v41, %v4344_v53  ;;  %v1419_v31 = vsel %vm1391_vm15, %v1414_v33, %v4332_v49  ;;  %v1841_v44 = vrot.slane %v4356_v26, 5 }
 0x1a9   : > { %v1842_v17 = vrot.slane %v4353_v11, 6  ;;  %v2313_v34 = vshrl.u32 %v1390_v56, 16  ;;  %v2293_v41 = vsel %vm5384_vm6, %v2292_v19, %v4366_v2  ;;  %v1754_v23 = vrot.slane %v4307_v35, 4 }
 0x1aa   : > { %2162 = vrot.lane.b32.xlu1 %v2153_v20, %s3285_s25  ;;  %v1838_v20 = vrot.slane %v4304_v3, 6  ;;  %v1755_v29 = vrot.slane %v4304_v3, 5  ;;  %v1503_v13 = vrot.slane %v4353_v11, 2  ;;  %v1758_v6 = vrot.slane %v4356_v26, 4 }
 0x1ab   : > { %1689 = vrot.lane.b32.xlu0 %v1669_v5, %s3291_s9  ;;  %v2253_v5 = vshrl.u32 %v1388_v63, 16  ;;  %v2258_v63 = vrot.slane %v2256_v22, 7  ;;  %v4380_v58 = vpop.permute.xlu0 %2208  ;;  %v4384_v15 = vor.u32 %v1842_v17, %v1841_v44  ;;  %vm5472_vm11 = vcmask 48128  }
 0x1ac   : > { %v1839_v38 = vor.u32 %v1838_v20, %v1837_v55  ;;  %vm1927_vm13 = vcmask 97280   ;;  %vm1940_vm14 = vcmask 146432   ;;  %vm1979_vm9 = vcmask 293888  }
 0x1ad   : > { %v2255_v46 = vrot.slane %v2253_v5, 6  ;;  %v2316_v5 = vshll.u32 %v1390_v56, 16  ;;  %v4423_v56 = vsel %vm1481_vm1, %v4276_v1, %v4329_v0 }
 0x1ae   : > { %1902 = vrot.lane.b32.xlu1 %v1897_v24, %s3298_s13  ;;  %v4378_v24 = vpop.permute.xlu1 %2235  ;;  %v4397_v55 = vsel %vm5381_vm12, %v1839_v38, %v4384_v15 }
 0x1af   : > { %2300 = vrot.lane.b32.xlu0 %v2292_v19, %s3290_s8  ;;  %v2259_v10 = vor.u32 %v2258_v63, %v2255_v46  ;;  %v1756_v19 = vor.u32 %v1755_v29, %v1754_v23  ;;  %v4404_v22 = vpop.permute.xlu0 %2310  ;;  %v4414_v46 = vld [vmem:[#allocation2 + $0x30] sm:$0xff]  ;;  %v4418_v63 = vsel %vm5381_vm12, %v4245_v16, %v1839_v38  ;;  %v1422_v29 = vor.u32 %v4307_v35, %v4332_v49 }
 0x1b0   : > { %5438 = vst [vmem:[#allocation7_spill] sm:$0xff] %v4404_v22  ;;  %v5366_v1 = vrot.slane %v4414_v46, 1  ;;  %v4503_v43 = vshll.u32 %v4414_v46, 16 }
 0x1b2   : > { %1731 = vrot.lane.b32.xlu1 %v1720_v4, %s3293_s15  ;;  %v1602_v4 = vrot.slane %v4356_v26, 6  ;;  %v4393_v33 = vpop.permute.xlu1 %2288  ;;  %v2120_v22 = vrot.slane %v4503_v43, 1 }
 0x1b3   : > { %1473 = vrot.lane.b32.xlu0 %v1464_v61, %s3285_s25  ;;  %v1603_v61 = vrot.slane %v4353_v11, 7  ;;  %5437 = vst [vmem:[#allocation8_spill] sm:$0xff] %v4393_v33 }
 0x1b5   : > { %v4399_v20 = vor.u32 %v1603_v61, %v1602_v4  ;;  %v1598_v4 = vrot.slane %v4307_v35, 6  ;;  %v1599_v61 = vrot.slane %v4304_v3, 7 }
 0x1b6   : > { %2200 = vrot.lane.b32.xlu1 %v2182_v27, %s5375_s6  ;;  %v2315_v27 = vrot.slane %v2313_v34, 7  ;;  %v4429_v34 = vpop.permute.xlu1 %2344 }
 0x1b7   : > { %2138 = vrot.lane.b32.xlu0 %v2116_v52, %s3284_s23  ;;  %v5362_v52 = vrot.slane %v4356_v26, 7  ;;  %5439 = vst [vmem:[#allocation11_spill] sm:$0xff] %v4429_v34  ;;  %v1600_v54 = vor.u32 %v1599_v61, %v1598_v4  ;;  %v2159_v4 = vsel %vm5380_vm4, %v5366_v1, %v2158_v25 }
 0x1b8   : > { %v2318_v44 = vor.u32 %v2316_v5, %v2315_v27  ;;  %v1670_v5 = vrot.slane %v4307_v35, 7 }
 0x1b9   : > { %v1674_v17 = vor.u32 %v5362_v52, %v4353_v11  ;;  %v1759_v52 = vrot.slane %v4353_v11, 5  ;;  %v4491_v25 = vsel %vm1581_vm0, %v1600_v54, %v4399_v20 }
 0x1ba   : > { %1475 = vrot.lane.b32.xlu1 %v1466_v59, %s3285_s25  ;;  %v4408_v59 = vsel %vm5382_vm10, %v4226_v47, %v1756_v19  ;;  %v2260_v47 = vsel %vm1581_vm0, %v2259_v10, %v4399_v20  ;;  %v1671_v35 = vor.u32 %v1670_v5, %v4304_v3 }
 0x1bb   : > { %1443 = vrot.lane.b32.xlu0 %v1419_v31, %s3284_s23  ;;  %v5364_v31 = vrot.slane %v4334_v50, 6  ;;  %v2319_v23 = vsel %vm5387_vm2, %v2315_v27, %v1674_v17  ;;  %v4457_v27 = vpop.permute.xlu1 %1700  ;;  %v1760_v18 = vor.u32 %v1759_v52, %v1758_v6 }
 0x1bc   : > { %5441 = vst [vmem:[#allocation9_spill] sm:$0xff] %v4457_v27  ;;  %v1432_v27 = vshll.u32 %v4467_v37, 16 }
 0x1bd   : > { %v4437_v16 = vsel %vm5386_vm7, %v4282_v7, %v5364_v31  ;;  %v4487_v31 = vsel %vm5387_vm2, %v1667_v39, %v1671_v35  ;;  %v4506_v6 = vsel %vm5382_vm10, %v1756_v19, %v1760_v18 }
 0x1be   : > { %2302 = vrot.lane.b32.xlu1 %v2293_v41, %s3290_s8 }
 0x1bf   : > { %2223 = vrot.lane.b32.xlu0 %v1839_v38, %s3287_s30  ;;  %v4440_v38 = vld [vmem:[#allocation2 + $0x28] sm:$0xff] }
 0x1c0   : > { %v4462_v12 = vshrl.u32 %v4440_v38, 16  ;;  %v4475_v61 = vshll.u32 %v4440_v38, 16  ;;  %v2154_v52 = vrot.slane %v4440_v38, 1 }
 0x1c2   : > { %2225 = vrot.lane.b32.xlu1 %v4397_v55, %s3287_s30  ;;  %v1762_v39 = vrot.slane %v4462_v12, 4  ;;  %v1607_v34 = vrot.slane %v4475_v61, 7 }
 0x1c3   : > { %2278 = vrot.lane.b32.xlu0 %v2259_v10, %s3289_s7  ;;  %v4431_v41 = vpop.permute.xlu0 %1569  ;;  %v5368_v10 = vrot.slane %v4353_v11, 1 }
 0x1c4   : > { %5440 = vst [vmem:[#allocation10_spill] sm:$0xff] %v4431_v41 }
 0x1c5   : > { %v1427_v3 = vsel %vm1391_vm15, %v1422_v29, %v5368_v10  ;;  %v4516_v29 = vpop.permute.xlu1 %1469 }
 0x1c6   : > { %2280 = vrot.lane.b32.xlu1 %v2260_v47, %s3289_s7  ;;  %v1502_v47 = vrot.slane %v4356_v26, 1  ;;  %5445 = vst [vmem:[#allocation14_spill] sm:$0xff] %v4516_v29 }
 0x1c7   : > { %2334 = vrot.lane.b32.xlu0 %v2318_v44, %s3291_s9  ;;  %v4450_v44 = vshrl.u32 %v4414_v46, 16  ;;  %v4459_v49 = vpop.permute.xlu0 %1647 }
 0x1c8   : > { %5442 = vst [vmem:[#allocation6_spill] sm:$0xff] %v4459_v49  ;;  %v4494_v40 = vor.u32 %v1503_v13, %v1502_v47  ;;  %v1763_v13 = vrot.slane %v4475_v61, 5  ;;  %v4523_v47 = vrot.slane %v1432_v27, 1  ;;  %v2155_v49 = vsel %vm5380_vm4, %v4344_v53, %v2154_v52 }
 0x1c9   : > { %v2320_v1 = vrot.slane %v4450_v44, 7 }
 0x1ca   : > { %2336 = vrot.lane.b32.xlu1 %v2319_v23, %s3291_s9  ;;  %v4479_v23 = vsel %vm1581_vm0, %v4263_v51, %v1600_v54  ;;  %v4497_v51 = vsel %vm5387_vm2, %v1670_v5, %v1674_v17  ;;  %v4514_v17 = vrot.slane %v4414_v46, 6  ;;  %v1505_v19 = vsel %vm1481_vm1, %v4329_v0, %v4494_v40 }
 0x1cb   : > { %1575 = vrot.lane.b32.xlu0 %v4437_v16, %s5374_s26  ;;  %v4509_v54 = vpop.permute.xlu0 %1439  ;;  %v2325_v5 = vsel %vm5387_vm2, %v2320_v1, %v4339_v14  ;;  %v1764_v35 = vor.u32 %v1763_v13, %v1762_v39  ;;  %v1436_v14 = vshrl.u32 %v4467_v37, 16  ;;  %v2294_v0 = vrot.slane %v4414_v46, 7 }
 0x1cc   : > { %5443 = vst [vmem:[#allocation12_spill] sm:$0xff] %v4509_v54  ;;  %5444 = vst [vmem:[#allocation13_spill] sm:$0xff] %v4514_v17  ;;  %v5447_v39 = vrot.slane %v3994_v28, 6  ;;  %v5451_v54 = vrot.slane %v3994_v28, 7 }
 0x1cd   : > { %v4530_v10 = vsel %vm5382_vm10, %v1760_v18, %v1764_v35  ;;  %v4547_v41 = vor.u32 %v1436_v14, %v4523_v47 }
 0x1ce   : > { %2168 = vrot.lane.b32.xlu1 %v2159_v4, %s3285_s25  ;;  %v1769_v4 = vrot.slane %v4450_v44, 4  ;;  %v2239_v13 = vsel %vm5386_vm7, %v4514_v17, %v5447_v39  ;;  %v5450_v39 = vrot.slane %v4414_v46, 1 }
 0x1cf   : > { %1445 = vrot.lane.b32.xlu0 %v1427_v3, %s3284_s23  ;;  %v1772_v3 = vrot.slane %v4503_v43, 5 }
 0x1d0   : > { %v2157_v29 = vsel %vm5380_vm4, %v2154_v52, %v5450_v39  ;;  %v4575_v52 = vrot.slane %v4440_v38, 7  ;;  %v2321_v39 = vor.u32 %v2320_v1, %v4503_v43 }
 0x1d1   : > { %v4536_v27 = vor.u32 %v1772_v3, %v1769_v4  ;;  %v4551_v4 = vpop.permute.xlu1 %1541 }
 0x1d2   : > { %2340 = vrot.lane.b32.xlu1 %v2325_v5, %s3291_s9  ;;  %v1849_v5 = vrot.slane %v4450_v44, 5  ;;  %5449 = vst [vmem:[#allocation17_spill] sm:$0xff] %v4551_v4  ;;  %v2262_v4 = vrot.slane %v4503_v43, 7  ;;  %5454 = vst [vmem:[#allocation20_spill] sm:$0xff] %v4575_v52 }
 0x1d3   : > { %1521 = vrot.lane.b32.xlu0 %v1505_v19, %s5375_s6  ;;  %5446 = vst [vmem:[#allocation15_spill] sm:$0xff] %v4536_v27  ;;  %v1850_v19 = vrot.slane %v4503_v43, 6  ;;  %v4544_v18 = vpop.permute.xlu0 %1515  ;;  %v4555_v3 = vsel %vm5382_vm10, %v1764_v35, %v4536_v27  ;;  %vm5475_vm10 = vcmask 48128  }
 0x1d4   : > { %5448 = vst [vmem:[#allocation16_spill] sm:$0xff] %v4544_v18  ;;  %v2297_v18 = vsel %vm5384_vm6, %v2294_v0, %v5451_v54 }
 0x1d5   : > { %v4563_v14 = vor.u32 %v1850_v19, %v1849_v5  ;;  %v4577_v28 = vpop.permute.xlu1 %1619  ;;  %v5456_v5 = vrot.slane %v4334_v50, 6 }
 0x1d6   : > { %2164 = vrot.lane.b32.xlu1 %v2155_v49, %s3285_s25  ;;  %v4566_v49 = vrot.slane %v4440_v38, 6  ;;  %5455 = vst [vmem:[#allocation21_spill] sm:$0xff] %v4577_v28 }
 0x1d7   : > { %2246 = vrot.lane.b32.xlu0 %v2239_v13, %s5374_s26  ;;  %v2261_v13 = vrot.slane %v4450_v44, 6  ;;  %v4572_v35 = vpop.permute.xlu0 %1687  ;;  %v2213_v54 = vsel %vm5381_vm12, %v4563_v14, %v4152_v60 }
 0x1d8   : > { %5452 = vst [vmem:[#allocation18_spill] sm:$0xff] %v4566_v49  ;;  %5453 = vst [vmem:[#allocation19_spill] sm:$0xff] %v4572_v35  ;;  %v4586_v19 = vsel %vm5386_vm7, %v5456_v5, %v4566_v49  ;;  %v4600_v5 = vrot.slane %v4462_v12, 7  ;;  %v4611_v1 = vsel %vm5386_vm7, %v4566_v49, %v4514_v17  ;;  %v2295_v17 = vsel %vm5384_vm6, %v4575_v52, %v2294_v0 }
 0x1d9   : > { %v4595_v35 = vpop.permute.xlu1 %1702  ;;  %v2183_v49 = vrot.slane %v4450_v44, 1 }
 0x1da   : > { %2166 = vrot.lane.b32.xlu1 %v2157_v29, %s3285_s25  ;;  %v2263_v29 = vor.u32 %v2262_v4, %v2261_v13  ;;  %5457 = vst [vmem:[#allocation22_spill] sm:$0xff] %v4600_v5  ;;  %v1845_v4 = vrot.slane %v4462_v12, 5  ;;  %v1846_v13 = vrot.slane %v4475_v61, 6  ;;  %v2322_v28 = vsel %vm5387_vm2, %v4600_v5, %v2321_v39 }
 0x1db   : > { %2306 = vrot.lane.b32.xlu0 %v2297_v18, %s3290_s8  ;;  %v1644_v18 = vsel %vm5384_vm6, %v4366_v2, %v4575_v52  ;;  %v1677_v0 = vor.u32 %v4600_v5, %v4475_v61 }
 0x1dc   : > { %v2268_v60 = vsel %vm1581_vm0, %v2263_v29, %v4186_v62  ;;  %v1606_v62 = vrot.slane %v4462_v12, 6  ;;  %v1847_v27 = vor.u32 %v1846_v13, %v1845_v4  ;;  %v2184_v13 = vrot.slane %v4503_v43, 2 }
 0x1de   : > { %2231 = vrot.lane.b32.xlu1 %v2213_v54, %s3287_s30  ;;  %v4604_v54 = vpop.permute.xlu0 %2248  ;;  %v4630_v39 = vsel %vm5381_vm12, %v4384_v15, %v1847_v27  ;;  %v4632_v4 = vor.u32 %v1607_v34, %v1606_v62  ;;  %v5458_v34 = vrot.slane %v4117_v45, 1  ;;  %v2185_v62 = vor.u32 %v2184_v13, %v2183_v49 }
 0x1df   : > { %1577 = vrot.lane.b32.xlu0 %v4586_v19, %s5374_s26  ;;  %v1509_v45 = vrot.slane %v4462_v12, 1  ;;  %v5461_v13 = vrot.slane %v4353_v11, 1  ;;  %v4683_v11 = vsel %vm5381_vm12, %v1847_v27, %v4563_v14  ;;  %v1802_v27 = vrot.slane %v4274_v42, 5 }
 0x1e0   : > { %v1609_v15 = vsel %vm1581_vm0, %v4399_v20, %v4632_v4  ;;  %v2190_v33 = vsel %vm1481_vm1, %v2185_v62, %v4252_v32  ;;  %v2117_v20 = vrot.slane %v4475_v61, 1  ;;  %vm2005_vm12 = vcmask 392192  }
 0x1e2   : > { %2284 = vrot.lane.b32.xlu1 %v2268_v60, %s3289_s7  ;;  %v4623_v60 = vpop.permute.xlu0 %2308 }
 0x1e3   : > { %1655 = vrot.lane.b32.xlu0 %v1644_v18, %s3290_s8  ;;  %v4621_v18 = vpop.permute.xlu1 %2170 }
 0x1e6   : > { %2338 = vrot.lane.b32.xlu1 %v2322_v28, %s3291_s9  ;;  %v2122_v28 = vor.u32 %v2120_v22, %v4450_v44  ;;  %v4649_v43 = vpop.permute.xlu0 %1729 }
 0x1e7   : > { %2244 = vrot.lane.b32.xlu0 %v4611_v1, %s5374_s26  ;;  %v4641_v52 = vpop.permute.xlu1 %2342  ;;  %5459 = vst [vmem:[#allocation23_spill] sm:$0xff] %v4649_v43 }
 0x1e8   : > { %v2127_v44 = vsel %vm1391_vm15, %v2122_v28, %v5458_v34  ;;  %v1512_v28 = vrot.slane %v4475_v61, 2  ;;  %v2119_v61 = vor.u32 %v2117_v20, %v4462_v12 }
 0x1ea   : > { %2227 = vrot.lane.b32.xlu1 %v4630_v39, %s3287_s30  ;;  %v4674_v34 = vor.u32 %v1512_v28, %v1509_v45  ;;  %v1562_v28 = vsel %vm5386_vm7, %v4114_v30, %v4282_v7  ;;  %v1721_v30 = vrot.slane %v4334_v50, 4  ;;  %vm5477_vm7 = vmmov %vm5475_vm10 }
 0x1eb   : > { %2304 = vrot.lane.b32.xlu0 %v2295_v17, %s3290_s8  ;;  %v5460_v17 = vrot.slane %v4356_v26, 7  ;;  %v4663_v49 = vpop.permute.xlu1 %1471 }
 0x1ec   : > { %v2186_v45 = vsel %vm1481_vm1, %v4674_v34, %v2185_v62  ;;  %v5465_v62 = vrot.slane %v3992_v8, 2 }
 0x1ed   : > { %v1678_v5 = vsel %vm5387_vm2, %v5460_v17, %v1677_v0  ;;  %v4670_v0 = vpop.permute.xlu0 %1812  ;;  %v5464_v17 = vrot.slane %v3992_v8, 5  ;;  %vm5390_vm2 = vcmask 687104  }
 0x1ee   : > { %1627 = vrot.lane.b32.xlu1 %v1609_v15, %s3289_s7  ;;  %v4668_v15 = vor.u32 %v4356_v26, %v5461_v13  ;;  %5462 = vst [vmem:[#allocation24_spill] sm:$0xff] %v4670_v0  ;;  %v1514_v26 = vsel %vm1481_vm1, %v4494_v40, %v4674_v34  ;;  %v1536_v13 = vsel %vm5391_vm3, %v5465_v62, %v4297_v9  ;;  %vm1966_vm1 = vcmask 244736  }
 0x1ef   : > { %2144 = vrot.lane.b32.xlu0 %v2127_v44, %s3284_s23  ;;  %v2121_v44 = vsel %vm1391_vm15, %v2119_v61, %v2120_v22 }
 0x1f0   : > { %v2118_v32 = vsel %vm1391_vm15, %v4668_v15, %v2117_v20  ;;  %v1803_v20 = vsel %vm5383_vm8, %v5464_v17, %v1802_v27  ;;  %v1639_v17 = vrot.slane %v4274_v42, 7 }
 0x1f2   : > { %1695 = vrot.lane.b32.xlu1 %v1678_v5, %s3291_s9  ;;  %v4689_v5 = vpop.permute.xlu0 %1571 }
 0x1f3   : > { %2204 = vrot.lane.b32.xlu0 %v2190_v33, %s5375_s6  ;;  %v4679_v33 = vpop.permute.xlu1 %1543 }
 0x1f6   : > { %1786 = vrot.lane.b32.xlu1 %v4408_v59, %s3296_s10  ;;  %v2264_v59 = vsel %vm1581_vm0, %v4632_v4, %v2263_v29  ;;  %v4702_v12 = vpop.permute.xlu0 %1882 }
 0x1f7   : > { %2140 = vrot.lane.b32.xlu0 %v2118_v32, %s3284_s23  ;;  %5463 = vst [vmem:[#allocation25_spill] sm:$0xff] %v4702_v12  ;;  %v1537_v32 = vrot.slane %v4334_v50, 2  ;;  %v5471_v12 = vmov 0  }
 0x1fa   : > { %2229 = vrot.lane.b32.xlu1 %v4683_v11, %s3287_s30 }
 0x1fb   : > { %1523 = vrot.lane.b32.xlu0 %v1514_v26, %s5375_s6 }
 0x1fe   : > { %2282 = vrot.lane.b32.xlu1 %v2264_v59, %s3289_s7  ;;  %v4700_v40 = vpop.permute.xlu1 %2233  ;;  %v5468_v59 = vrot.slane %v4274_v42, 4 }
 0x1ff   : > { %2142 = vrot.lane.b32.xlu0 %v2121_v44, %s3284_s23 }
 0x200   : > { %v1722_v44 = vsel %vm5385_vm5, %v5468_v59, %v1721_v30 }
 0x202   : > { %1814 = vrot.lane.b32.xlu1 %v1803_v20, %s3294_s16  ;;  %v4713_v29 = vpop.permute.xlu0 %1649 }
 0x203   : > { %2202 = vrot.lane.b32.xlu0 %v2186_v45, %s5375_s6  ;;  %v5469_v45 = vrot.slane %v3992_v8, 7  ;;  %v4769_v8 = vrot.slane %v4440_v38, 2 }
 0x205   : > { %v4711_v22 = vpop.permute.xlu1 %2286 }
 0x206   : > { %1864 = vrot.lane.b32.xlu1 %v4418_v63, %s5376_s11 }
 0x207   : > { %1519 = vrot.lane.b32.xlu0 %v4423_v56, %s5375_s6  ;;  %v1538_v56 = vsel %vm5391_vm3, %v4297_v9, %v1537_v32  ;;  %s5476_s6 = smov 78  }
 0x20a   : > { %1884 = vrot.lane.b32.xlu1 %v1562_v28, %s3295_s17  ;;  %v4728_v26 = vpop.permute.xlu1 %1784 }
 0x20b   : > { %5466 = vst [vmem:[#allocation26_spill] sm:$0xff] %v4728_v26  ;;  %1545 = vrot.lane.b32.xlu0 %v1536_v13, %s3287_s30  ;;  %v4731_v63 = vpop.permute.xlu0 %2146  ;;  %v1642_v26 = vsel %vm5384_vm6, %v1639_v17, %v4366_v2  ;;  %v3205_v2 = vld [vmem:[%s5338_s3 + $0x28] sm:$0xff]  }
 0x20e   : > { %1904 = vrot.lane.b32.xlu1 %v1538_v56, %s3298_s13 }
 0x20f   : > { %1573 = vrot.lane.b32.xlu0 %v1562_v28, %s5374_s26  ;;  %v1640_v28 = vsel %vm5384_vm6, %v5469_v45, %v1639_v17  ;;  %v5378_v45 = vrot.slane %v4334_v50, 5  ;;  %s3299_s26 = smov 96   ;;  %vm2031_vm6 = vcmask 490496  }
 0x210   : > { %v4738_v7 = vpop.permute.xlu1 %1862 }
 0x211   : > { %5467 = vst [vmem:[#allocation27_spill] sm:$0xff] %v4738_v7  ;;  %v4740_v61 = vpop.permute.xlu0 %2206  ;;  %v5379_v7 = vrot.slane %v4440_v38, 4 }
 0x212   : > { %1733 = vrot.lane.b32.xlu1 %v1722_v44, %s3293_s15 }
 0x213   : > { %1623 = vrot.lane.b32.xlu0 %v4479_v23, %s3289_s7 }
 0x214   : > { %v4749_v9 = vpop.permute.xlu1 %1621 }
 0x215   : > { %v4751_v20 = vpop.permute.xlu0 %1441 }
 0x216   : > { %1547 = vrot.lane.b32.xlu1 %v1538_v56, %s3287_s30 }
 0x217   : > { %1651 = vrot.lane.b32.xlu0 %v1640_v28, %s3290_s8 }
 0x218   : > { %v4758_v62 = vpop.permute.xlu1 %2242 }
 0x219   : > { %v4760_v13 = vpop.permute.xlu0 %1517 }
 0x21a   : > { %1866 = vrot.lane.b32.xlu1 %v4397_v55, %s5376_s11  ;;  %v3200_v55 = vld [vmem:[%s5338_s3] sm:$0xff]  }
 0x21b   : > { %1691 = vrot.lane.b32.xlu0 %v4487_v31, %s3291_s9  ;;  %v1540_v31 = vsel %vm5391_vm3, %v1537_v32, %v4769_v8  ;;  %2630 = vmatpush1.bf16.msra.mxu1 %v3200_v55  ;;  %v1805_v32 = vsel %vm5383_vm8, %v1802_v27, %v5378_v45  ;;  %v1724_v27 = vsel %vm5385_vm5, %v1721_v30, %v5379_v7 }
 0x21c   : > { %v2163_v23 = vpop.permute.xlu1 %2162  ;;  %2631 = vmatprep.subr.bf16.mxu1 %v5471_v12 }
 0x21d   : > { %v4766_v59 = vpop.permute.xlu0 %1689 }
 0x21e   : > { %1886 = vrot.lane.b32.xlu1 %v4437_v16, %s3295_s17  ;;  %v3201_v16 = vld [vmem:[%s5338_s3 + $0x8] sm:$0xff]  }
 0x21f   : > { %1704 = vrot.lane.b32.xlu0 %v4274_v42, %s3292_s12  ;;  %2632 = vmatpush1.bf16.msra.mxu1 %v3201_v16  ;;  %v3203_v16 = vld [vmem:[%s5338_s3 + $0x18] sm:$0xff]  }
 0x220   : > { %v4775_v56 = vpop.permute.xlu1 %1902  ;;  %2633 = vmatprep.subr.bf16.mxu1 %v5471_v12 }
 0x221   : > { %5470 = vst [vmem:[#allocation28_spill] sm:$0xff] %v4775_v56  ;;  %v4777_v44 = vpop.permute.xlu0 %2300 }
 0x222   : > { %1906 = vrot.lane.b32.xlu1 %v1540_v31, %s3298_s13 }
 0x223   : > { %1788 = vrot.lane.b32.xlu0 %v4506_v6, %s3296_s10  ;;  %v3202_v6 = vld [vmem:[%s5338_s3 + $0x10] sm:$0xff]  }
 0x224   : > { %v4791_v28 = vpop.permute.xlu1 %1731  ;;  %2634 = vmatpush1.bf16.msra.mxu1 %v3202_v6  ;;  %v3204_v6 = vld [vmem:[%s5338_s3 + $0x20] sm:$0xff]  }
 0x225   : > { %v4793_v56 = vpop.permute.xlu0 %1473  ;;  %2635 = vmatprep.subr.bf16.mxu1 %v5471_v12 }
 0x226   : > { %1706 = vrot.lane.b32.xlu1 %v4334_v50, %s3292_s12 }
 0x227   : > { %1816 = vrot.lane.b32.xlu0 %v1805_v32, %s3294_s16 }
 0x228   : > { %v2201_v55 = vpop.permute.xlu1 %2200  ;;  %2636 = vmatpush1.bf16.msra.mxu1 %v3203_v16  ;;  %v1467_v16 = vrot.slane %v4467_v37, 1 }
 0x229   : > { %v2139_v0 = vpop.permute.xlu0 %2138  ;;  %2637 = vmatprep.subr.bf16.mxu1 %v5471_v12 }
 0x22a   : > { %1735 = vrot.lane.b32.xlu1 %v1724_v27, %s3293_s15  ;;  %v1435_v27 = vsel %vm1391_vm15, %v4668_v15, %v4523_v47  ;;  %v1806_v47 = vrot.slane %v4440_v38, 5  ;;  %vm1953_vm15 = vcmask 195584  }
 0x22b   : > { %1625 = vrot.lane.b32.xlu0 %v4491_v25, %s3289_s7 }
 0x22c   : > { %v1476_v32 = vpop.permute.xlu1 %1475  ;;  %2638 = vmatpush1.bf16.msra.mxu1 %v3204_v6 }
 0x22d   : > { %v4816_v45 = vpop.permute.xlu0 %1443  ;;  %2639 = vmatprep.subr.bf16.mxu1 %v5471_v12 }
 0x22e   : > { %1549 = vrot.lane.b32.xlu1 %v1540_v31, %s3287_s30  ;;  %v2348_v31 = vsel %vm5472_vm11, %v4294_v48, %v2139_v0  ;;  %v1468_v48 = vsel %vm5380_vm4, %v4344_v53, %v1467_v16  ;;  %v3207_v0 = vld [vmem:[%s5338_s3 + $0x38] sm:$0xff]   ;;  %v5473_v53 = vrot.slane %v4334_v50, 5  ;;  %vm1992_vm4 = vcmask 343040  }
 0x22f   : > { %1653 = vrot.lane.b32.xlu0 %v1642_v26, %s3290_s8  ;;  %v2360_v6 = vsel %vm1927_vm13, %v2348_v31, %v2163_v23 }
 0x230   : > { %v4823_v30 = vpop.permute.xlu1 %2302  ;;  %2640 = vmatpush1.bf16.msra.mxu1 %v3205_v2  ;;  %v2372_v15 = vsel %vm1940_vm14, %v2360_v6, %v2201_v55 }
 0x231   : > { %v2224_v25 = vpop.permute.xlu0 %2223  ;;  %2641 = vmatprep.subr.bf16.mxu1 %v5471_v12 }
 0x232   : > { %v2383_v23 = vsel %vm1953_vm15, %v2372_v15, %v2224_v25  ;;  %v3208_v25 = vld [vmem:[%s5338_s3 + $0x40] sm:$0xff]   ;;  %v3209_v15 = vld [vmem:[%s5338_s3 + $0x48] ss:$0 sps:$4 sm:$0x77]  }
 0x233   : > { %1693 = vrot.lane.b32.xlu0 %v4497_v51, %s3291_s9  ;;  %v3206_v51 = vld [vmem:[%s5338_s3 + $0x30] sm:$0xff]   ;;  %v2397_v55 = vsel %vm1966_vm1, %v2383_v23, %v4758_v62 }
 0x234   : > { %v2226_v17 = vpop.permute.xlu1 %2225  ;;  %2642 = vmatpush1.bf16.msra.mxu1 %v3206_v51 }
 0x235   : > { %v2279_v26 = vpop.permute.xlu0 %2278  ;;  %2643 = vmatprep.subr.bf16.mxu1 %v5471_v12 }
 0x236   : > { %v2409_v51 = vsel %vm1979_vm9, %v2397_v55, %v2279_v26 }
 0x237   : > { %1447 = vrot.lane.b32.xlu0 %v1435_v27, %s3284_s23  ;;  %v1807_v27 = vsel %vm5383_vm8, %v5473_v53, %v1806_v47  ;;  %v2422_v62 = vsel %vm1992_vm4, %v2409_v51, %v4777_v44 }
 0x238   : > { %v2281_v7 = vpop.permute.xlu1 %2280  ;;  %2644 = vmatpush1.bf16.msra.mxu1 %v3207_v0 }
 0x239   : > { %v2335_v43 = vpop.permute.xlu0 %2334  ;;  %2645 = vmatprep.subr.bf16.mxu1 %v5471_v12 }
 0x23a   : > { %v2435_v26 = vsel %vm2005_vm12, %v2422_v62, %v2335_v43 }
 0x23b   : > { %1477 = vrot.lane.b32.xlu0 %v1468_v48, %s3285_s25  ;;  %v2448_v44 = vshrl.u32 %v2435_v26, 16  ;;  %v2451_v43 = vshll.u32 %v2435_v26, 16 }
 0x23c   : > { %v2337_v2 = vpop.permute.xlu1 %2336  ;;  %2646 = vmatpush1.bf16.msra.mxu1 %v3208_v25 }
 0x23d   : > { %v4858_v31 = vpop.permute.xlu0 %1575  ;;  %2647 = vmatprep.subr.bf16.mxu1 %v5471_v12  ;;  %v2450_v26 = vrot.slane %v2448_v44, 2 }
 0x23f   : > { %1818 = vrot.lane.b32.xlu0 %v1807_v27, %s3294_s16 }
 0x240   : > { %v4871_v6 = vpop.permute.xlu1 %2168 }
 0x241   : > { %v1446_v48 = vpop.permute.xlu0 %1445 }
 0x242   : > { %v1921_v53 = vsel %vm5472_vm11, %v4274_v42, %v1446_v48  ;;  %v2627_v42 = vsel %vm5383_vm8, %v3209_v15, 0  ;;  %vm2447_vm11 = vsmask.f32 5376 }
 0x243   : > { %1790 = vrot.lane.b32.xlu0 %v4530_v10, %s3296_s10  ;;  %v1935_v23 = vsel %vm1927_vm13, %v1921_v53, %v1476_v32  ;;  %v1725_v32 = vrot.slane %v4414_v46, 4  ;;  %2648 = vmatpush1.bf16.msra.mxu1 %v2627_v42  ;;  %v1808_v53 = vrot.slane %v4414_v46, 5 }
 0x244   : > { %v4884_v0 = vpop.permute.xlu1 %2340 }
 0x245   : > { %v1522_v27 = vpop.permute.xlu0 %1521 }
 0x246   : > { %v4890_v55 = vsel %vm1940_vm14, %v1935_v23, %v1522_v27 }
 0x247   : > { %v2385_v10 = vsel %vm1953_vm15, %v4890_v55, %v2226_v17  ;;  %1888 = vrot.lane.b32.xlu0 %v4586_v19, %s3295_s17  ;;  %v5474_v19 = vrot.slane %v4440_v38, 4 }
 0x248   : > { %v2398_v25 = vsel %vm1966_vm1, %v2385_v10, %v4858_v31  ;;  %v4900_v51 = vpop.permute.xlu1 %2164 }
 0x249   : > { %v2411_v12 = vsel %vm1979_vm9, %v2398_v25, %v2281_v7  ;;  %v2247_v48 = vpop.permute.xlu0 %2246  ;;  %v1726_v17 = vsel %vm5385_vm5, %v5474_v19, %v1725_v32  ;;  %v2453_v7 = vrot.slane %v2451_v43, 3  ;;  %v3211_v43 = vld [vmem:[#allocation2 + $0x8] sm:$0xff]  ;;  %vm5392_vm5 = vcmask 539648  }
 0x24a   : > { %v2424_v15 = vsel %vm1992_vm4, %v2411_v12, %v4823_v30  ;;  %v1809_v30 = vsel %vm5383_vm8, %v1806_v47, %v1808_v53  ;;  %vm2018_vm8 = vcmask 441344  }
 0x24b   : > { %1737 = vrot.lane.b32.xlu0 %v1726_v17, %s3293_s15  ;;  %v2437_v62 = vsel %vm2005_vm12, %v2424_v15, %v2337_v2  ;;  %v2454_v19 = vor.u32 %v2453_v7, %v2450_v26  ;;  %v1917_v15 = vsel %vm5475_vm10, %v3211_v43, %v4751_v20 }
 0x24c   : > { %v2455_v23 = vshrl.u32 %v2437_v62, 16  ;;  %v2458_v27 = vshll.u32 %v2437_v62, 16  ;;  %v4912_v42 = vpop.permute.xlu1 %2166  ;;  %v1931_v47 = vsel %vm1927_vm13, %v1917_v15, %v4663_v49 }
 0x24d   : > { %v4914_v10 = vpop.permute.xlu0 %2306 }
 0x24e   : > { %v2457_v25 = vrot.slane %v2455_v23, 2  ;;  %v2460_v12 = vrot.slane %v2458_v27, 3  ;;  %v1944_v23 = vsel %vm1940_vm14, %v1931_v47, %v4760_v13 }
 0x24f   : > { %1820 = vrot.lane.b32.xlu0 %v1809_v30, %s3294_s16  ;;  %v1957_v20 = vsel %vm1953_vm15, %v1944_v23, %v4679_v33 }
 0x250   : > { %v4920_v17 = vor.u32 %v2460_v12, %v2457_v25  ;;  %v2232_v2 = vpop.permute.xlu1 %2231  ;;  %v1970_v25 = vsel %vm1966_vm1, %v1957_v20, %v4689_v5 }
 0x251   : > { %v4922_v44 = vpop.permute.xlu0 %1577 }
 0x252   : > { %v2462_v62 = vsel %vm2447_vm11, %v2454_v19, %v4920_v17  ;;  %v1983_v19 = vsel %vm1979_vm9, %v1970_v25, %v4749_v9 }
 0x253   : > { %2499 = vrot.lane.b32.xlu1 %v2462_v62, %s3299_s26 }
 0x254   : > { %v2285_v26 = vpop.permute.xlu1 %2284 }
 0x255   : > { %v4931_v7 = vpop.permute.xlu0 %1655 }
 0x257   : > { %1868 = vrot.lane.b32.xlu1 %v4630_v39, %s5476_s6  ;;  %v1996_v39 = vsel %vm1992_vm4, %v1983_v19, %v4713_v29  ;;  %v4965_v19 = vld [vmem:[#allocation2 + $0x38] sm:$0xff] }
 0x258   : > { %v4939_v27 = vpop.permute.xlu1 %2338  ;;  %v2009_v15 = vsel %vm2005_vm12, %v1996_v39, %v4766_v59 }
 0x259   : > { %v2245_v30 = vpop.permute.xlu0 %2244  ;;  %v2022_v23 = vsel %vm2018_vm8, %v2009_v15, %v4595_v35 }
 0x25a   : > { %v2035_v29 = vsel %vm2031_vm6, %v2022_v23, %v4791_v28 }
 0x25c   : > { %v2228_v12 = vpop.permute.xlu1 %2227 }
 0x25d   : > { %v4943_v49 = vpop.permute.xlu0 %2304 }
 0x260   : > { %v4947_v43 = vpop.permute.xlu1 %1627 }
 0x261   : > { %v2145_v13 = vpop.permute.xlu0 %2144 }
 0x262   : > { %v2354_v33 = vsel %vm5475_vm10, %v4414_v46, %v2145_v13 }
 0x263   : > { %v2366_v5 = vsel %vm1927_vm13, %v2354_v33, %v4871_v6  ;;  %v2356_v6 = vsel %vm5475_vm10, %v4965_v19, %v4731_v63  ;;  %vm2057_vm10 = vcmask 588800  }
 0x264   : > { %v4955_v62 = vpop.permute.xlu1 %1695  ;;  %v2368_v28 = vsel %vm1927_vm13, %v2356_v6, %v4621_v18 }
 0x265   : > { %v2205_v47 = vpop.permute.xlu0 %2204 }
 0x266   : > { %v2377_v9 = vsel %vm1940_vm14, %v2366_v5, %v2205_v47  ;;  %v2379_v5 = vsel %vm1940_vm14, %v2368_v28, %v4740_v61 }
 0x267   : > { %v2391_v20 = vsel %vm1953_vm15, %v2377_v9, %v2232_v2  ;;  %v2393_v18 = vsel %vm1953_vm15, %v2379_v5, %v4700_v40 }
 0x268   : > { %v1787_v59 = vpop.permute.xlu1 %1786  ;;  %v2403_v35 = vsel %vm1966_vm1, %v2391_v20, %v2247_v48  ;;  %v2405_v40 = vsel %vm1966_vm1, %v2393_v18, %v4604_v54 }
 0x269   : > { %v2141_v25 = vpop.permute.xlu0 %2140  ;;  %v2048_v13 = vsel %vm5392_vm5, %v2035_v29, %v1787_v59  ;;  %v2416_v47 = vsel %vm1979_vm9, %v2403_v35, %v2285_v26  ;;  %v2418_v54 = vsel %vm1979_vm9, %v2405_v40, %v4711_v22 }
 0x26a   : > { %v2350_v39 = vsel %vm5477_vm7, %v4334_v50, %v2141_v25  ;;  %v2429_v61 = vsel %vm1992_vm4, %v2416_v47, %v4914_v10 }
 0x26b   : > { %v2362_v2 = vsel %vm1927_vm13, %v2350_v39, %v4900_v51  ;;  %v2442_v39 = vsel %vm2005_vm12, %v2429_v61, %v4884_v0 }
 0x26c   : > { %v2230_v33 = vpop.permute.xlu1 %2229 }
 0x26d   : > { %v4978_v15 = vpop.permute.xlu0 %1523 }
 0x26e   : > { %v2373_v63 = vsel %vm1940_vm14, %v2362_v2, %v4978_v15 }
 0x26f   : > { %v2387_v50 = vsel %vm1953_vm15, %v2373_v63, %v2228_v12 }
 0x270   : > { %v2399_v48 = vsel %vm1966_vm1, %v2387_v50, %v4922_v44  ;;  %v2283_v9 = vpop.permute.xlu1 %2282 }
 0x271   : > { %v2412_v51 = vsel %vm1979_vm9, %v2399_v48, %v4947_v43  ;;  %v2143_v23 = vpop.permute.xlu0 %2142  ;;  %v2479_v48 = vshrl.u32 %v2442_v39, 16 }
 0x272   : > { %v2425_v29 = vsel %vm1992_vm4, %v2412_v51, %v4931_v7  ;;  %v2352_v26 = vsel %vm5477_vm7, %v4440_v38, %v2143_v23  ;;  %vm5388_vm7 = vcmask 637952  }
 0x273   : > { %v2438_v12 = vsel %vm2005_vm12, %v2425_v29, %v4955_v62  ;;  %v2364_v6 = vsel %vm1927_vm13, %v2352_v26, %v4912_v42  ;;  %v2482_v42 = vshll.u32 %v2442_v39, 16  ;;  %v2481_v26 = vrot.slane %v2479_v48, 2  ;;  %v3213_v48 = vld [vmem:[#allocation2 + $0x10] sm:$0xff] }
 0x274   : > { %v2463_v20 = vshrl.u32 %v2438_v12, 16  ;;  %v2466_v59 = vshll.u32 %v2438_v12, 16  ;;  %v1815_v25 = vpop.permute.xlu1 %1814 }
 0x275   : > { %v2203_v10 = vpop.permute.xlu0 %2202  ;;  %v2061_v35 = vsel %vm2057_vm10, %v2048_v13, %v1815_v25  ;;  %v2431_v13 = vsel %vm1992_vm4, %v2418_v54, %v4623_v60  ;;  %v2484_v12 = vrot.slane %v2482_v42, 3 }
 0x276   : > { %v2375_v28 = vsel %vm1940_vm14, %v2364_v6, %v2203_v10  ;;  %v2465_v2 = vrot.slane %v2463_v20, 2  ;;  %v2468_v5 = vrot.slane %v2466_v59, 3 }
 0x277   : > { %v2389_v63 = vsel %vm1953_vm15, %v2375_v28, %v2230_v33  ;;  %v2485_v6 = vor.u32 %v2484_v12, %v2481_v26 }
 0x278   : > { %v2401_v47 = vsel %vm1966_vm1, %v2389_v63, %v2245_v30  ;;  %v2469_v50 = vor.u32 %v2468_v5, %v2465_v2  ;;  %v1865_v0 = vpop.permute.xlu1 %1864  ;;  %v1898_v30 = vrot.slane %v4414_v46, 2 }
 0x279   : > { %v2414_v18 = vsel %vm1979_vm9, %v2401_v47, %v2283_v9  ;;  %v1520_v51 = vpop.permute.xlu0 %1519  ;;  %v2074_v22 = vsel %vm5388_vm7, %v2061_v35, %v1865_v0  ;;  %vm5389_vm7 = vcmask 736256  }
 0x27a   : > { %v2427_v23 = vsel %vm1992_vm4, %v2414_v18, %v4943_v49  ;;  %v2470_v33 = vsel %vm2447_vm11, %v4920_v17, %v2469_v50  ;;  %v2444_v49 = vsel %vm2005_vm12, %v2431_v13, %v4641_v52  ;;  %v1899_v17 = vsel %vm5391_vm3, %v4769_v8, %v1898_v30  ;;  %v3214_v18 = vld [vmem:[#allocation2 + $0x40] sm:$0x1] }
 0x27b   : > { %2501 = vrot.lane.b32.xlu1 %v2470_v33, %s3299_s26  ;;  %v2440_v9 = vsel %vm2005_vm12, %v2427_v23, %v4939_v27  ;;  %v2487_v10 = vshrl.u32 %v2444_v49, 16  ;;  %v2490_v39 = vshll.u32 %v2444_v49, 16 }
 0x27c   : > { %v2471_v61 = vshrl.u32 %v2440_v9, 16  ;;  %v2474_v29 = vshll.u32 %v2440_v9, 16  ;;  %v1885_v60 = vpop.permute.xlu1 %1884 }
 0x27d   : > { %v1546_v40 = vpop.permute.xlu0 %1545  ;;  %v2087_v20 = vsel %vm5390_vm2, %v2074_v22, %v1885_v60  ;;  %v2489_v54 = vrot.slane %v2487_v10, 2  ;;  %v2492_v63 = vrot.slane %v2490_v39, 3  ;;  %v5049_v22 = vld [vmem:[#allocation2 + $0x30] sm:$0x1f] }
 0x27e   : > { %v2473_v59 = vrot.slane %v2471_v61, 2  ;;  %v2476_v25 = vrot.slane %v2474_v29, 3  ;;  %v1611_v9 = vshrl.u32 %v5049_v22, 16  ;;  %v1614_v61 = vshll.u32 %v5049_v22, 16 }
 0x27f   : > { %1908 = vrot.lane.b32.xlu1 %v1899_v17, %s3298_s13 }
 0x280   : > { %v2477_v27 = vor.u32 %v2476_v25, %v2473_v59  ;;  %v1905_v35 = vpop.permute.xlu1 %1904 }
 0x281   : > { %v1574_v28 = vpop.permute.xlu0 %1573  ;;  %v5033_v52 = vsel %vm5389_vm7, %v2087_v20, %v1905_v35  ;;  %vm5478_vm7 = vcmask 48128   ;;  %v1616_v20 = vrot.slane %v1614_v61, 7  ;;  %v1645_v61 = vrot.slane %v5049_v22, 7 }
 0x282   : > { %v2478_v2 = vsel %vm2447_vm11, %v2469_v50, %v2477_v27  ;;  %v2486_v5 = vsel %vm2447_vm11, %v2477_v27, %v2485_v6  ;;  %v1919_v42 = vsel %vm5478_vm7, %v3213_v48, %v4816_v45  ;;  %v5045_v50 = vor.u32 %v2492_v63, %v2489_v54  ;;  %vm5479_vm2 = vmmov %vm5478_vm7  ;;  %v5058_v45 = vld [vmem:[#allocation2 + $0x30] sm:$0x3f]  ;;  %v1375_v63 = vld [vmem:[#allocation2 + $0x38] sm:$0x3] }
 0x283   : > { %2503 = vrot.lane.b32.xlu1 %v2478_v2, %s3299_s26  ;;  %2505 = vrot.lane.b32.xlu0 %v2486_v5, %s3299_s26  ;;  %v2358_v0 = vsel %vm5479_vm2, %v3214_v18, %v4319_v36  ;;  %v1369_v54 = vld [vmem:[#allocation2 + $0x30] sm:$0xf]  ;;  %vm5482_vm2 = vsmask.f32 256  ;;  %vm5486_vm7 = vcmask 687104  }
 0x284   : > { %v1734_v13 = vpop.permute.xlu1 %1733  ;;  %v2370_v36 = vsel %vm1927_vm13, %v2358_v0, %v4346_v57  ;;  %v1567_v0 = vrot.slane %v1369_v54, 6 }
 0x285   : > { %v1624_v47 = vpop.permute.xlu0 %1623  ;;  %v2381_v12 = vsel %vm1940_vm14, %v2370_v36, %v4380_v58 }
 0x286   : > { %v2395_v37 = vsel %vm1953_vm15, %v2381_v12, %v4378_v24  ;;  %v5480_v24 = vld [vmem:[#allocation8_spill] sm:$0xff] }
 0x287   : > { %1708 = vrot.lane.b32.xlu1 %v4440_v38, %s3292_s12  ;;  %1890 = vrot.lane.b32.xlu0 %v4611_v1, %s3295_s17  ;;  %v2494_v38 = vsel %vm2447_vm11, %v2485_v6, %v5045_v50  ;;  %v1933_v1 = vsel %vm1927_vm13, %v1919_v42, %v4793_v56  ;;  %v1683_v6 = vshll.u32 %v5058_v45, 16  ;;  %v2407_v35 = vsel %vm1966_vm1, %v2395_v37, %v4360_v21  ;;  %v5481_v21 = vld [vmem:[#allocation22_spill] sm:$0xff]  ;;  %v5492_v12 = vld [vmem:[#allocation20_spill] sm:$0xff]  ;;  %v5497_v37 = vld [vmem:[#allocation13_spill] sm:$0xff] }
 0x288   : > { %v1946_v33 = vsel %vm1940_vm14, %v1933_v1, %v1520_v51  ;;  %v5071_v49 = vpop.permute.xlu1 %1547  ;;  %v1900_v51 = vrot.slane %v4965_v19, 2  ;;  %v5487_v1 = vld [vmem:[#allocation18_spill] sm:$0xff]  ;;  %v5512_v19 = vld [vmem:[#allocation24_spill] sm:$0xff] }
 0x289   : > { %v1652_v23 = vpop.permute.xlu0 %1651  ;;  %v1959_v29 = vsel %vm1953_vm15, %v1946_v33, %v1546_v40  ;;  %v1613_v40 = vrot.slane %v1611_v9, 6  ;;  %v5490_v9 = vld [vmem:[#allocation11_spill] sm:$0xff] }
 0x28a   : > { %v1972_v56 = vsel %vm1966_vm1, %v1959_v29, %v1574_v28 }
 0x28b   : > { %1792 = vrot.lane.b32.xlu1 %v4555_v3, %s3296_s10  ;;  %2507 = vrot.lane.b32.xlu0 %v2494_v38, %s3299_s26  ;;  %v1680_v3 = vshrl.u32 %v5058_v45, 16  ;;  %v1985_v60 = vsel %vm1979_vm9, %v1972_v56, %v1624_v47  ;;  %v1617_v27 = vor.u32 %v1616_v20, %v1613_v40  ;;  %v1376_v38 = vld [vmem:[#allocation2 + $0x38] sm:$0x7] }
 0x28c   : > { %v1998_v57 = vsel %vm1992_vm4, %v1985_v60, %v1652_v23  ;;  %v1867_v10 = vpop.permute.xlu1 %1866  ;;  %v1810_v29 = vrot.slane %v1376_v38, 5  ;;  %v1776_v56 = vshrl.u32 %v1376_v38, 16 }
 0x28d   : > { %v1692_v26 = vpop.permute.xlu0 %1691  ;;  %v1682_v25 = vrot.slane %v1680_v3, 7  ;;  %v1779_v3 = vshll.u32 %v1376_v38, 16 }
 0x28e   : > { %v2011_v17 = vsel %vm2005_vm12, %v1998_v57, %v1692_v26  ;;  %v1378_v26 = vld [vmem:[#allocation2 + $0x38] sm:$0xf]  ;;  %v1778_v20 = vrot.slane %v1776_v56, 4 }
 0x28f   : > { %1870 = vrot.lane.b32.xlu1 %v4683_v11, %s5476_s6  ;;  %1479 = vrot.lane.b32.xlu0 %v1467_v16, %s3285_s25  ;;  %v1901_v11 = vsel %vm5391_vm3, %v1898_v30, %v1900_v51  ;;  %v1618_v30 = vsel %vm1581_vm0, %v4632_v4, %v1617_v27  ;;  %v1685_v28 = vor.u32 %v1683_v6, %v1682_v25  ;;  %vm5483_vm0 = vcmask 637952   ;;  %s5484_s25 = smov 18  }
 0x290   : > { %v1887_v4 = vpop.permute.xlu1 %1886  ;;  %vm5488_vm3 = vcmask 1041408   ;;  %v1880_v40 = vrot.slane %v1378_v26, 6  ;;  %v1854_v22 = vshrl.u32 %v1378_v26, 16 }
 0x291   : > { %v1705_v58 = vpop.permute.xlu0 %1704  ;;  %v1686_v48 = vsel %vm5482_vm2, %v5481_v21, %v1685_v28  ;;  %v1568_v36 = vsel %vm5488_vm3, %v5487_v1, %v1567_v0  ;;  %vm5489_vm2 = vcmask 1043456   ;;  %vm5494_vm3 = vcmask 1042432   ;;  %v5501_v28 = vld [vmem:[#allocation15_spill] sm:$0xff]  ;;  %v5509_v0 = vld [vmem:[#allocation9_spill] sm:$0xff] }
 0x292   : > { %v2024_v59 = vsel %vm2018_vm8, %v2011_v17, %v1705_v58  ;;  %v1781_v17 = vrot.slane %v1779_v3, 5  ;;  %v1857_v58 = vshll.u32 %v1378_v26, 16  ;;  %v5515_v3 = vld [vmem:[#allocation25_spill] sm:$0xff] }
 0x293   : > { %1910 = vrot.lane.b32.xlu1 %v1901_v11, %s3298_s13  ;;  %1551 = vrot.lane.b32.xlu0 %v4769_v8, %s3287_s30  ;;  %v2037_v16 = vsel %vm2031_vm6, %v2024_v59, %v1734_v13  ;;  %v2420_v8 = vsel %vm1979_vm9, %v2407_v35, %v5480_v24  ;;  %v1727_v13 = vrot.slane %v1375_v63, 4  ;;  %v3215_v59 = vld [vmem:[#allocation2] sm:$0xff]  ;;  %v5505_v63 = vld [vmem:[#allocation10_spill] sm:$0xff] }
 0x294   : > { %v5495_v11 = vld [vmem:[#allocation12_spill] sm:$0xff]  ;;  %v1782_v6 = vor.u32 %v1781_v17, %v1778_v20  ;;  %v1907_v21 = vpop.permute.xlu1 %1906 }
 0x295   : > { %v1789_v39 = vpop.permute.xlu0 %1788  ;;  %v1728_v33 = vsel %vm5489_vm2, %v1725_v32, %v1727_v13  ;;  %v1811_v32 = vsel %vm5494_vm3, %v1808_v53, %v1810_v29  ;;  %vm5498_vm2 = vcmask 1041408   ;;  %v5499_v53 = vld [vmem:[#allocation14_spill] sm:$0xff]  ;;  %v5500_v35 = vld [vmem:[#allocation16_spill] sm:$0xff]  ;;  %vm5504_vm3 = vsmask.f32 2304 }
 0x296   : > { %v2050_v2 = vsel %vm5392_vm5, %v2037_v16, %v1789_v39  ;;  %v1881_v16 = vsel %vm5498_vm2, %v5497_v37, %v1880_v40  ;;  %v1859_v39 = vrot.slane %v1857_v58, 6  ;;  %vm2613_vm2 = vcmask 179200  }
 0x297   : > { %1449 = vrot.lane.b32.xlu1 %v4547_v41, %s3284_s23  ;;  %1629 = vrot.lane.b32.xlu0 %v1618_v30, %s3289_s7  ;;  %v5485_v41 = vld [vmem:[#allocation7_spill] sm:$0xff]  ;;  %s5491_s23 = smov 30  }
 0x298   : > { %v2433_v18 = vsel %vm1992_vm4, %v2420_v8, %v5485_v41  ;;  %v1707_v41 = vpop.permute.xlu1 %1706 }
 0x299   : > { %v1817_v5 = vpop.permute.xlu0 %1816 }
 0x29a   : > { %v2063_v47 = vsel %vm2057_vm10, %v2050_v2, %v1817_v5 }
 0x29b   : > { %v2076_v42 = vsel %vm5483_vm0, %v2063_v47, %v1867_v10  ;;  %1525 = vrot.lane.b32.xlu1 %v4674_v34, %s5484_s25  ;;  %1697 = vrot.lane.b32.xlu0 %v1686_v48, %s3291_s9  ;;  %v2446_v34 = vsel %vm2005_vm12, %v2433_v18, %v5490_v9  ;;  %vm5493_vm0 = vcmask 1040384   ;;  %v1856_v10 = vrot.slane %v1854_v22, 5  ;;  %v5506_v48 = vld [vmem:[#allocation21_spill] sm:$0xff]  ;;  %v5508_v18 = vld [vmem:[#allocation19_spill] sm:$0xff]  ;;  %v5511_v9 = vld [vmem:[#allocation26_spill] sm:$0xff] }
 0x29c   : > { %v5114_v23 = vsel %vm5486_vm7, %v2076_v42, %v1887_v4  ;;  %v1646_v60 = vsel %vm5493_vm0, %v5492_v12, %v1645_v61  ;;  %v2495_v57 = vshll.u32 %v2446_v34, 16  ;;  %vm5496_vm7 = vcmask 48128   ;;  %v5507_v4 = vld [vmem:[#allocation6_spill] sm:$0xff]  ;;  %v1736_v38 = vpop.permute.xlu1 %1735  ;;  %v5513_v61 = vld [vmem:[#allocation27_spill] sm:$0xff] }
 0x29d   : > { %v1915_v25 = vsel %vm5496_vm7, %v3215_v59, %v5495_v11  ;;  %vm5502_vm0 = vsmask.f32 3328  ;;  %v1860_v5 = vor.u32 %v1859_v39, %v1856_v10  ;;  %v1626_v1 = vpop.permute.xlu0 %1625  ;;  %vm2511_vm7 = vcmask 785408  }
 0x29e   : > { %v2497_v46 = vrot.slane %v2495_v57, 3  ;;  %v1929_v27 = vsel %vm1927_vm13, %v1915_v25, %v5499_v53  ;;  %v1783_v24 = vsel %vm5502_vm0, %v5501_v28, %v1782_v6  ;;  %vm5516_vm0 = vcmask 687104   ;;  %v3216_v25 = vld [vmem:[#allocation2 + $0x20] sm:$0xff] }
 0x29f   : > { %1579 = vrot.lane.b32.xlu1 %v1568_v36, %s5491_s23  ;;  %1739 = vrot.lane.b32.xlu0 %v1728_v33, %s3293_s15  ;;  %v1942_v30 = vsel %vm1940_vm14, %v1929_v27, %v5500_v35  ;;  %v1861_v54 = vsel %vm5504_vm3, %v4563_v14, %v1860_v5  ;;  %v5510_v36 = vld [vmem:[#allocation23_spill] sm:$0xff]  ;;  %vm5518_vm3 = vcmask 736256   ;;  %s3000_s15 = sshll.u32 %s3354_s22, 6 }
 0x2a0   : > { %v2498_v8 = vsel %vm2447_vm11, %v5045_v50, %v2497_v46  ;;  %vm5514_vm11 = vcmask 637952   ;;  %v1550_v26 = vpop.permute.xlu1 %1549  ;;  %v1961_v46 = vsel %vm1953_vm15, %v4890_v55, %v5071_v49 }
 0x2a1   : > { %v1654_v56 = vpop.permute.xlu0 %1653  ;;  %v1974_v6 = vsel %vm1966_vm1, %v1961_v46, %v4858_v31 }
 0x2a2   : > { %v1987_v39 = vsel %vm1979_vm9, %v1974_v6, %v1626_v1 }
 0x2a3   : > { %1657 = vrot.lane.b32.xlu1 %v1646_v60, %s3290_s8  ;;  %1822 = vrot.lane.b32.xlu0 %v1811_v32, %s3294_s16  ;;  %v5517_v60 = vld [vmem:[#allocation28_spill] sm:$0xff]  ;;  %v2000_v35 = vsel %vm1992_vm4, %v1987_v39, %v1654_v56  ;;  %s215_s8 = sand.u32 1, %s3271_s19  }
 0x2a4   : > { %s2933_s9 = sshll.u32 %s215_s8, 2  ;;  %s5294_s22 = scalar_lea.sflag [#allocation4], %s215_s8 }
 0x2a5   : > { %v1694_v20 = vpop.permute.xlu0 %1693 }
 0x2a7   : > { %1710 = vrot.lane.b32.xlu1 %v5058_v45, %s3292_s12  ;;  %1892 = vrot.lane.b32.xlu0 %v1881_v16, %s3295_s17  ;;  %v5503_v45 = vld [vmem:[#allocation17_spill] sm:$0xff]  ;;  %s217_s12 = scalar_lea.vmem [#allocation3], %s2933_s9 }
 0x2a8   : > { %v1955_v2 = vsel %vm1953_vm15, %v1942_v30, %v5503_v45  ;;  %s2867_s16 = sshll.u32 %s217_s12, 4  ;;  %s5290_s16 = int_to_ptr.vmem [resolvable:$true] %s2867_s16 }
 0x2a9   : > { %v1968_v47 = vsel %vm1966_vm1, %v1955_v2, %v5505_v63  ;;  %v1448_v17 = vpop.permute.xlu0 %1447  ;;  %s3217_s11 = scalar_lea.vmem %s5290_s16, 64 }
 0x2aa   : > { %v1981_v50 = vsel %vm1979_vm9, %v1968_v47, %v5506_v48  ;;  %p3218_p11 = scmp.ne.s32.totalorder %s5290_s16, %s3217_s11 }
 0x2ab   : > { %1794 = vrot.lane.b32.xlu1 %v1783_v24, %s3296_s10  ;;  %2509 = vrot.lane.b32.xlu0 %v2498_v8, %s3299_s26  ;;  %v1994_v42 = vsel %vm1992_vm4, %v1981_v50, %v5507_v4  ;;  %v2013_v24 = vsel %vm2005_vm12, %v2000_v35, %v1694_v20  ;;  %s3221_s26 = sshll.u32 %s3300_s14, 4  ;;  %s3222_s26 = int_to_ptr.vmem [resolvable:$false] %s3221_s26 }
 0x2ac   : > { %v2007_v14 = vsel %vm2005_vm12, %v1994_v42, %v5508_v18  ;;  %v2026_v31 = vsel %vm2018_vm8, %v2013_v24, %v1707_v41  ;;  %p3219_p12 = pnand %p3218_p11, %p3371_p5  ;;  %p3224_p0 = scmp.lt.s32.totalorder %s5290_s16, %s3222_s26 }
 0x2ad   : > { %v2020_v13 = vsel %vm2018_vm8, %v2007_v14, %v5509_v0  ;;  %v1478_v22 = vpop.permute.xlu0 %1477  ;;  %v2039_v2 = vsel %vm2031_vm6, %v2026_v31, %v1736_v38  ;;  %v5248_v31 = vld [vmem:[%s5339_s4] ss:$0 sm:$0xff] }
 0x2ae   : > { %v2033_v33 = vsel %vm2031_vm6, %v2020_v13, %v5510_v36  ;;  %p3220_p13 = pneg %p3219_p12 }
 0x2af   : > { %1872 = vrot.lane.b32.xlu1 %v1861_v54, %s5476_s6  ;;  %v2046_v34 = vsel %vm5392_vm5, %v2033_v33, %v5511_v9  ;;  %s3223_s6 = scalar_lea.vmem %s3222_s26, 128 }
 0x2b0   : > { %p3225_p1 = scmp.lt.s32.totalorder %s3223_s6, %s3217_s11 }
 0x2b1   : > { %v1819_v58 = vpop.permute.xlu0 %1818 }
 0x2b2   : > { %p3226_p2 = por %p3225_p1, %p3224_p0 }
 0x2b3   : > { %1912 = vrot.lane.b32.xlu1 %v1900_v51, %s3298_s13  ;;  %v2059_v51 = vsel %vm2057_vm10, %v2046_v34, %v5512_v19  ;;  %s5288_s13 = scalar_lea.hbm %s5340_s5, %s3000_s15 }
 0x2b4   : > { %v2072_v29 = vsel %vm5514_vm11, %v2059_v51, %v5513_v61  ;;  %vm5519_vm11 = vcmask 48128   ;;  %p3227_p3 = pnand %p3226_p2, %p3220_p13 }
 0x2b5   : > { %v2085_v12 = vsel %vm5516_vm0, %v2072_v29, %v5515_v3  ;;  %v1791_v59 = vpop.permute.xlu0 %1790  ;;  %v1923_v37 = vsel %vm5519_vm11, %v3216_v25, %v1448_v17  ;;  %vm5520_vm0 = vmmov %vm5518_vm3  ;;  %vm5522_vm11 = vcmask 687104   ;;  %v1363_v29 = vld [vmem:[#allocation2 + $0x28] sm:$0x3f] }
 0x2b6   : > { %v2098_v32 = vsel %vm5518_vm3, %v2085_v12, %v5517_v60  ;;  %v1937_v16 = vsel %vm1927_vm13, %v1923_v37, %v1478_v22  ;;  %v2052_v5 = vsel %vm5392_vm5, %v2039_v2, %v1791_v59  ;;  %vm5521_vm3 = vcmask 637952  }
 0x2b7   : > { %v1950_v27 = vsel %vm1940_vm14, %v1937_v16, %v4978_v15  ;;  %v2065_v48 = vsel %vm2057_vm10, %v2052_v5, %v1819_v58 }
 0x2b8   : > { %v1963_v30 = vsel %vm1953_vm15, %v1950_v27, %v1550_v26 }
 0x2b9   : > { %v1889_v11 = vpop.permute.xlu0 %1888  ;;  %v1976_v15 = vsel %vm1966_vm1, %v1963_v30, %v4922_v44 }
 0x2ba   : > { %v1989_v45 = vsel %vm1979_vm9, %v1976_v15, %v4947_v43 }
 0x2bb   : > { %v2002_v47 = vsel %vm1992_vm4, %v1989_v45, %v4931_v7 }
 0x2bc   : > { %v2015_v4 = vsel %vm2005_vm12, %v2002_v47, %v4955_v62 }
 0x2bd   : > { %v1738_v10 = vpop.permute.xlu0 %1737 }
 0x2c1   : > { %v1821_v49 = vpop.permute.xlu0 %1820 }
 0x2c5   : > { %v2500_v57 = vpop.permute.xlu1 %2499 }
 0x2c6   : > { %v2513_v40 = vsel %vm2511_vm7, %v2098_v32, %v2500_v57  ;;  %2989 = vmatprep.mubr.msk.bf16.mxu1 %vm2613_vm2, %v2500_v57 }
 0x2c7   : > { %2662 = vmatmul.mubr.bf16.vlgmr.msra.gmra.mrb[24].mxu1 %v2513_v40 }
 0x2c9   : > { %v1869_v53 = vpop.permute.xlu1 %1868 }
 0x2ca   : > { %v2078_v43 = vsel %vm5521_vm3, %v2065_v48, %v1869_v53 }
 0x2ed   : > { %v2502_v28 = vpop.permute.xlu1 %2501 }
 0x2ee   : > { %2990 = vmatprep.mubr.msk.bf16.mxu1 %vm2613_vm2, %v2502_v28  ;;  %v2516_v55 = vsel %vm2511_vm7, %v5033_v52, %v2502_v28  ;;  %v2102_v52 = vsel %vm5520_vm0, %v5114_v23, %v1907_v21  ;;  %v2091_v21 = vsel %vm5522_vm11, %v2078_v43, %v1889_v11 }
 0x2ef   : > { %2670 = vmatmul.mubr.bf16.gmra.mrb[28].mxu1 %v2516_v55 }
 0x2f1   : > { %v1909_v8 = vpop.permute.xlu1 %1908 }
 0x2f2   : > { %v2104_v41 = vsel %vm5520_vm0, %v2091_v21, %v1909_v8 }
 0x2f5   : > { %v2504_v54 = vpop.permute.xlu1 %2503  ;;  %v2506_v63 = vpop.permute.xlu0 %2505 }
 0x2f6   : > { %2991 = vmatprep.mubr.msk.bf16.mxu1 %vm2613_vm2, %v2504_v54  ;;  %v2519_v44 = vsel %vm2511_vm7, %v2102_v52, %v2504_v54  ;;  %v2522_v13 = vsel %vm2511_vm7, %v2104_v41, %v2506_v63 }
 0x2f7   : > { %2678 = vmatmul.mubr.bf16.gmra.mrb[32].mxu1 %v2519_v44 }
 0x2f8   : > { %2992 = vmatprep.mubr.msk.bf16.mxu1 %vm2613_vm2, %v2506_v63 }
 0x2f9   : > { %v1709_v50 = vpop.permute.xlu1 %1708  ;;  %v1891_v42 = vpop.permute.xlu0 %1890 }
 0x2fa   : > { %v2028_v23 = vsel %vm2018_vm8, %v2015_v4, %v1709_v50 }
 0x2fb   : > { %v2041_v7 = vsel %vm2031_vm6, %v2028_v23, %v1738_v10 }
 0x2fd   : > { %v1793_v18 = vpop.permute.xlu1 %1792  ;;  %v2508_v14 = vpop.permute.xlu0 %2507 }
 0x2fe   : > { %v2054_v0 = vsel %vm5392_vm5, %v2041_v7, %v1793_v18  ;;  %vm5523_vm5 = vcmask 48128  }
 0x2ff   : > { %2686 = vmatmul.mubr.bf16.gmra.mrb[36].mxu1 %v2522_v13  ;;  %v2067_v62 = vsel %vm2057_vm10, %v2054_v0, %v1821_v49 }
 0x300   : > { %2993 = vmatprep.mubr.msk.bf16.mxu1 %vm2613_vm2, %v2508_v14 }
 0x301   : > { %v1871_v38 = vpop.permute.xlu1 %1870  ;;  %v1480_v1 = vpop.permute.xlu0 %1479 }
 0x302   : > { %v2080_v36 = vsel %vm5521_vm3, %v2067_v62, %v1871_v38 }
 0x303   : > { %v2093_v9 = vsel %vm5522_vm11, %v2080_v36, %v1891_v42 }
 0x305   : > { %v1911_v33 = vpop.permute.xlu1 %1910  ;;  %v1552_v34 = vpop.permute.xlu0 %1551 }
 0x306   : > { %v2106_v19 = vsel %vm5520_vm0, %v2093_v9, %v1911_v33 }
 0x307   : > { %v2525_v51 = vsel %vm2511_vm7, %v2106_v19, %v2508_v14 }
 0x308   : > { %2694 = vmatmul.mubr.bf16.gmra.mrb[40].mxu1 %v2525_v51 }
 0x309   : > { %v1450_v61 = vpop.permute.xlu1 %1449  ;;  %v1630_v26 = vpop.permute.xlu0 %1629 }
 0x30a   : > { %v1926_v56 = vsel %vm5523_vm5, %v1363_v29, %v1450_v61  ;;  %vm5524_vm5 = vcmask 539648  }
 0x30b   : > { %v1939_v12 = vsel %vm1927_vm13, %v1926_v56, %v1480_v1  ;;  %vm5525_vm13 = vmmov %vm5521_vm3 }
 0x30d   : > { %v1526_v3 = vpop.permute.xlu1 %1525  ;;  %v1698_v60 = vpop.permute.xlu0 %1697 }
 0x30e   : > { %v1952_v32 = vsel %vm1940_vm14, %v1939_v12, %v1526_v3 }
 0x30f   : > { %v1965_v40 = vsel %vm1953_vm15, %v1952_v32, %v1552_v34 }
 0x311   : > { %v1580_v57 = vpop.permute.xlu1 %1579  ;;  %v1740_v20 = vpop.permute.xlu0 %1739 }
 0x312   : > { %v1978_v17 = vsel %vm1966_vm1, %v1965_v40, %v1580_v57 }
 0x313   : > { %v1991_v58 = vsel %vm1979_vm9, %v1978_v17, %v1630_v26 }
 0x315   : > { %v1658_v22 = vpop.permute.xlu1 %1657  ;;  %v1823_v59 = vpop.permute.xlu0 %1822 }
 0x316   : > { %v2004_v11 = vsel %vm1992_vm4, %v1991_v58, %v1658_v22  ;;  %vm5526_vm4 = vmmov %vm5522_vm11 }
 0x317   : > { %v2017_v37 = vsel %vm2005_vm12, %v2004_v11, %v1698_v60  ;;  %vm5527_vm12 = vmmov %vm5520_vm0 }
 0x319   : > { %v1711_v25 = vpop.permute.xlu1 %1710  ;;  %v1893_v16 = vpop.permute.xlu0 %1892 }
 0x31a   : > { %v2030_v46 = vsel %vm2018_vm8, %v2017_v37, %v1711_v25  ;;  %vm5529_vm8 = vcmask 1045504  }
 0x31b   : > { %v2043_v27 = vsel %vm2031_vm6, %v2030_v46, %v1740_v20  ;;  %vm5528_vm6 = vcmask 1046528   ;;  %vm5531_vm15 = vmmov %vm5529_vm8 }
 0x31c   : > { %vm5530_vm14 = vmmov %vm5528_vm6 }
 0x31d   : > { %v1795_v53 = vpop.permute.xlu1 %1794  ;;  %v2510_v6 = vpop.permute.xlu0 %2509  ;;  %vm5532_vm1 = vmmov %vm5528_vm6 }
 0x31e   : > { %v2056_v10 = vsel %vm5524_vm5, %v2043_v27, %v1795_v53  ;;  %2994 = vmatprep.mubr.msk.bf16.mxu1 %vm2613_vm2, %v2510_v6  ;;  %vm5533_vm9 = vmmov %vm5529_vm8  ;;  %vm5536_vm2 = vcmask 1043456  }
 0x31f   : > { %v2069_v35 = vsel %vm2057_vm10, %v2056_v10, %v1823_v59  ;;  %vm5534_vm10 = vmmov %vm5532_vm1 }
 0x320   : > { %vm5537_vm3 = vmmov %vm5532_vm1 }
 0x321   : > { %v1873_v39 = vpop.permute.xlu1 %1872  ;;  %vm5539_vm0 = vmmov %vm5532_vm1 }
 0x322   : > { %v2082_v30 = vsel %vm5525_vm13, %v2069_v35, %v1873_v39  ;;  %vm5541_vm13 = vmmov %vm5539_vm0 }
 0x323   : > { %v2095_v24 = vsel %vm5526_vm4, %v2082_v30, %v1893_v16 }
 0x325   : > { %v1913_v28 = vpop.permute.xlu1 %1912 }
 0x326   : > { %v2108_v55 = vsel %vm5527_vm12, %v2095_v24, %v1913_v28  ;;  %vm5543_vm12 = vmmov %vm5536_vm2 }
 0x327   : > { %v2528_v15 = vsel %vm2511_vm7, %v2108_v55, %v2510_v6  ;;  %vm5535_vm7 = vmmov %vm5529_vm8 }
 0x328   : > { %2702 = vmatmul.mubr.bf16.gmra.mrb[44].mxu1 %v2528_v15  ;;  %vm5538_vm11 = vmmov %vm5535_vm7 }
 0x329   : > { %vm5540_vm5 = vmmov %vm5535_vm7 }
 0x32a   : > { %vm5542_vm4 = vmmov %vm5540_vm5 }
 0x39a   : > { %v2663_v49 = vpop.f32.mrb[24].mxu1 }
 0x39b   : > { %v2664_v8 = vadd.f32 %v5248_v31, %v2663_v49  ;;  %v2665_v45 = vpop.f32.mrb[25].mxu1 }
 0x39c   : > { %v2666_v2 = vpop.f32.mrb[26].mxu1 }
 0x39d   : > { %v2708_v5 = vmax.f32 %v2664_v8, 0.0  ;;  %v2667_v54 = vadd.f32 %v5248_v31, %v2666_v2  ;;  %v2668_v63 = vpop.f32.mrb[27].mxu1 }
 0x39f   : > { %v2709_v52 = vmax.f32 %v2667_v54, 0.0  ;;  %v2728_v44 = vrot.slane %v2708_v5, 1  ;;  %v2767_v47 = vrot.slane %v2708_v5, 2 }
 0x3a1   : > { %v2729_v48 = vrot.slane %v2709_v52, 1  ;;  %v2768_v43 = vrot.slane %v2709_v52, 2 }
 0x3a3   : > { %v2730_v50 = vsel %vm5528_vm6, %v2728_v44, %v2729_v48  ;;  %v2769_v4 = vsel %vm5529_vm8, %v2767_v47, %v2768_v43  ;;  %vm5544_vm6 = vmmov %vm5539_vm0 }
 0x3a4   : > { %v2757_v42 = vmax.f32 %v2708_v5, %v2730_v50  ;;  %vm5545_vm8 = vmmov %vm5542_vm4 }
 0x3a6   : > { %v2796_v23 = vmax.f32 %v2757_v42, %v2769_v4 }
 0x3c2   : > { %v2671_v21 = vpop.f32.mrb[28].mxu1 }
 0x3c3   : > { %v2672_v41 = vadd.f32 %v5248_v31, %v2671_v21  ;;  %v2673_v18 = vpop.f32.mrb[29].mxu1 }
 0x3c4   : > { %v2674_v7 = vpop.f32.mrb[30].mxu1 }
 0x3c5   : > { %v2710_v14 = vmax.f32 %v2672_v41, 0.0  ;;  %v2675_v0 = vadd.f32 %v5248_v31, %v2674_v7  ;;  %v2676_v13 = vpop.f32.mrb[31].mxu1 }
 0x3c7   : > { %v2731_v38 = vrot.slane %v2710_v14, 1  ;;  %v2770_v62 = vrot.slane %v2710_v14, 2  ;;  %v2711_v1 = vmax.f32 %v2675_v0, 0.0 }
 0x3c9   : > { %v2732_v36 = vsel %vm5530_vm14, %v2729_v48, %v2731_v38  ;;  %v2771_v33 = vsel %vm5531_vm15, %v2768_v43, %v2770_v62  ;;  %v2733_v9 = vrot.slane %v2711_v1, 1  ;;  %v2772_v34 = vrot.slane %v2711_v1, 2  ;;  %vm5546_vm14 = vmmov %vm5539_vm0 }
 0x3ca   : > { %v2758_v19 = vmax.f32 %v2709_v52, %v2732_v36  ;;  %v2679_v51 = vpop.f32.mrb[32].mxu1  ;;  %vm5547_vm15 = vmmov %vm5542_vm4 }
 0x3cb   : > { %v2734_v61 = vsel %vm5532_vm1, %v2731_v38, %v2733_v9  ;;  %v2773_v29 = vsel %vm5533_vm9, %v2770_v62, %v2772_v34  ;;  %v2680_v26 = vadd.f32 %v5248_v31, %v2679_v51  ;;  %v2681_v56 = vpop.f32.mrb[33].mxu1  ;;  %vm5548_vm1 = vmmov %vm5536_vm2  ;;  %vm2850_vm9 = vcmask 58368  }
 0x3cc   : > { %v2797_v3 = vmax.f32 %v2758_v19, %v2771_v33  ;;  %v2759_v12 = vmax.f32 %v2710_v14, %v2734_v61  ;;  %v2682_v60 = vpop.f32.mrb[34].mxu1 }
 0x3cd   : > { %v2712_v32 = vmax.f32 %v2680_v26, 0.0  ;;  %v2683_v57 = vadd.f32 %v5248_v31, %v2682_v60  ;;  %v2684_v40 = vpop.f32.mrb[35].mxu1 }
 0x3ce   : > { %v2798_v20 = vmax.f32 %v2759_v12, %v2773_v29  ;;  %v2812_v59 = vrot.slane %v2797_v3, 4 }
 0x3cf   : > { %v2735_v17 = vrot.slane %v2712_v32, 1  ;;  %v2774_v22 = vrot.slane %v2712_v32, 2  ;;  %v2713_v58 = vmax.f32 %v2683_v57, 0.0 }
 0x3d0   : > { %v2813_v11 = vrot.slane %v2798_v20, 4 }
 0x3d1   : > { %v2736_v25 = vsel %vm5534_vm10, %v2733_v9, %v2735_v17  ;;  %v2775_v37 = vsel %vm5535_vm7, %v2772_v34, %v2774_v22  ;;  %v2737_v16 = vrot.slane %v2713_v58, 1  ;;  %v2776_v46 = vrot.slane %v2713_v58, 2 }
 0x3d2   : > { %v2760_v53 = vmax.f32 %v2711_v1, %v2736_v25  ;;  %v2814_v27 = vsel %vm5536_vm2, %v2812_v59, %v2813_v11  ;;  %v2687_v6 = vpop.f32.mrb[36].mxu1  ;;  %vm5549_vm10 = vcmask 1040384  }
 0x3d3   : > { %v2824_v10 = vmax.f32 %v2796_v23, %v2814_v27  ;;  %v2738_v39 = vsel %vm5537_vm3, %v2735_v17, %v2737_v16  ;;  %v2777_v35 = vsel %vm5538_vm11, %v2774_v22, %v2776_v46  ;;  %v2688_v30 = vadd.f32 %v5248_v31, %v2687_v6  ;;  %v2689_v28 = vpop.f32.mrb[37].mxu1  ;;  %vm5550_vm7 = vmmov %vm5549_vm10 }
 0x3d4   : > { %v2799_v24 = vmax.f32 %v2760_v53, %v2775_v37  ;;  %v2761_v55 = vmax.f32 %v2712_v32, %v2738_v39  ;;  %v2690_v15 = vpop.f32.mrb[38].mxu1 }
 0x3d5   : > { %v2714_v49 = vmax.f32 %v2688_v30, 0.0  ;;  %v2691_v8 = vadd.f32 %v5248_v31, %v2690_v15  ;;  %v2692_v45 = vpop.f32.mrb[39].mxu1 }
 0x3d6   : > { %v2827_v2 = vmax.f32 %v2824_v10, %v2799_v24  ;;  %v2800_v5 = vmax.f32 %v2761_v55, %v2777_v35 }
 0x3d7   : > { %v2739_v54 = vrot.slane %v2714_v49, 1  ;;  %v2778_v63 = vrot.slane %v2714_v49, 2  ;;  %v2715_v52 = vmax.f32 %v2691_v8, 0.0 }
 0x3d8   : > { %v2815_v14 = vrot.slane %v2800_v5, 4 }
 0x3d9   : > { %v2740_v44 = vsel %vm5539_vm0, %v2737_v16, %v2739_v54  ;;  %v2779_v47 = vsel %vm5540_vm5, %v2776_v46, %v2778_v63  ;;  %v2741_v48 = vrot.slane %v2715_v52, 1  ;;  %v2780_v43 = vrot.slane %v2715_v52, 2 }
 0x3da   : > { %v2762_v50 = vmax.f32 %v2713_v58, %v2740_v44 }
 0x3db   : > { %v2742_v4 = vsel %vm5541_vm13, %v2739_v54, %v2741_v48  ;;  %v2781_v42 = vsel %vm5542_vm4, %v2778_v63, %v2780_v43  ;;  %v2695_v23 = vpop.f32.mrb[40].mxu1 }
 0x3dc   : > { %v2801_v21 = vmax.f32 %v2762_v50, %v2779_v47  ;;  %v2763_v41 = vmax.f32 %v2714_v49, %v2742_v4  ;;  %v2696_v18 = vadd.f32 %v5248_v31, %v2695_v23  ;;  %v2697_v7 = vpop.f32.mrb[41].mxu1 }
 0x3dd   : > { %v2698_v0 = vpop.f32.mrb[42].mxu1 }
 0x3de   : > { %v2816_v13 = vrot.slane %v2801_v21, 4  ;;  %v2802_v38 = vmax.f32 %v2763_v41, %v2781_v42  ;;  %v2716_v62 = vmax.f32 %v2696_v18, 0.0  ;;  %v2699_v1 = vadd.f32 %v5248_v31, %v2698_v0  ;;  %v2700_v36 = vpop.f32.mrb[43].mxu1 }
 0x3e0   : > { %v2817_v33 = vsel %vm5543_vm12, %v2815_v14, %v2816_v13  ;;  %v2743_v9 = vrot.slane %v2716_v62, 1  ;;  %v2782_v34 = vrot.slane %v2716_v62, 2  ;;  %v2717_v19 = vmax.f32 %v2699_v1, 0.0 }
 0x3e1   : > { %v2825_v51 = vmax.f32 %v2799_v24, %v2817_v33 }
 0x3e2   : > { %v2744_v61 = vsel %vm5544_vm6, %v2741_v48, %v2743_v9  ;;  %v2783_v29 = vsel %vm5545_vm8, %v2780_v43, %v2782_v34  ;;  %v2745_v26 = vrot.slane %v2717_v19, 1  ;;  %v2784_v56 = vrot.slane %v2717_v19, 2 }
 0x3e3   : > { %v2828_v3 = vmax.f32 %v2825_v51, %v2802_v38  ;;  %v2764_v12 = vmax.f32 %v2715_v52, %v2744_v61 }
 0x3e4   : > { %v2746_v60 = vsel %vm5546_vm14, %v2743_v9, %v2745_v26  ;;  %v2785_v31 = vsel %vm5547_vm15, %v2782_v34, %v2784_v56  ;;  %v2766_v22 = vmax.f32 %v2717_v19, %v2745_v26 }
 0x3e5   : > { %v2830_v32 = vadd.f32 %v2828_v3, %v2827_v2  ;;  %v2803_v57 = vmax.f32 %v2764_v12, %v2783_v29  ;;  %v2765_v40 = vmax.f32 %v2716_v62, %v2746_v60 }
 0x3e6   : > { %v2805_v16 = vmax.f32 %v2766_v22, %v2784_v56 }
 0x3e7   : > { %v2832_v20 = vrot.slane %v2830_v32, 2  ;;  %v2804_v17 = vmax.f32 %v2765_v40, %v2785_v31  ;;  %v2818_v59 = vrot.slane %v2803_v57, 4 }
 0x3e9   : > { %v2834_v58 = vadd.f32 %v2832_v20, %v2830_v32  ;;  %v2819_v11 = vrot.slane %v2804_v17, 4 }
 0x3eb   : > { %v2835_v25 = vmul.f32 0.25, %v2834_v58  ;;  %v2820_v37 = vsel %vm5548_vm1, %v2818_v59, %v2819_v11 }
 0x3ec   : > { %v2826_v46 = vmax.f32 %v2802_v38, %v2820_v37 }
 0x3ed   : > { %v2837_v53 = vrot.slane %v2835_v25, 1 }
 0x3ee   : > { %v2829_v27 = vmax.f32 %v2826_v46, %v2805_v16 }
 0x3ef   : > { %v2839_v6 = vsel %vm5549_vm10, %v2835_v25, %v2837_v53 }
 0x3f0   : > { %v2840_v10 = vadd.f32 %v2829_v27, %v2828_v3  ;;  %2851 = vst.msk [vmem:[%s217_s12] sm:$0x3] %vm2850_vm9, %v2839_v6 }
 0x3f2   : > { %v2842_v39 = vrot.slane %v2840_v10, 2 }
 0x3f4   : > { %v2844_v35 = vadd.f32 %v2842_v39, %v2840_v10 }
 0x3f6   : > { %v2845_v30 = vmul.f32 0.25, %v2844_v35 }
 0x3f8   : > { %v2847_v28 = vrot.slane %v2845_v30, 1 }
 0x3fa   : > { %v2849_v24 = vsel %vm5550_vm7, %v2845_v30, %v2847_v28 }
 0x3fb   : > { %v2703_v55 = vpop.f32.mrb[44].mxu1  ;;  %2852 = vst.msk [vmem:[%s217_s12 + $0x2] sm:$0x3] %vm2850_vm9, %v2849_v24 }
 0x3fc   : > { %v2704_v15 = vpop.f32.mrb[45].mxu1 }
 0x3fd   : > { %3230 = shalt.err (!%p3227_p3)
}
 0x3fe   : > { %s3231_s25 = scalar_lea.hbm %s5288_s13, 64  ;;  %s3235_s7 = scalar_lea.hbm %s5340_s5, 128 }
 0x3ff   : > { %p3232_p4 = scmp.ne.s32.totalorder %s5288_s13, %s3231_s25  ;;  %p3236_p9 = scmp.lt.u32.totalorder %s5288_s13, %s5340_s5 }
 0x400   : > { %p3237_p10 = scmp.lt.u32.totalorder %s3235_s7, %s3231_s25  ;;  %p3239_p12 = scmp.lt.u32.totalorder %s3231_s25, %s5288_s13 }
 0x401   : > { %p3233_p7 = pnand %p3232_p4, %p3371_p5 }
 0x402   : > { %p3238_p11 = por %p3237_p10, %p3236_p9 }
 0x403   : > { %p3234_p8 = pneg %p3233_p7 }
 0x404   : > { %p3240_p13 = por %p3239_p12, %p3238_p11 }
 0x406   : > { %p3241_p0 = pnand %p3240_p13, %p3234_p8 }
 0x408   : > { %3244 = shalt.err (!%p3241_p0)
}
 0x409   : > { %s3301_s12 = smov 32   ;;  %s3302_s15 = smov 2   ;;  %v2705_v49 = vpop.f32.mrb[46].mxu1 }
 0x40a   : > { %3117 = dma.vmem_to_hbm [thread:$0]  (%p3371_p5), %s5290_s16, 64, %s5288_s13, %s5294_s22, %s3301_s12, %s3301_s12, %s3302_s15   ;;  %v2706_v8 = vpop.f32.mrb[47].mxu1 }
 0x40b PF: > { %p3123_p1 = scmp.ge.s32.totalorder %s3279_s21, 2  ;;  %s2882_s17 = sand.u32 1, %s3267_s18  }
 0x40c   : > { %s2883_s10 = scalar_lea.sflag [#allocation4], %s2882_s17 }
 0x40d   : > { %p3120_p2 = pnand %p3123_p1, %p3375_p6 }
 0x40f   : > { %3262 = dma.done.wait (!%p3120_p2), %s2883_s10, 64  }
 0x410   : > { %3264 = vsyncadd (!%p3120_p2), %s2883_s10, 4294967232  ;;  %p15_p3 = scmp.ge.s32.totalorder %s3358_s24, 4   ;;  %s5551_s18 = smov %s3271_s19 }
 0x411   : > { %s5552_s19 = smov %s3275_s20  ;;  %s5553_s20 = smov %s3369_s27 }
 0x412   : > { %s5554_s21 = smov %s3358_s24  ;;  %17 = sbr.rel (!%p15_p3) target bundleno = 3 (0x3), region = 75 }
 0x419   :  { %2888 = vsyncpa [#allocation4], 1 }
 0x41a   :  { %2890 = vsyncpa [#allocation4 + $0x1], 1 }

</bundles_post_ra>
